<compile_context>
chip_gen: v7x
topology: tpu7x:2x2x1
jax: 0.10.0
libtpu: 0.0.40
codegen_flags: <defaults>
</compile_context>

<pallas_src>
import jax
import jax.numpy as jnp
from jax.experimental import pallas as pl
from jax.experimental.pallas import tpu as pltpu  # noqa: F401  (TPU backend)

# ---- small config consistent with the module's forward ----
B = 2              # batch
T = 8              # text sequence length (token 0 acts as [CLS])
C = 3              # image channels
IMG = 16           # image spatial size
P = 8              # patch size
NP = (IMG // P) ** 2          # image patches = 4
S = T + NP                    # multimodal sequence = 12
H = 32             # hidden size
NH = 4             # attention heads
DH = H // NH       # head dim = 8
INTER = 4 * H      # MLP intermediate = 128
L = 2              # encoder layers
VOCAB = 100
NUM_LABELS = 3
EPS = 1e-12        # ViLT / BERT layer_norm_eps


def _ln(x, g, b, eps=EPS):
    mu = jnp.mean(x, axis=-1, keepdims=True)
    var = jnp.mean(jnp.square(x - mu), axis=-1, keepdims=True)
    return (x - mu) * jax.lax.rsqrt(var + eps) * g + b


def _gelu(x):
    # TODO(synk): HF ViLT uses exact (erf) GELU; tanh approximation used here.
    return jax.nn.gelu(x, approximate=True)


# ---------------- fused Pallas kernel (whole forward) ----------------

def fused_vilt_kernel(te_ref, patches_ref, img_bias_ref, patch_w_ref,
                      attn_w_ref, mlp_w1_ref, mlp_w2_ref,
                      layer_vecs_ref, mlp_b1_ref,
                      pool_w_ref, cls_w_ref, head_vecs_ref,
                      out_ref):
    # --- patch embedding: Conv2d(kernel=stride=patch) as one matmul.
    #     conv bias + image position emb + type-1 emb are pre-folded into
    #     img_bias, so a single add finishes the image tokens.
    pe = jnp.dot(patches_ref[...], patch_w_ref[...],
                 preferred_element_type=jnp.float32) + img_bias_ref[...]   # (B*NP, H)
    te = te_ref[...]                                                       # (B*T, H)

    # --- build the multimodal sequence, batch-flattened: (B*S, H)
    pieces = []
    for b in range(B):
        pieces.append(te[b * T:(b + 1) * T])
        pieces.append(pe[b * NP:(b + 1) * NP])
    x = jnp.concatenate(pieces, axis=0)                                    # (B*S, H)

    scale = 1.0 / (DH ** 0.5)

    # --- encoder layers (static unrolled loop; weights stay VMEM-resident) ---
    for l in range(L):
        vecs = layer_vecs_ref[l]                                           # (16, H)
        ln1_g, ln1_b = vecs[0:1], vecs[1:2]
        bq, bk, bv, bo = vecs[2:3], vecs[3:4], vecs[4:5], vecs[5:6]
        ln2_g, ln2_b, b2 = vecs[6:7], vecs[7:8], vecs[8:9]
        aw = attn_w_ref[l]                                                 # (4, H, H)
        wq, wk, wv, wo = aw[0], aw[1], aw[2], aw[3]
        w1 = mlp_w1_ref[l]                                                 # (H, INTER)
        b1 = mlp_b1_ref[l]                                                 # (1, INTER)
        w2 = mlp_w2_ref[l]                                                 # (INTER, H)

        # -- self attention (pre-LN) --
        h = _ln(x, ln1_g, ln1_b)
        q = jnp.dot(h, wq, preferred_element_type=jnp.float32) + bq        # (B*S, H)
        k = jnp.dot(h, wk, preferred_element_type=jnp.float32) + bk
        v = jnp.dot(h, wv, preferred_element_type=jnp.float32) + bv

        # fold batch and heads into one batched contraction: (B*NH, S, DH)
        def split_heads(t):
            return jnp.stack(
                [t[b * S:(b + 1) * S, hd * DH:(hd + 1) * DH]
                 for b in range(B) for hd in range(NH)], axis=0)

        q3, k3, v3 = split_heads(q), split_heads(k), split_heads(v)
        s3 = jnp.einsum('nqd,nkd->nqk', q3, k3,
                        preferred_element_type=jnp.float32) * scale        # (B*NH,S,S)
        s3 = s3 - jnp.max(s3, axis=-1, keepdims=True)
        p3 = jnp.exp(s3)
        p3 = p3 * pl.reciprocal(jnp.sum(p3, axis=-1, keepdims=True),
                                approx=True)
        c3 = jnp.einsum('nqk,nkd->nqd', p3, v3,
                        preferred_element_type=jnp.float32)                # (B*NH,S,DH)
        attn = jnp.concatenate(
            [jnp.concatenate([c3[b * NH + hd] for hd in range(NH)], axis=-1)
             for b in range(B)], axis=0)                                   # (B*S, H)

        x = x + jnp.dot(attn, wo, preferred_element_type=jnp.float32) + bo

        # -- MLP (pre-LN) --
        h2 = _ln(x, ln2_g, ln2_b)
        m = jnp.dot(h2, w1, preferred_element_type=jnp.float32) + b1       # (B*S, INTER)
        m = _gelu(m)
        x = x + jnp.dot(m, w2, preferred_element_type=jnp.float32) + b2

    # --- final LayerNorm (per-token, so applying it to [CLS] rows only is
    #     exact), ViLT pooler = tanh(dense(cls)), then the attached classifier.
    hv = head_vecs_ref[...]                                                # (8, H)
    lnf_g, lnf_b, pool_b = hv[0:1], hv[1:2], hv[2:3]
    cls_b = hv[3:4, :NUM_LABELS]                                           # (1, NUM_LABELS)
    cls_tok = jnp.concatenate([x[b * S:b * S + 1] for b in range(B)],
                              axis=0)                                      # (B, H)
    cls_tok = _ln(cls_tok, lnf_g, lnf_b)
    pooled = jnp.tanh(jnp.dot(cls_tok, pool_w_ref[...],
                              preferred_element_type=jnp.float32) + pool_b)
    out_ref[...] = jnp.dot(pooled, cls_w_ref[...],
                           preferred_element_type=jnp.float32) + cls_b


def fused_vilt_forward(te, patches, img_bias, params):
    # Single program, no grid: every input is a single small DMA into VMEM,
    # all intermediates stay on-chip, only (B, NUM_LABELS) is written back.
    return pl.pallas_call(
        fused_vilt_kernel,
        out_shape=jax.ShapeDtypeStruct((B, NUM_LABELS), jnp.float32),
    )(te, patches, img_bias, params["patch_w"],
      params["attn_w"], params["mlp_w1"], params["mlp_w2"],
      params["layer_vecs"], params["mlp_b1"],
      params["pool_w"], params["cls_w"], params["head_vecs"])


# ---------------- parameters (deterministic, synthetic, packed) ----------------

def init_params(key):
    ks = iter(jax.random.split(key, 64))
    s = 0.02

    def nrm(shape):
        return (s * jax.random.normal(next(ks), shape)).astype(jnp.float32)

    zeros_h = jnp.zeros((H,), jnp.float32)
    ones_h = jnp.ones((H,), jnp.float32)

    params = {
        "word_emb": nrm((VOCAB, H)),
        "pos_text": nrm((T, H)),
        "pos_img":  nrm((NP, H)),
        "type_emb": nrm((2, H)),
        "txt_ln_g": ones_h,
        "txt_ln_b": zeros_h,
        # Conv2d weight (H, C, P, P) flattened to (C*P*P, H), matching the
        # (c, ph, pw) patch-flattening order used in the wrapper.
        "patch_w": nrm((H, C, P, P)).reshape(H, C * P * P).T,
        "patch_b": zeros_h,
        "pool_w": nrm((H, H)),
        "cls_w": nrm((H, NUM_LABELS)),
    }

    attn_w, mlp_w1, mlp_w2, layer_vecs, mlp_b1 = [], [], [], [], []
    for _ in range(L):
        wq, wk, wv, wo = nrm((H, H)), nrm((H, H)), nrm((H, H)), nrm((H, H))
        attn_w.append(jnp.stack([wq, wk, wv, wo], axis=0))       # (4, H, H)
        mlp_w1.append(nrm((H, INTER)))
        mlp_w2.append(nrm((INTER, H)))
        mlp_b1.append(jnp.zeros((1, INTER), jnp.float32))
        vrows = jnp.stack([ones_h, zeros_h,                      # ln1 gamma/beta
                           zeros_h, zeros_h, zeros_h, zeros_h,   # bq,bk,bv,bo
                           ones_h, zeros_h, zeros_h], axis=0)    # ln2 g/b, b2
        layer_vecs.append(jnp.concatenate(
            [vrows, jnp.zeros((16 - vrows.shape[0], H), jnp.float32)], axis=0))

    params["attn_w"] = jnp.stack(attn_w)          # (L, 4, H, H)
    params["mlp_w1"] = jnp.stack(mlp_w1)          # (L, H, INTER)
    params["mlp_w2"] = jnp.stack(mlp_w2)          # (L, INTER, H)
    params["layer_vecs"] = jnp.stack(layer_vecs)  # (L, 16, H)
    params["mlp_b1"] = jnp.stack(mlp_b1)          # (L, 1, INTER)

    # final-LN / pooler / classifier vectors packed into one (8, H) tensor:
    # rows: 0 lnf_g, 1 lnf_b, 2 pool_b, 3 cls_b (lane-padded to H), 4-7 pad.
    params["head_vecs"] = jnp.stack(
        [ones_h, zeros_h, zeros_h, zeros_h] + [zeros_h] * 4, axis=0)  # (8, H)
    return params


# ---------------- forward (== ViltWithCustomClassifier.forward) ----------------

def vilt_with_custom_classifier_forward(params, input_ids, pixel_values):
    # --- text embeddings (BERT-style): word + pos + type0, LayerNorm (XLA glue:
    #     the vocabulary gather has no clean Pallas equivalent at this size) ---
    te = (params["word_emb"][input_ids]
          + params["pos_text"][None]
          + params["type_emb"][0][None, None])
    te = _ln(te, params["txt_ln_g"], params["txt_ln_b"])
    te = te.reshape(B * T, H).astype(jnp.float32)

    # --- image patches: NCHW -> (B*NP, C*P*P) flattening (pure layout glue) ---
    nh = nw = IMG // P
    patches = pixel_values.reshape(B, C, nh, P, nw, P)
    patches = patches.transpose(0, 2, 4, 1, 3, 5).reshape(B * NP, C * P * P)
    patches = patches.astype(jnp.float32)

    # conv bias + image position emb + type-1 emb folded into one additive term
    img_bias = jnp.tile(params["patch_b"][None]
                        + params["pos_img"]
                        + params["type_emb"][1][None], (B, 1))   # (B*NP, H)

    # --- one fused Pallas kernel: patch-embed matmul, L encoder layers,
    #     final LN + pooler_output, attached classifier head (tid slot) ---
    return fused_vilt_forward(te, patches, img_bias, params)     # (B, NUM_LABELS)


if __name__ == "__main__":
    root = jax.random.PRNGKey(0)
    k_ids, k_pix, k_par = jax.random.split(root, 3)
    input_ids = jax.random.randint(k_ids, (B, T), 0, VOCAB)
    pixel_values = jax.random.normal(k_pix, (B, C, IMG, IMG), jnp.float32)
    params = init_params(k_par)

    fwd = jax.jit(vilt_with_custom_classifier_forward)
    logits = fwd(params, input_ids, pixel_values)
    jax.block_until_ready(logits)
    assert logits.shape == (B, NUM_LABELS)
    print("KERNEL_OK")
</pallas_src>

<mosaic_0001>
module attributes {stable_mosaic.version = 11 : i64} {
  func.func @fused_vilt_kernel(%arg0: memref<16x32xf32, #tpu.memory_space<vmem>>, %arg1: memref<8x192xf32, #tpu.memory_space<vmem>>, %arg2: memref<8x32xf32, #tpu.memory_space<vmem>>, %arg3: memref<192x32xf32, #tpu.memory_space<vmem>>, %arg4: memref<2x4x32x32xf32, #tpu.memory_space<vmem>>, %arg5: memref<2x32x128xf32, #tpu.memory_space<vmem>>, %arg6: memref<2x128x32xf32, #tpu.memory_space<vmem>>, %arg7: memref<2x16x32xf32, #tpu.memory_space<vmem>>, %arg8: memref<2x1x128xf32, #tpu.memory_space<vmem>>, %arg9: memref<32x32xf32, #tpu.memory_space<vmem>>, %arg10: memref<32x3xf32, #tpu.memory_space<vmem>>, %arg11: memref<8x32xf32, #tpu.memory_space<vmem>>, %arg12: memref<2x3xf32, #tpu.memory_space<vmem>>) attributes {dimension_semantics = [], scalar_prefetch = 0 : i64, scratch_operands = 0 : i64, tpu.core_type = #tpu.core_type<tc>} {
    %c0 = arith.constant 0 : index
    %c0_0 = arith.constant 0 : index
    %0 = vector.load %arg1[%c0, %c0_0] : memref<8x192xf32, #tpu.memory_space<vmem>>, vector<8x192xf32>
    %c0_1 = arith.constant 0 : index
    %c0_2 = arith.constant 0 : index
    %1 = vector.load %arg3[%c0_1, %c0_2] : memref<192x32xf32, #tpu.memory_space<vmem>>, vector<192x32xf32>
    %cst = arith.constant dense<0.000000e+00> : vector<8x32xf32>
    %2 = tpu.matmul %0, %1, %cst {dimension_numbers = #tpu.dot_dimension_numbers<[1], [0], [0], [1], [0, 0, 1, 1], [], []>} : vector<8x192xf32>, vector<192x32xf32>, vector<8x32xf32> -> vector<8x32xf32>
    %c0_3 = arith.constant 0 : index
    %c0_4 = arith.constant 0 : index
    %3 = vector.load %arg2[%c0_3, %c0_4] : memref<8x32xf32, #tpu.memory_space<vmem>>, vector<8x32xf32>
    %4 = arith.addf %2, %3 : vector<8x32xf32>
    %c0_5 = arith.constant 0 : index
    %c0_6 = arith.constant 0 : index
    %5 = vector.load %arg0[%c0_5, %c0_6] : memref<16x32xf32, #tpu.memory_space<vmem>>, vector<16x32xf32>
    %6 = vector.extract_strided_slice %5 {offsets = [0, 0], sizes = [8, 32], strides = [1, 1]} : vector<16x32xf32> to vector<8x32xf32>
    %7 = vector.extract_strided_slice %4 {offsets = [0, 0], sizes = [4, 32], strides = [1, 1]} : vector<8x32xf32> to vector<4x32xf32>
    %8 = vector.extract_strided_slice %5 {offsets = [8, 0], sizes = [8, 32], strides = [1, 1]} : vector<16x32xf32> to vector<8x32xf32>
    %9 = vector.extract_strided_slice %4 {offsets = [4, 0], sizes = [4, 32], strides = [1, 1]} : vector<8x32xf32> to vector<4x32xf32>
    %10 = tpu.concatenate %6, %7, %8, %9 in 0 : vector<8x32xf32>, vector<4x32xf32>, vector<8x32xf32>, vector<4x32xf32> -> vector<24x32xf32>
    %c0_7 = arith.constant 0 : index
    %c0_8 = arith.constant 0 : index
    %c0_9 = arith.constant 0 : index
    %11 = vector.load %arg7[%c0_7, %c0_8, %c0_9] : memref<2x16x32xf32, #tpu.memory_space<vmem>>, vector<1x16x32xf32>
    %12 = vector.shape_cast %11 : vector<1x16x32xf32> to vector<16x32xf32>
    %13 = vector.extract_strided_slice %12 {offsets = [0, 0], sizes = [1, 32], strides = [1, 1]} : vector<16x32xf32> to vector<1x32xf32>
    %14 = vector.extract_strided_slice %12 {offsets = [1, 0], sizes = [1, 32], strides = [1, 1]} : vector<16x32xf32> to vector<1x32xf32>
    %15 = vector.extract_strided_slice %12 {offsets = [2, 0], sizes = [1, 32], strides = [1, 1]} : vector<16x32xf32> to vector<1x32xf32>
    %16 = vector.extract_strided_slice %12 {offsets = [3, 0], sizes = [1, 32], strides = [1, 1]} : vector<16x32xf32> to vector<1x32xf32>
    %17 = vector.extract_strided_slice %12 {offsets = [4, 0], sizes = [1, 32], strides = [1, 1]} : vector<16x32xf32> to vector<1x32xf32>
    %18 = vector.extract_strided_slice %12 {offsets = [5, 0], sizes = [1, 32], strides = [1, 1]} : vector<16x32xf32> to vector<1x32xf32>
    %19 = vector.extract_strided_slice %12 {offsets = [6, 0], sizes = [1, 32], strides = [1, 1]} : vector<16x32xf32> to vector<1x32xf32>
    %20 = vector.extract_strided_slice %12 {offsets = [7, 0], sizes = [1, 32], strides = [1, 1]} : vector<16x32xf32> to vector<1x32xf32>
    %21 = vector.extract_strided_slice %12 {offsets = [8, 0], sizes = [1, 32], strides = [1, 1]} : vector<16x32xf32> to vector<1x32xf32>
    %c0_10 = arith.constant 0 : index
    %c0_11 = arith.constant 0 : index
    %c0_12 = arith.constant 0 : index
    %c0_13 = arith.constant 0 : index
    %22 = vector.load %arg4[%c0_10, %c0_11, %c0_12, %c0_13] : memref<2x4x32x32xf32, #tpu.memory_space<vmem>>, vector<1x4x32x32xf32>
    %23 = vector.shape_cast %22 : vector<1x4x32x32xf32> to vector<4x32x32xf32>
    %24 = vector.extract_strided_slice %23 {offsets = [0, 0, 0], sizes = [1, 32, 32], strides = [1, 1, 1]} : vector<4x32x32xf32> to vector<1x32x32xf32>
    %25 = vector.shape_cast %24 : vector<1x32x32xf32> to vector<32x32xf32>
    %26 = vector.extract_strided_slice %23 {offsets = [1, 0, 0], sizes = [1, 32, 32], strides = [1, 1, 1]} : vector<4x32x32xf32> to vector<1x32x32xf32>
    %27 = vector.shape_cast %26 : vector<1x32x32xf32> to vector<32x32xf32>
    %28 = vector.extract_strided_slice %23 {offsets = [2, 0, 0], sizes = [1, 32, 32], strides = [1, 1, 1]} : vector<4x32x32xf32> to vector<1x32x32xf32>
    %29 = vector.shape_cast %28 : vector<1x32x32xf32> to vector<32x32xf32>
    %30 = vector.extract_strided_slice %23 {offsets = [3, 0, 0], sizes = [1, 32, 32], strides = [1, 1, 1]} : vector<4x32x32xf32> to vector<1x32x32xf32>
    %31 = vector.shape_cast %30 : vector<1x32x32xf32> to vector<32x32xf32>
    %c0_14 = arith.constant 0 : index
    %c0_15 = arith.constant 0 : index
    %c0_16 = arith.constant 0 : index
    %32 = vector.load %arg5[%c0_14, %c0_15, %c0_16] : memref<2x32x128xf32, #tpu.memory_space<vmem>>, vector<1x32x128xf32>
    %33 = vector.shape_cast %32 : vector<1x32x128xf32> to vector<32x128xf32>
    %c0_17 = arith.constant 0 : index
    %c0_18 = arith.constant 0 : index
    %c0_19 = arith.constant 0 : index
    %34 = vector.load %arg8[%c0_17, %c0_18, %c0_19] : memref<2x1x128xf32, #tpu.memory_space<vmem>>, vector<1x1x128xf32>
    %35 = vector.shape_cast %34 : vector<1x1x128xf32> to vector<1x128xf32>
    %c0_20 = arith.constant 0 : index
    %c0_21 = arith.constant 0 : index
    %c0_22 = arith.constant 0 : index
    %36 = vector.load %arg6[%c0_20, %c0_21, %c0_22] : memref<2x128x32xf32, #tpu.memory_space<vmem>>, vector<1x128x32xf32>
    %37 = vector.shape_cast %36 : vector<1x128x32xf32> to vector<128x32xf32>
    %cst_23 = arith.constant dense<0.000000e+00> : vector<24xf32>
    %38 = vector.multi_reduction <add>, %10, %cst_23 [1] : vector<24x32xf32> to vector<24xf32>
    %39 = vector.shape_cast %38 : vector<24xf32> to vector<24x1xf32>
    %cst_24 = arith.constant 3.200000e+01 : f32
    %40 = vector.broadcast %cst_24 : f32 to vector<24x1xf32>
    %41 = arith.divf %39, %40 : vector<24x1xf32>
    %42 = vector.broadcast %41 : vector<24x1xf32> to vector<24x32xf32>
    %43 = arith.subf %10, %42 : vector<24x32xf32>
    %44 = arith.mulf %43, %43 : vector<24x32xf32>
    %cst_25 = arith.constant dense<0.000000e+00> : vector<24xf32>
    %45 = vector.multi_reduction <add>, %44, %cst_25 [1] : vector<24x32xf32> to vector<24xf32>
    %46 = vector.shape_cast %45 : vector<24xf32> to vector<24x1xf32>
    %cst_26 = arith.constant 3.200000e+01 : f32
    %47 = vector.broadcast %cst_26 : f32 to vector<24x1xf32>
    %48 = arith.divf %46, %47 : vector<24x1xf32>
    %49 = vector.broadcast %41 : vector<24x1xf32> to vector<24x32xf32>
    %50 = arith.subf %10, %49 : vector<24x32xf32>
    %cst_27 = arith.constant 9.99999996E-13 : f32
    %51 = vector.broadcast %cst_27 : f32 to vector<24x1xf32>
    %52 = arith.addf %48, %51 : vector<24x1xf32>
    %53 = math.rsqrt %52 : vector<24x1xf32>
    %54 = vector.broadcast %53 : vector<24x1xf32> to vector<24x32xf32>
    %55 = arith.mulf %50, %54 : vector<24x32xf32>
    %56 = vector.broadcast %13 : vector<1x32xf32> to vector<24x32xf32>
    %57 = arith.mulf %55, %56 : vector<24x32xf32>
    %58 = vector.broadcast %14 : vector<1x32xf32> to vector<24x32xf32>
    %59 = arith.addf %57, %58 : vector<24x32xf32>
    %cst_28 = arith.constant dense<0.000000e+00> : vector<24x32xf32>
    %60 = tpu.matmul %59, %25, %cst_28 {dimension_numbers = #tpu.dot_dimension_numbers<[1], [0], [0], [1], [0, 0, 1, 1], [], []>} : vector<24x32xf32>, vector<32x32xf32>, vector<24x32xf32> -> vector<24x32xf32>
    %61 = vector.broadcast %15 : vector<1x32xf32> to vector<24x32xf32>
    %62 = arith.addf %60, %61 : vector<24x32xf32>
    %cst_29 = arith.constant dense<0.000000e+00> : vector<24x32xf32>
    %63 = tpu.matmul %59, %27, %cst_29 {dimension_numbers = #tpu.dot_dimension_numbers<[1], [0], [0], [1], [0, 0, 1, 1], [], []>} : vector<24x32xf32>, vector<32x32xf32>, vector<24x32xf32> -> vector<24x32xf32>
    %64 = vector.broadcast %16 : vector<1x32xf32> to vector<24x32xf32>
    %65 = arith.addf %63, %64 : vector<24x32xf32>
    %cst_30 = arith.constant dense<0.000000e+00> : vector<24x32xf32>
    %66 = tpu.matmul %59, %29, %cst_30 {dimension_numbers = #tpu.dot_dimension_numbers<[1], [0], [0], [1], [0, 0, 1, 1], [], []>} : vector<24x32xf32>, vector<32x32xf32>, vector<24x32xf32> -> vector<24x32xf32>
    %67 = vector.broadcast %17 : vector<1x32xf32> to vector<24x32xf32>
    %68 = arith.addf %66, %67 : vector<24x32xf32>
    %69 = vector.extract_strided_slice %62 {offsets = [0, 0], sizes = [12, 8], strides = [1, 1]} : vector<24x32xf32> to vector<12x8xf32>
    %70 = vector.extract_strided_slice %62 {offsets = [0, 8], sizes = [12, 8], strides = [1, 1]} : vector<24x32xf32> to vector<12x8xf32>
    %71 = vector.extract_strided_slice %62 {offsets = [0, 16], sizes = [12, 8], strides = [1, 1]} : vector<24x32xf32> to vector<12x8xf32>
    %72 = vector.extract_strided_slice %62 {offsets = [0, 24], sizes = [12, 8], strides = [1, 1]} : vector<24x32xf32> to vector<12x8xf32>
    %73 = vector.extract_strided_slice %62 {offsets = [12, 0], sizes = [12, 8], strides = [1, 1]} : vector<24x32xf32> to vector<12x8xf32>
    %74 = vector.extract_strided_slice %62 {offsets = [12, 8], sizes = [12, 8], strides = [1, 1]} : vector<24x32xf32> to vector<12x8xf32>
    %75 = vector.extract_strided_slice %62 {offsets = [12, 16], sizes = [12, 8], strides = [1, 1]} : vector<24x32xf32> to vector<12x8xf32>
    %76 = vector.extract_strided_slice %62 {offsets = [12, 24], sizes = [12, 8], strides = [1, 1]} : vector<24x32xf32> to vector<12x8xf32>
    %77 = vector.shape_cast %69 : vector<12x8xf32> to vector<1x12x8xf32>
    %78 = vector.shape_cast %70 : vector<12x8xf32> to vector<1x12x8xf32>
    %79 = vector.shape_cast %71 : vector<12x8xf32> to vector<1x12x8xf32>
    %80 = vector.shape_cast %72 : vector<12x8xf32> to vector<1x12x8xf32>
    %81 = vector.shape_cast %73 : vector<12x8xf32> to vector<1x12x8xf32>
    %82 = vector.shape_cast %74 : vector<12x8xf32> to vector<1x12x8xf32>
    %83 = vector.shape_cast %75 : vector<12x8xf32> to vector<1x12x8xf32>
    %84 = vector.shape_cast %76 : vector<12x8xf32> to vector<1x12x8xf32>
    %85 = tpu.concatenate %77, %78, %79, %80, %81, %82, %83, %84 in 0 : vector<1x12x8xf32>, vector<1x12x8xf32>, vector<1x12x8xf32>, vector<1x12x8xf32>, vector<1x12x8xf32>, vector<1x12x8xf32>, vector<1x12x8xf32>, vector<1x12x8xf32> -> vector<8x12x8xf32>
    %86 = vector.extract_strided_slice %65 {offsets = [0, 0], sizes = [12, 8], strides = [1, 1]} : vector<24x32xf32> to vector<12x8xf32>
    %87 = vector.extract_strided_slice %65 {offsets = [0, 8], sizes = [12, 8], strides = [1, 1]} : vector<24x32xf32> to vector<12x8xf32>
    %88 = vector.extract_strided_slice %65 {offsets = [0, 16], sizes = [12, 8], strides = [1, 1]} : vector<24x32xf32> to vector<12x8xf32>
    %89 = vector.extract_strided_slice %65 {offsets = [0, 24], sizes = [12, 8], strides = [1, 1]} : vector<24x32xf32> to vector<12x8xf32>
    %90 = vector.extract_strided_slice %65 {offsets = [12, 0], sizes = [12, 8], strides = [1, 1]} : vector<24x32xf32> to vector<12x8xf32>
    %91 = vector.extract_strided_slice %65 {offsets = [12, 8], sizes = [12, 8], strides = [1, 1]} : vector<24x32xf32> to vector<12x8xf32>
    %92 = vector.extract_strided_slice %65 {offsets = [12, 16], sizes = [12, 8], strides = [1, 1]} : vector<24x32xf32> to vector<12x8xf32>
    %93 = vector.extract_strided_slice %65 {offsets = [12, 24], sizes = [12, 8], strides = [1, 1]} : vector<24x32xf32> to vector<12x8xf32>
    %94 = vector.shape_cast %86 : vector<12x8xf32> to vector<1x12x8xf32>
    %95 = vector.shape_cast %87 : vector<12x8xf32> to vector<1x12x8xf32>
    %96 = vector.shape_cast %88 : vector<12x8xf32> to vector<1x12x8xf32>
    %97 = vector.shape_cast %89 : vector<12x8xf32> to vector<1x12x8xf32>
    %98 = vector.shape_cast %90 : vector<12x8xf32> to vector<1x12x8xf32>
    %99 = vector.shape_cast %91 : vector<12x8xf32> to vector<1x12x8xf32>
    %100 = vector.shape_cast %92 : vector<12x8xf32> to vector<1x12x8xf32>
    %101 = vector.shape_cast %93 : vector<12x8xf32> to vector<1x12x8xf32>
    %102 = tpu.concatenate %94, %95, %96, %97, %98, %99, %100, %101 in 0 : vector<1x12x8xf32>, vector<1x12x8xf32>, vector<1x12x8xf32>, vector<1x12x8xf32>, vector<1x12x8xf32>, vector<1x12x8xf32>, vector<1x12x8xf32>, vector<1x12x8xf32> -> vector<8x12x8xf32>
    %103 = vector.extract_strided_slice %68 {offsets = [0, 0], sizes = [12, 8], strides = [1, 1]} : vector<24x32xf32> to vector<12x8xf32>
    %104 = vector.extract_strided_slice %68 {offsets = [0, 8], sizes = [12, 8], strides = [1, 1]} : vector<24x32xf32> to vector<12x8xf32>
    %105 = vector.extract_strided_slice %68 {offsets = [0, 16], sizes = [12, 8], strides = [1, 1]} : vector<24x32xf32> to vector<12x8xf32>
    %106 = vector.extract_strided_slice %68 {offsets = [0, 24], sizes = [12, 8], strides = [1, 1]} : vector<24x32xf32> to vector<12x8xf32>
    %107 = vector.extract_strided_slice %68 {offsets = [12, 0], sizes = [12, 8], strides = [1, 1]} : vector<24x32xf32> to vector<12x8xf32>
    %108 = vector.extract_strided_slice %68 {offsets = [12, 8], sizes = [12, 8], strides = [1, 1]} : vector<24x32xf32> to vector<12x8xf32>
    %109 = vector.extract_strided_slice %68 {offsets = [12, 16], sizes = [12, 8], strides = [1, 1]} : vector<24x32xf32> to vector<12x8xf32>
    %110 = vector.extract_strided_slice %68 {offsets = [12, 24], sizes = [12, 8], strides = [1, 1]} : vector<24x32xf32> to vector<12x8xf32>
    %111 = vector.shape_cast %103 : vector<12x8xf32> to vector<1x12x8xf32>
    %112 = vector.shape_cast %104 : vector<12x8xf32> to vector<1x12x8xf32>
    %113 = vector.shape_cast %105 : vector<12x8xf32> to vector<1x12x8xf32>
    %114 = vector.shape_cast %106 : vector<12x8xf32> to vector<1x12x8xf32>
    %115 = vector.shape_cast %107 : vector<12x8xf32> to vector<1x12x8xf32>
    %116 = vector.shape_cast %108 : vector<12x8xf32> to vector<1x12x8xf32>
    %117 = vector.shape_cast %109 : vector<12x8xf32> to vector<1x12x8xf32>
    %118 = vector.shape_cast %110 : vector<12x8xf32> to vector<1x12x8xf32>
    %119 = tpu.concatenate %111, %112, %113, %114, %115, %116, %117, %118 in 0 : vector<1x12x8xf32>, vector<1x12x8xf32>, vector<1x12x8xf32>, vector<1x12x8xf32>, vector<1x12x8xf32>, vector<1x12x8xf32>, vector<1x12x8xf32>, vector<1x12x8xf32> -> vector<8x12x8xf32>
    "tpu.trace_start"() <{level = 10 : i32, message = "nqd,nkd->nqk"}> : () -> ()
    %cst_31 = arith.constant dense<0.000000e+00> : vector<8x12x12xf32>
    %120 = tpu.matmul %85, %102, %cst_31 {dimension_numbers = #tpu.dot_dimension_numbers<[2], [2], [1], [1], [0, 0, 0, 1, 1, 1], [0], [0]>} : vector<8x12x8xf32>, vector<8x12x8xf32>, vector<8x12x12xf32> -> vector<8x12x12xf32>
    "tpu.trace_stop"() : () -> ()
    %cst_32 = arith.constant 0.353553385 : f32
    %121 = vector.broadcast %cst_32 : f32 to vector<8x12x12xf32>
    %122 = arith.mulf %120, %121 : vector<8x12x12xf32>
    %cst_33 = arith.constant dense<0xFF800000> : vector<8x12xf32>
    %123 = vector.multi_reduction <maximumf>, %122, %cst_33 [2] : vector<8x12x12xf32> to vector<8x12xf32>
    %124 = vector.shape_cast %123 : vector<8x12xf32> to vector<8x12x1xf32>
    %125 = vector.broadcast %124 : vector<8x12x1xf32> to vector<8x12x12xf32>
    %126 = arith.subf %122, %125 : vector<8x12x12xf32>
    %127 = math.exp %126 : vector<8x12x12xf32>
    %cst_34 = arith.constant dense<0.000000e+00> : vector<8x12xf32>
    %128 = vector.multi_reduction <add>, %127, %cst_34 [2] : vector<8x12x12xf32> to vector<8x12xf32>
    %129 = vector.shape_cast %128 : vector<8x12xf32> to vector<8x12x1xf32>
    %130 = tpu.reciprocal %129 {approx = true} : vector<8x12x1xf32> -> vector<8x12x1xf32>
    %131 = vector.broadcast %130 : vector<8x12x1xf32> to vector<8x12x12xf32>
    %132 = arith.mulf %127, %131 : vector<8x12x12xf32>
    "tpu.trace_start"() <{level = 10 : i32, message = "nqk,nkd->nqd"}> : () -> ()
    %cst_35 = arith.constant dense<0.000000e+00> : vector<8x12x8xf32>
    %133 = tpu.matmul %132, %119, %cst_35 {dimension_numbers = #tpu.dot_dimension_numbers<[2], [1], [1], [2], [0, 0, 0, 1, 1, 2], [0], [0]>} : vector<8x12x12xf32>, vector<8x12x8xf32>, vector<8x12x8xf32> -> vector<8x12x8xf32>
    "tpu.trace_stop"() : () -> ()
    %134 = vector.extract_strided_slice %133 {offsets = [0, 0, 0], sizes = [1, 12, 8], strides = [1, 1, 1]} : vector<8x12x8xf32> to vector<1x12x8xf32>
    %135 = vector.shape_cast %134 : vector<1x12x8xf32> to vector<12x8xf32>
    %136 = vector.extract_strided_slice %133 {offsets = [1, 0, 0], sizes = [1, 12, 8], strides = [1, 1, 1]} : vector<8x12x8xf32> to vector<1x12x8xf32>
    %137 = vector.shape_cast %136 : vector<1x12x8xf32> to vector<12x8xf32>
    %138 = vector.extract_strided_slice %133 {offsets = [2, 0, 0], sizes = [1, 12, 8], strides = [1, 1, 1]} : vector<8x12x8xf32> to vector<1x12x8xf32>
    %139 = vector.shape_cast %138 : vector<1x12x8xf32> to vector<12x8xf32>
    %140 = vector.extract_strided_slice %133 {offsets = [3, 0, 0], sizes = [1, 12, 8], strides = [1, 1, 1]} : vector<8x12x8xf32> to vector<1x12x8xf32>
    %141 = vector.shape_cast %140 : vector<1x12x8xf32> to vector<12x8xf32>
    %142 = tpu.concatenate %135, %137, %139, %141 in 1 : vector<12x8xf32>, vector<12x8xf32>, vector<12x8xf32>, vector<12x8xf32> -> vector<12x32xf32>
    %143 = vector.extract_strided_slice %133 {offsets = [4, 0, 0], sizes = [1, 12, 8], strides = [1, 1, 1]} : vector<8x12x8xf32> to vector<1x12x8xf32>
    %144 = vector.shape_cast %143 : vector<1x12x8xf32> to vector<12x8xf32>
    %145 = vector.extract_strided_slice %133 {offsets = [5, 0, 0], sizes = [1, 12, 8], strides = [1, 1, 1]} : vector<8x12x8xf32> to vector<1x12x8xf32>
    %146 = vector.shape_cast %145 : vector<1x12x8xf32> to vector<12x8xf32>
    %147 = vector.extract_strided_slice %133 {offsets = [6, 0, 0], sizes = [1, 12, 8], strides = [1, 1, 1]} : vector<8x12x8xf32> to vector<1x12x8xf32>
    %148 = vector.shape_cast %147 : vector<1x12x8xf32> to vector<12x8xf32>
    %149 = vector.extract_strided_slice %133 {offsets = [7, 0, 0], sizes = [1, 12, 8], strides = [1, 1, 1]} : vector<8x12x8xf32> to vector<1x12x8xf32>
    %150 = vector.shape_cast %149 : vector<1x12x8xf32> to vector<12x8xf32>
    %151 = tpu.concatenate %144, %146, %148, %150 in 1 : vector<12x8xf32>, vector<12x8xf32>, vector<12x8xf32>, vector<12x8xf32> -> vector<12x32xf32>
    %152 = tpu.concatenate %142, %151 in 0 : vector<12x32xf32>, vector<12x32xf32> -> vector<24x32xf32>
    %cst_36 = arith.constant dense<0.000000e+00> : vector<24x32xf32>
    %153 = tpu.matmul %152, %31, %cst_36 {dimension_numbers = #tpu.dot_dimension_numbers<[1], [0], [0], [1], [0, 0, 1, 1], [], []>} : vector<24x32xf32>, vector<32x32xf32>, vector<24x32xf32> -> vector<24x32xf32>
    %154 = arith.addf %10, %153 : vector<24x32xf32>
    %155 = vector.broadcast %18 : vector<1x32xf32> to vector<24x32xf32>
    %156 = arith.addf %154, %155 : vector<24x32xf32>
    %cst_37 = arith.constant dense<0.000000e+00> : vector<24xf32>
    %157 = vector.multi_reduction <add>, %156, %cst_37 [1] : vector<24x32xf32> to vector<24xf32>
    %158 = vector.shape_cast %157 : vector<24xf32> to vector<24x1xf32>
    %cst_38 = arith.constant 3.200000e+01 : f32
    %159 = vector.broadcast %cst_38 : f32 to vector<24x1xf32>
    %160 = arith.divf %158, %159 : vector<24x1xf32>
    %161 = vector.broadcast %160 : vector<24x1xf32> to vector<24x32xf32>
    %162 = arith.subf %156, %161 : vector<24x32xf32>
    %163 = arith.mulf %162, %162 : vector<24x32xf32>
    %cst_39 = arith.constant dense<0.000000e+00> : vector<24xf32>
    %164 = vector.multi_reduction <add>, %163, %cst_39 [1] : vector<24x32xf32> to vector<24xf32>
    %165 = vector.shape_cast %164 : vector<24xf32> to vector<24x1xf32>
    %cst_40 = arith.constant 3.200000e+01 : f32
    %166 = vector.broadcast %cst_40 : f32 to vector<24x1xf32>
    %167 = arith.divf %165, %166 : vector<24x1xf32>
    %168 = vector.broadcast %160 : vector<24x1xf32> to vector<24x32xf32>
    %169 = arith.subf %156, %168 : vector<24x32xf32>
    %cst_41 = arith.constant 9.99999996E-13 : f32
    %170 = vector.broadcast %cst_41 : f32 to vector<24x1xf32>
    %171 = arith.addf %167, %170 : vector<24x1xf32>
    %172 = math.rsqrt %171 : vector<24x1xf32>
    %173 = vector.broadcast %172 : vector<24x1xf32> to vector<24x32xf32>
    %174 = arith.mulf %169, %173 : vector<24x32xf32>
    %175 = vector.broadcast %19 : vector<1x32xf32> to vector<24x32xf32>
    %176 = arith.mulf %174, %175 : vector<24x32xf32>
    %177 = vector.broadcast %20 : vector<1x32xf32> to vector<24x32xf32>
    %178 = arith.addf %176, %177 : vector<24x32xf32>
    %cst_42 = arith.constant dense<0.000000e+00> : vector<24x128xf32>
    %179 = tpu.matmul %178, %33, %cst_42 {dimension_numbers = #tpu.dot_dimension_numbers<[1], [0], [0], [1], [0, 0, 1, 1], [], []>} : vector<24x32xf32>, vector<32x128xf32>, vector<24x128xf32> -> vector<24x128xf32>
    %180 = vector.broadcast %35 : vector<1x128xf32> to vector<24x128xf32>
    %181 = arith.addf %179, %180 : vector<24x128xf32>
    %182 = arith.mulf %181, %181 : vector<24x128xf32>
    %183 = arith.mulf %181, %182 : vector<24x128xf32>
    %cst_43 = arith.constant 4.471500e-02 : f32
    %184 = vector.broadcast %cst_43 : f32 to vector<24x128xf32>
    %185 = arith.mulf %184, %183 : vector<24x128xf32>
    %186 = arith.addf %181, %185 : vector<24x128xf32>
    %cst_44 = arith.constant 0.797884583 : f32
    %187 = vector.broadcast %cst_44 : f32 to vector<24x128xf32>
    %188 = arith.mulf %187, %186 : vector<24x128xf32>
    %189 = math.tanh %188 : vector<24x128xf32>
    %cst_45 = arith.constant 1.000000e+00 : f32
    %190 = vector.broadcast %cst_45 : f32 to vector<24x128xf32>
    %191 = arith.addf %190, %189 : vector<24x128xf32>
    %cst_46 = arith.constant 5.000000e-01 : f32
    %192 = vector.broadcast %cst_46 : f32 to vector<24x128xf32>
    %193 = arith.mulf %192, %191 : vector<24x128xf32>
    %194 = arith.mulf %181, %193 : vector<24x128xf32>
    %cst_47 = arith.constant dense<0.000000e+00> : vector<24x32xf32>
    %195 = tpu.matmul %194, %37, %cst_47 {dimension_numbers = #tpu.dot_dimension_numbers<[1], [0], [0], [1], [0, 0, 1, 1], [], []>} : vector<24x128xf32>, vector<128x32xf32>, vector<24x32xf32> -> vector<24x32xf32>
    %196 = arith.addf %156, %195 : vector<24x32xf32>
    %197 = vector.broadcast %21 : vector<1x32xf32> to vector<24x32xf32>
    %198 = arith.addf %196, %197 : vector<24x32xf32>
    %c1 = arith.constant 1 : index
    %c0_48 = arith.constant 0 : index
    %c0_49 = arith.constant 0 : index
    %199 = vector.load %arg7[%c1, %c0_48, %c0_49] : memref<2x16x32xf32, #tpu.memory_space<vmem>>, vector<1x16x32xf32>
    %200 = vector.shape_cast %199 : vector<1x16x32xf32> to vector<16x32xf32>
    %201 = vector.extract_strided_slice %200 {offsets = [0, 0], sizes = [1, 32], strides = [1, 1]} : vector<16x32xf32> to vector<1x32xf32>
    %202 = vector.extract_strided_slice %200 {offsets = [1, 0], sizes = [1, 32], strides = [1, 1]} : vector<16x32xf32> to vector<1x32xf32>
    %203 = vector.extract_strided_slice %200 {offsets = [2, 0], sizes = [1, 32], strides = [1, 1]} : vector<16x32xf32> to vector<1x32xf32>
    %204 = vector.extract_strided_slice %200 {offsets = [3, 0], sizes = [1, 32], strides = [1, 1]} : vector<16x32xf32> to vector<1x32xf32>
    %205 = vector.extract_strided_slice %200 {offsets = [4, 0], sizes = [1, 32], strides = [1, 1]} : vector<16x32xf32> to vector<1x32xf32>
    %206 = vector.extract_strided_slice %200 {offsets = [5, 0], sizes = [1, 32], strides = [1, 1]} : vector<16x32xf32> to vector<1x32xf32>
    %207 = vector.extract_strided_slice %200 {offsets = [6, 0], sizes = [1, 32], strides = [1, 1]} : vector<16x32xf32> to vector<1x32xf32>
    %208 = vector.extract_strided_slice %200 {offsets = [7, 0], sizes = [1, 32], strides = [1, 1]} : vector<16x32xf32> to vector<1x32xf32>
    %209 = vector.extract_strided_slice %200 {offsets = [8, 0], sizes = [1, 32], strides = [1, 1]} : vector<16x32xf32> to vector<1x32xf32>
    %c1_50 = arith.constant 1 : index
    %c0_51 = arith.constant 0 : index
    %c0_52 = arith.constant 0 : index
    %c0_53 = arith.constant 0 : index
    %210 = vector.load %arg4[%c1_50, %c0_51, %c0_52, %c0_53] : memref<2x4x32x32xf32, #tpu.memory_space<vmem>>, vector<1x4x32x32xf32>
    %211 = vector.shape_cast %210 : vector<1x4x32x32xf32> to vector<4x32x32xf32>
    %212 = vector.extract_strided_slice %211 {offsets = [0, 0, 0], sizes = [1, 32, 32], strides = [1, 1, 1]} : vector<4x32x32xf32> to vector<1x32x32xf32>
    %213 = vector.shape_cast %212 : vector<1x32x32xf32> to vector<32x32xf32>
    %214 = vector.extract_strided_slice %211 {offsets = [1, 0, 0], sizes = [1, 32, 32], strides = [1, 1, 1]} : vector<4x32x32xf32> to vector<1x32x32xf32>
    %215 = vector.shape_cast %214 : vector<1x32x32xf32> to vector<32x32xf32>
    %216 = vector.extract_strided_slice %211 {offsets = [2, 0, 0], sizes = [1, 32, 32], strides = [1, 1, 1]} : vector<4x32x32xf32> to vector<1x32x32xf32>
    %217 = vector.shape_cast %216 : vector<1x32x32xf32> to vector<32x32xf32>
    %218 = vector.extract_strided_slice %211 {offsets = [3, 0, 0], sizes = [1, 32, 32], strides = [1, 1, 1]} : vector<4x32x32xf32> to vector<1x32x32xf32>
    %219 = vector.shape_cast %218 : vector<1x32x32xf32> to vector<32x32xf32>
    %c1_54 = arith.constant 1 : index
    %c0_55 = arith.constant 0 : index
    %c0_56 = arith.constant 0 : index
    %220 = vector.load %arg5[%c1_54, %c0_55, %c0_56] : memref<2x32x128xf32, #tpu.memory_space<vmem>>, vector<1x32x128xf32>
    %221 = vector.shape_cast %220 : vector<1x32x128xf32> to vector<32x128xf32>
    %c1_57 = arith.constant 1 : index
    %c0_58 = arith.constant 0 : index
    %c0_59 = arith.constant 0 : index
    %222 = vector.load %arg8[%c1_57, %c0_58, %c0_59] : memref<2x1x128xf32, #tpu.memory_space<vmem>>, vector<1x1x128xf32>
    %223 = vector.shape_cast %222 : vector<1x1x128xf32> to vector<1x128xf32>
    %c1_60 = arith.constant 1 : index
    %c0_61 = arith.constant 0 : index
    %c0_62 = arith.constant 0 : index
    %224 = vector.load %arg6[%c1_60, %c0_61, %c0_62] : memref<2x128x32xf32, #tpu.memory_space<vmem>>, vector<1x128x32xf32>
    %225 = vector.shape_cast %224 : vector<1x128x32xf32> to vector<128x32xf32>
    %cst_63 = arith.constant dense<0.000000e+00> : vector<24xf32>
    %226 = vector.multi_reduction <add>, %198, %cst_63 [1] : vector<24x32xf32> to vector<24xf32>
    %227 = vector.shape_cast %226 : vector<24xf32> to vector<24x1xf32>
    %cst_64 = arith.constant 3.200000e+01 : f32
    %228 = vector.broadcast %cst_64 : f32 to vector<24x1xf32>
    %229 = arith.divf %227, %228 : vector<24x1xf32>
    %230 = vector.broadcast %229 : vector<24x1xf32> to vector<24x32xf32>
    %231 = arith.subf %198, %230 : vector<24x32xf32>
    %232 = arith.mulf %231, %231 : vector<24x32xf32>
    %cst_65 = arith.constant dense<0.000000e+00> : vector<24xf32>
    %233 = vector.multi_reduction <add>, %232, %cst_65 [1] : vector<24x32xf32> to vector<24xf32>
    %234 = vector.shape_cast %233 : vector<24xf32> to vector<24x1xf32>
    %cst_66 = arith.constant 3.200000e+01 : f32
    %235 = vector.broadcast %cst_66 : f32 to vector<24x1xf32>
    %236 = arith.divf %234, %235 : vector<24x1xf32>
    %237 = vector.broadcast %229 : vector<24x1xf32> to vector<24x32xf32>
    %238 = arith.subf %198, %237 : vector<24x32xf32>
    %cst_67 = arith.constant 9.99999996E-13 : f32
    %239 = vector.broadcast %cst_67 : f32 to vector<24x1xf32>
    %240 = arith.addf %236, %239 : vector<24x1xf32>
    %241 = math.rsqrt %240 : vector<24x1xf32>
    %242 = vector.broadcast %241 : vector<24x1xf32> to vector<24x32xf32>
    %243 = arith.mulf %238, %242 : vector<24x32xf32>
    %244 = vector.broadcast %201 : vector<1x32xf32> to vector<24x32xf32>
    %245 = arith.mulf %243, %244 : vector<24x32xf32>
    %246 = vector.broadcast %202 : vector<1x32xf32> to vector<24x32xf32>
    %247 = arith.addf %245, %246 : vector<24x32xf32>
    %cst_68 = arith.constant dense<0.000000e+00> : vector<24x32xf32>
    %248 = tpu.matmul %247, %213, %cst_68 {dimension_numbers = #tpu.dot_dimension_numbers<[1], [0], [0], [1], [0, 0, 1, 1], [], []>} : vector<24x32xf32>, vector<32x32xf32>, vector<24x32xf32> -> vector<24x32xf32>
    %249 = vector.broadcast %203 : vector<1x32xf32> to vector<24x32xf32>
    %250 = arith.addf %248, %249 : vector<24x32xf32>
    %cst_69 = arith.constant dense<0.000000e+00> : vector<24x32xf32>
    %251 = tpu.matmul %247, %215, %cst_69 {dimension_numbers = #tpu.dot_dimension_numbers<[1], [0], [0], [1], [0, 0, 1, 1], [], []>} : vector<24x32xf32>, vector<32x32xf32>, vector<24x32xf32> -> vector<24x32xf32>
    %252 = vector.broadcast %204 : vector<1x32xf32> to vector<24x32xf32>
    %253 = arith.addf %251, %252 : vector<24x32xf32>
    %cst_70 = arith.constant dense<0.000000e+00> : vector<24x32xf32>
    %254 = tpu.matmul %247, %217, %cst_70 {dimension_numbers = #tpu.dot_dimension_numbers<[1], [0], [0], [1], [0, 0, 1, 1], [], []>} : vector<24x32xf32>, vector<32x32xf32>, vector<24x32xf32> -> vector<24x32xf32>
    %255 = vector.broadcast %205 : vector<1x32xf32> to vector<24x32xf32>
    %256 = arith.addf %254, %255 : vector<24x32xf32>
    %257 = vector.extract_strided_slice %250 {offsets = [0, 0], sizes = [12, 8], strides = [1, 1]} : vector<24x32xf32> to vector<12x8xf32>
    %258 = vector.extract_strided_slice %250 {offsets = [0, 8], sizes = [12, 8], strides = [1, 1]} : vector<24x32xf32> to vector<12x8xf32>
    %259 = vector.extract_strided_slice %250 {offsets = [0, 16], sizes = [12, 8], strides = [1, 1]} : vector<24x32xf32> to vector<12x8xf32>
    %260 = vector.extract_strided_slice %250 {offsets = [0, 24], sizes = [12, 8], strides = [1, 1]} : vector<24x32xf32> to vector<12x8xf32>
    %261 = vector.extract_strided_slice %250 {offsets = [12, 0], sizes = [12, 8], strides = [1, 1]} : vector<24x32xf32> to vector<12x8xf32>
    %262 = vector.extract_strided_slice %250 {offsets = [12, 8], sizes = [12, 8], strides = [1, 1]} : vector<24x32xf32> to vector<12x8xf32>
    %263 = vector.extract_strided_slice %250 {offsets = [12, 16], sizes = [12, 8], strides = [1, 1]} : vector<24x32xf32> to vector<12x8xf32>
    %264 = vector.extract_strided_slice %250 {offsets = [12, 24], sizes = [12, 8], strides = [1, 1]} : vector<24x32xf32> to vector<12x8xf32>
    %265 = vector.shape_cast %257 : vector<12x8xf32> to vector<1x12x8xf32>
    %266 = vector.shape_cast %258 : vector<12x8xf32> to vector<1x12x8xf32>
    %267 = vector.shape_cast %259 : vector<12x8xf32> to vector<1x12x8xf32>
    %268 = vector.shape_cast %260 : vector<12x8xf32> to vector<1x12x8xf32>
    %269 = vector.shape_cast %261 : vector<12x8xf32> to vector<1x12x8xf32>
    %270 = vector.shape_cast %262 : vector<12x8xf32> to vector<1x12x8xf32>
    %271 = vector.shape_cast %263 : vector<12x8xf32> to vector<1x12x8xf32>
    %272 = vector.shape_cast %264 : vector<12x8xf32> to vector<1x12x8xf32>
    %273 = tpu.concatenate %265, %266, %267, %268, %269, %270, %271, %272 in 0 : vector<1x12x8xf32>, vector<1x12x8xf32>, vector<1x12x8xf32>, vector<1x12x8xf32>, vector<1x12x8xf32>, vector<1x12x8xf32>, vector<1x12x8xf32>, vector<1x12x8xf32> -> vector<8x12x8xf32>
    %274 = vector.extract_strided_slice %253 {offsets = [0, 0], sizes = [12, 8], strides = [1, 1]} : vector<24x32xf32> to vector<12x8xf32>
    %275 = vector.extract_strided_slice %253 {offsets = [0, 8], sizes = [12, 8], strides = [1, 1]} : vector<24x32xf32> to vector<12x8xf32>
    %276 = vector.extract_strided_slice %253 {offsets = [0, 16], sizes = [12, 8], strides = [1, 1]} : vector<24x32xf32> to vector<12x8xf32>
    %277 = vector.extract_strided_slice %253 {offsets = [0, 24], sizes = [12, 8], strides = [1, 1]} : vector<24x32xf32> to vector<12x8xf32>
    %278 = vector.extract_strided_slice %253 {offsets = [12, 0], sizes = [12, 8], strides = [1, 1]} : vector<24x32xf32> to vector<12x8xf32>
    %279 = vector.extract_strided_slice %253 {offsets = [12, 8], sizes = [12, 8], strides = [1, 1]} : vector<24x32xf32> to vector<12x8xf32>
    %280 = vector.extract_strided_slice %253 {offsets = [12, 16], sizes = [12, 8], strides = [1, 1]} : vector<24x32xf32> to vector<12x8xf32>
    %281 = vector.extract_strided_slice %253 {offsets = [12, 24], sizes = [12, 8], strides = [1, 1]} : vector<24x32xf32> to vector<12x8xf32>
    %282 = vector.shape_cast %274 : vector<12x8xf32> to vector<1x12x8xf32>
    %283 = vector.shape_cast %275 : vector<12x8xf32> to vector<1x12x8xf32>
    %284 = vector.shape_cast %276 : vector<12x8xf32> to vector<1x12x8xf32>
    %285 = vector.shape_cast %277 : vector<12x8xf32> to vector<1x12x8xf32>
    %286 = vector.shape_cast %278 : vector<12x8xf32> to vector<1x12x8xf32>
    %287 = vector.shape_cast %279 : vector<12x8xf32> to vector<1x12x8xf32>
    %288 = vector.shape_cast %280 : vector<12x8xf32> to vector<1x12x8xf32>
    %289 = vector.shape_cast %281 : vector<12x8xf32> to vector<1x12x8xf32>
    %290 = tpu.concatenate %282, %283, %284, %285, %286, %287, %288, %289 in 0 : vector<1x12x8xf32>, vector<1x12x8xf32>, vector<1x12x8xf32>, vector<1x12x8xf32>, vector<1x12x8xf32>, vector<1x12x8xf32>, vector<1x12x8xf32>, vector<1x12x8xf32> -> vector<8x12x8xf32>
    %291 = vector.extract_strided_slice %256 {offsets = [0, 0], sizes = [12, 8], strides = [1, 1]} : vector<24x32xf32> to vector<12x8xf32>
    %292 = vector.extract_strided_slice %256 {offsets = [0, 8], sizes = [12, 8], strides = [1, 1]} : vector<24x32xf32> to vector<12x8xf32>
    %293 = vector.extract_strided_slice %256 {offsets = [0, 16], sizes = [12, 8], strides = [1, 1]} : vector<24x32xf32> to vector<12x8xf32>
    %294 = vector.extract_strided_slice %256 {offsets = [0, 24], sizes = [12, 8], strides = [1, 1]} : vector<24x32xf32> to vector<12x8xf32>
    %295 = vector.extract_strided_slice %256 {offsets = [12, 0], sizes = [12, 8], strides = [1, 1]} : vector<24x32xf32> to vector<12x8xf32>
    %296 = vector.extract_strided_slice %256 {offsets = [12, 8], sizes = [12, 8], strides = [1, 1]} : vector<24x32xf32> to vector<12x8xf32>
    %297 = vector.extract_strided_slice %256 {offsets = [12, 16], sizes = [12, 8], strides = [1, 1]} : vector<24x32xf32> to vector<12x8xf32>
    %298 = vector.extract_strided_slice %256 {offsets = [12, 24], sizes = [12, 8], strides = [1, 1]} : vector<24x32xf32> to vector<12x8xf32>
    %299 = vector.shape_cast %291 : vector<12x8xf32> to vector<1x12x8xf32>
    %300 = vector.shape_cast %292 : vector<12x8xf32> to vector<1x12x8xf32>
    %301 = vector.shape_cast %293 : vector<12x8xf32> to vector<1x12x8xf32>
    %302 = vector.shape_cast %294 : vector<12x8xf32> to vector<1x12x8xf32>
    %303 = vector.shape_cast %295 : vector<12x8xf32> to vector<1x12x8xf32>
    %304 = vector.shape_cast %296 : vector<12x8xf32> to vector<1x12x8xf32>
    %305 = vector.shape_cast %297 : vector<12x8xf32> to vector<1x12x8xf32>
    %306 = vector.shape_cast %298 : vector<12x8xf32> to vector<1x12x8xf32>
    %307 = tpu.concatenate %299, %300, %301, %302, %303, %304, %305, %306 in 0 : vector<1x12x8xf32>, vector<1x12x8xf32>, vector<1x12x8xf32>, vector<1x12x8xf32>, vector<1x12x8xf32>, vector<1x12x8xf32>, vector<1x12x8xf32>, vector<1x12x8xf32> -> vector<8x12x8xf32>
    "tpu.trace_start"() <{level = 10 : i32, message = "nqd,nkd->nqk"}> : () -> ()
    %cst_71 = arith.constant dense<0.000000e+00> : vector<8x12x12xf32>
    %308 = tpu.matmul %273, %290, %cst_71 {dimension_numbers = #tpu.dot_dimension_numbers<[2], [2], [1], [1], [0, 0, 0, 1, 1, 1], [0], [0]>} : vector<8x12x8xf32>, vector<8x12x8xf32>, vector<8x12x12xf32> -> vector<8x12x12xf32>
    "tpu.trace_stop"() : () -> ()
    %cst_72 = arith.constant 0.353553385 : f32
    %309 = vector.broadcast %cst_72 : f32 to vector<8x12x12xf32>
    %310 = arith.mulf %308, %309 : vector<8x12x12xf32>
    %cst_73 = arith.constant dense<0xFF800000> : vector<8x12xf32>
    %311 = vector.multi_reduction <maximumf>, %310, %cst_73 [2] : vector<8x12x12xf32> to vector<8x12xf32>
    %312 = vector.shape_cast %311 : vector<8x12xf32> to vector<8x12x1xf32>
    %313 = vector.broadcast %312 : vector<8x12x1xf32> to vector<8x12x12xf32>
    %314 = arith.subf %310, %313 : vector<8x12x12xf32>
    %315 = math.exp %314 : vector<8x12x12xf32>
    %cst_74 = arith.constant dense<0.000000e+00> : vector<8x12xf32>
    %316 = vector.multi_reduction <add>, %315, %cst_74 [2] : vector<8x12x12xf32> to vector<8x12xf32>
    %317 = vector.shape_cast %316 : vector<8x12xf32> to vector<8x12x1xf32>
    %318 = tpu.reciprocal %317 {approx = true} : vector<8x12x1xf32> -> vector<8x12x1xf32>
    %319 = vector.broadcast %318 : vector<8x12x1xf32> to vector<8x12x12xf32>
    %320 = arith.mulf %315, %319 : vector<8x12x12xf32>
    "tpu.trace_start"() <{level = 10 : i32, message = "nqk,nkd->nqd"}> : () -> ()
    %cst_75 = arith.constant dense<0.000000e+00> : vector<8x12x8xf32>
    %321 = tpu.matmul %320, %307, %cst_75 {dimension_numbers = #tpu.dot_dimension_numbers<[2], [1], [1], [2], [0, 0, 0, 1, 1, 2], [0], [0]>} : vector<8x12x12xf32>, vector<8x12x8xf32>, vector<8x12x8xf32> -> vector<8x12x8xf32>
    "tpu.trace_stop"() : () -> ()
    %322 = vector.extract_strided_slice %321 {offsets = [0, 0, 0], sizes = [1, 12, 8], strides = [1, 1, 1]} : vector<8x12x8xf32> to vector<1x12x8xf32>
    %323 = vector.shape_cast %322 : vector<1x12x8xf32> to vector<12x8xf32>
    %324 = vector.extract_strided_slice %321 {offsets = [1, 0, 0], sizes = [1, 12, 8], strides = [1, 1, 1]} : vector<8x12x8xf32> to vector<1x12x8xf32>
    %325 = vector.shape_cast %324 : vector<1x12x8xf32> to vector<12x8xf32>
    %326 = vector.extract_strided_slice %321 {offsets = [2, 0, 0], sizes = [1, 12, 8], strides = [1, 1, 1]} : vector<8x12x8xf32> to vector<1x12x8xf32>
    %327 = vector.shape_cast %326 : vector<1x12x8xf32> to vector<12x8xf32>
    %328 = vector.extract_strided_slice %321 {offsets = [3, 0, 0], sizes = [1, 12, 8], strides = [1, 1, 1]} : vector<8x12x8xf32> to vector<1x12x8xf32>
    %329 = vector.shape_cast %328 : vector<1x12x8xf32> to vector<12x8xf32>
    %330 = tpu.concatenate %323, %325, %327, %329 in 1 : vector<12x8xf32>, vector<12x8xf32>, vector<12x8xf32>, vector<12x8xf32> -> vector<12x32xf32>
    %331 = vector.extract_strided_slice %321 {offsets = [4, 0, 0], sizes = [1, 12, 8], strides = [1, 1, 1]} : vector<8x12x8xf32> to vector<1x12x8xf32>
    %332 = vector.shape_cast %331 : vector<1x12x8xf32> to vector<12x8xf32>
    %333 = vector.extract_strided_slice %321 {offsets = [5, 0, 0], sizes = [1, 12, 8], strides = [1, 1, 1]} : vector<8x12x8xf32> to vector<1x12x8xf32>
    %334 = vector.shape_cast %333 : vector<1x12x8xf32> to vector<12x8xf32>
    %335 = vector.extract_strided_slice %321 {offsets = [6, 0, 0], sizes = [1, 12, 8], strides = [1, 1, 1]} : vector<8x12x8xf32> to vector<1x12x8xf32>
    %336 = vector.shape_cast %335 : vector<1x12x8xf32> to vector<12x8xf32>
    %337 = vector.extract_strided_slice %321 {offsets = [7, 0, 0], sizes = [1, 12, 8], strides = [1, 1, 1]} : vector<8x12x8xf32> to vector<1x12x8xf32>
    %338 = vector.shape_cast %337 : vector<1x12x8xf32> to vector<12x8xf32>
    %339 = tpu.concatenate %332, %334, %336, %338 in 1 : vector<12x8xf32>, vector<12x8xf32>, vector<12x8xf32>, vector<12x8xf32> -> vector<12x32xf32>
    %340 = tpu.concatenate %330, %339 in 0 : vector<12x32xf32>, vector<12x32xf32> -> vector<24x32xf32>
    %cst_76 = arith.constant dense<0.000000e+00> : vector<24x32xf32>
    %341 = tpu.matmul %340, %219, %cst_76 {dimension_numbers = #tpu.dot_dimension_numbers<[1], [0], [0], [1], [0, 0, 1, 1], [], []>} : vector<24x32xf32>, vector<32x32xf32>, vector<24x32xf32> -> vector<24x32xf32>
    %342 = arith.addf %198, %341 : vector<24x32xf32>
    %343 = vector.broadcast %206 : vector<1x32xf32> to vector<24x32xf32>
    %344 = arith.addf %342, %343 : vector<24x32xf32>
    %cst_77 = arith.constant dense<0.000000e+00> : vector<24xf32>
    %345 = vector.multi_reduction <add>, %344, %cst_77 [1] : vector<24x32xf32> to vector<24xf32>
    %346 = vector.shape_cast %345 : vector<24xf32> to vector<24x1xf32>
    %cst_78 = arith.constant 3.200000e+01 : f32
    %347 = vector.broadcast %cst_78 : f32 to vector<24x1xf32>
    %348 = arith.divf %346, %347 : vector<24x1xf32>
    %349 = vector.broadcast %348 : vector<24x1xf32> to vector<24x32xf32>
    %350 = arith.subf %344, %349 : vector<24x32xf32>
    %351 = arith.mulf %350, %350 : vector<24x32xf32>
    %cst_79 = arith.constant dense<0.000000e+00> : vector<24xf32>
    %352 = vector.multi_reduction <add>, %351, %cst_79 [1] : vector<24x32xf32> to vector<24xf32>
    %353 = vector.shape_cast %352 : vector<24xf32> to vector<24x1xf32>
    %cst_80 = arith.constant 3.200000e+01 : f32
    %354 = vector.broadcast %cst_80 : f32 to vector<24x1xf32>
    %355 = arith.divf %353, %354 : vector<24x1xf32>
    %356 = vector.broadcast %348 : vector<24x1xf32> to vector<24x32xf32>
    %357 = arith.subf %344, %356 : vector<24x32xf32>
    %cst_81 = arith.constant 9.99999996E-13 : f32
    %358 = vector.broadcast %cst_81 : f32 to vector<24x1xf32>
    %359 = arith.addf %355, %358 : vector<24x1xf32>
    %360 = math.rsqrt %359 : vector<24x1xf32>
    %361 = vector.broadcast %360 : vector<24x1xf32> to vector<24x32xf32>
    %362 = arith.mulf %357, %361 : vector<24x32xf32>
    %363 = vector.broadcast %207 : vector<1x32xf32> to vector<24x32xf32>
    %364 = arith.mulf %362, %363 : vector<24x32xf32>
    %365 = vector.broadcast %208 : vector<1x32xf32> to vector<24x32xf32>
    %366 = arith.addf %364, %365 : vector<24x32xf32>
    %cst_82 = arith.constant dense<0.000000e+00> : vector<24x128xf32>
    %367 = tpu.matmul %366, %221, %cst_82 {dimension_numbers = #tpu.dot_dimension_numbers<[1], [0], [0], [1], [0, 0, 1, 1], [], []>} : vector<24x32xf32>, vector<32x128xf32>, vector<24x128xf32> -> vector<24x128xf32>
    %368 = vector.broadcast %223 : vector<1x128xf32> to vector<24x128xf32>
    %369 = arith.addf %367, %368 : vector<24x128xf32>
    %370 = arith.mulf %369, %369 : vector<24x128xf32>
    %371 = arith.mulf %369, %370 : vector<24x128xf32>
    %cst_83 = arith.constant 4.471500e-02 : f32
    %372 = vector.broadcast %cst_83 : f32 to vector<24x128xf32>
    %373 = arith.mulf %372, %371 : vector<24x128xf32>
    %374 = arith.addf %369, %373 : vector<24x128xf32>
    %cst_84 = arith.constant 0.797884583 : f32
    %375 = vector.broadcast %cst_84 : f32 to vector<24x128xf32>
    %376 = arith.mulf %375, %374 : vector<24x128xf32>
    %377 = math.tanh %376 : vector<24x128xf32>
    %cst_85 = arith.constant 1.000000e+00 : f32
    %378 = vector.broadcast %cst_85 : f32 to vector<24x128xf32>
    %379 = arith.addf %378, %377 : vector<24x128xf32>
    %cst_86 = arith.constant 5.000000e-01 : f32
    %380 = vector.broadcast %cst_86 : f32 to vector<24x128xf32>
    %381 = arith.mulf %380, %379 : vector<24x128xf32>
    %382 = arith.mulf %369, %381 : vector<24x128xf32>
    %cst_87 = arith.constant dense<0.000000e+00> : vector<24x32xf32>
    %383 = tpu.matmul %382, %225, %cst_87 {dimension_numbers = #tpu.dot_dimension_numbers<[1], [0], [0], [1], [0, 0, 1, 1], [], []>} : vector<24x128xf32>, vector<128x32xf32>, vector<24x32xf32> -> vector<24x32xf32>
    %384 = arith.addf %344, %383 : vector<24x32xf32>
    %385 = vector.broadcast %209 : vector<1x32xf32> to vector<24x32xf32>
    %386 = arith.addf %384, %385 : vector<24x32xf32>
    %c0_88 = arith.constant 0 : index
    %c0_89 = arith.constant 0 : index
    %387 = vector.load %arg11[%c0_88, %c0_89] : memref<8x32xf32, #tpu.memory_space<vmem>>, vector<8x32xf32>
    %388 = vector.extract_strided_slice %387 {offsets = [0, 0], sizes = [1, 32], strides = [1, 1]} : vector<8x32xf32> to vector<1x32xf32>
    %389 = vector.extract_strided_slice %387 {offsets = [1, 0], sizes = [1, 32], strides = [1, 1]} : vector<8x32xf32> to vector<1x32xf32>
    %390 = vector.extract_strided_slice %387 {offsets = [2, 0], sizes = [1, 32], strides = [1, 1]} : vector<8x32xf32> to vector<1x32xf32>
    %391 = vector.extract_strided_slice %387 {offsets = [3, 0], sizes = [1, 3], strides = [1, 1]} : vector<8x32xf32> to vector<1x3xf32>
    %392 = vector.extract_strided_slice %386 {offsets = [0, 0], sizes = [1, 32], strides = [1, 1]} : vector<24x32xf32> to vector<1x32xf32>
    %393 = vector.extract_strided_slice %386 {offsets = [12, 0], sizes = [1, 32], strides = [1, 1]} : vector<24x32xf32> to vector<1x32xf32>
    %394 = tpu.concatenate %392, %393 in 0 : vector<1x32xf32>, vector<1x32xf32> -> vector<2x32xf32>
    %cst_90 = arith.constant dense<0.000000e+00> : vector<2xf32>
    %395 = vector.multi_reduction <add>, %394, %cst_90 [1] : vector<2x32xf32> to vector<2xf32>
    %396 = vector.shape_cast %395 : vector<2xf32> to vector<2x1xf32>
    %cst_91 = arith.constant 3.200000e+01 : f32
    %397 = vector.broadcast %cst_91 : f32 to vector<2x1xf32>
    %398 = arith.divf %396, %397 : vector<2x1xf32>
    %399 = vector.broadcast %398 : vector<2x1xf32> to vector<2x32xf32>
    %400 = arith.subf %394, %399 : vector<2x32xf32>
    %401 = arith.mulf %400, %400 : vector<2x32xf32>
    %cst_92 = arith.constant dense<0.000000e+00> : vector<2xf32>
    %402 = vector.multi_reduction <add>, %401, %cst_92 [1] : vector<2x32xf32> to vector<2xf32>
    %403 = vector.shape_cast %402 : vector<2xf32> to vector<2x1xf32>
    %cst_93 = arith.constant 3.200000e+01 : f32
    %404 = vector.broadcast %cst_93 : f32 to vector<2x1xf32>
    %405 = arith.divf %403, %404 : vector<2x1xf32>
    %406 = vector.broadcast %398 : vector<2x1xf32> to vector<2x32xf32>
    %407 = arith.subf %394, %406 : vector<2x32xf32>
    %cst_94 = arith.constant 9.99999996E-13 : f32
    %408 = vector.broadcast %cst_94 : f32 to vector<2x1xf32>
    %409 = arith.addf %405, %408 : vector<2x1xf32>
    %410 = math.rsqrt %409 : vector<2x1xf32>
    %411 = vector.broadcast %410 : vector<2x1xf32> to vector<2x32xf32>
    %412 = arith.mulf %407, %411 : vector<2x32xf32>
    %413 = vector.broadcast %388 : vector<1x32xf32> to vector<2x32xf32>
    %414 = arith.mulf %412, %413 : vector<2x32xf32>
    %415 = vector.broadcast %389 : vector<1x32xf32> to vector<2x32xf32>
    %416 = arith.addf %414, %415 : vector<2x32xf32>
    %c0_95 = arith.constant 0 : index
    %c0_96 = arith.constant 0 : index
    %417 = vector.load %arg9[%c0_95, %c0_96] : memref<32x32xf32, #tpu.memory_space<vmem>>, vector<32x32xf32>
    %cst_97 = arith.constant dense<0.000000e+00> : vector<2x32xf32>
    %418 = tpu.matmul %416, %417, %cst_97 {dimension_numbers = #tpu.dot_dimension_numbers<[1], [0], [0], [1], [0, 0, 1, 1], [], []>} : vector<2x32xf32>, vector<32x32xf32>, vector<2x32xf32> -> vector<2x32xf32>
    %419 = vector.broadcast %390 : vector<1x32xf32> to vector<2x32xf32>
    %420 = arith.addf %418, %419 : vector<2x32xf32>
    %421 = math.tanh %420 : vector<2x32xf32>
    %c0_98 = arith.constant 0 : index
    %c0_99 = arith.constant 0 : index
    %422 = vector.load %arg10[%c0_98, %c0_99] : memref<32x3xf32, #tpu.memory_space<vmem>>, vector<32x3xf32>
    %cst_100 = arith.constant dense<0.000000e+00> : vector<2x3xf32>
    %423 = tpu.matmul %421, %422, %cst_100 {dimension_numbers = #tpu.dot_dimension_numbers<[1], [0], [0], [1], [0, 0, 1, 1], [], []>} : vector<2x32xf32>, vector<32x3xf32>, vector<2x3xf32> -> vector<2x3xf32>
    %424 = vector.broadcast %391 : vector<1x3xf32> to vector<2x3xf32>
    %425 = arith.addf %423, %424 : vector<2x3xf32>
    %c0_101 = arith.constant 0 : index
    %c0_102 = arith.constant 0 : index
    %426 = vector.load %arg12[%c0_101, %c0_102] : memref<2x3xf32, #tpu.memory_space<vmem>>, vector<2x3xf32>
    tpu.vector_store %arg12[%c0_101, %c0_102], %425 {strides = array<i32>} : memref<2x3xf32, #tpu.memory_space<vmem>>, vector<2x3xf32>,
    return
  }
}

</mosaic_0001>

<bundles_post_ra>
// kernel: vilt_with_custom_classifier_forward.1
= control target key start
LH: loop header
LB: loop body
LE: loop exit
PB: predicated region body
PF: predicated region fallthrough
CT: control target
= control target key end

     0   :  { %v6773_v3 = vmov 0.0|0.0   ;;  %vm69_vm0 = vcmask 523264   ;;  %vm190_vm1 = vcmask 261120   ;;  %s8237_s0 = inlined_call_operand.vmem [shape: f32[16,32], index: 0, kind: input, shape index: {}]   ;;  %s8238_s1 = inlined_call_operand.vmem [shape: f32[8,192], index: 1, kind: input, shape index: {}]   ;;  %s8239_s2 = inlined_call_operand.vmem [shape: f32[8,32], index: 2, kind: input, shape index: {}]   ;;  %s8240_s3 = inlined_call_operand.vmem [shape: f32[192,32], index: 3, kind: input, shape index: {}]   ;;  %s8241_s4 = inlined_call_operand.vmem [shape: f32[2,4,32,32], index: 4, kind: input, shape index: {}]   ;;  %s8242_s5 = inlined_call_operand.vmem [shape: f32[2,32,128], index: 5, kind: input, shape index: {}]   ;;  %s8243_s6 = inlined_call_operand.vmem [shape: f32[2,128,32], index: 6, kind: input, shape index: {}]   ;;  %s8244_s7 = inlined_call_operand.vmem [shape: f32[2,16,32], index: 7, kind: input, shape index: {}]   ;;  %s8245_s8 = inlined_call_operand.vmem [shape: f32[2,1,128], index: 8, kind: input, shape index: {}]   ;;  %s8246_s9 = inlined_call_operand.vmem [shape: f32[32,32], index: 9, kind: input, shape index: {}]   ;;  %s8247_s10 = inlined_call_operand.vmem [shape: f32[32,3], index: 10, kind: input, shape index: {}]   ;;  %s8248_s11 = inlined_call_operand.vmem [shape: f32[8,32], index: 11, kind: input, shape index: {}]   ;;  %s8249_s12 = inlined_call_operand.hbm [shape: f32[2,3], index: 12, kind: output, shape index: {}]  }
   0x1   :  { %v44_v0 = vld [vmem:[%s8240_s3] sm:$0xff]  ;;  %v45_v1 = vld [vmem:[%s8240_s3 + $0x8] sm:$0xff]  ;;  %v46_v2 = vld [vmem:[%s8240_s3 + $0x10] sm:$0xff]  ;;  %6099 = vmatprep.subr.bf16.mxu0 %v6773_v3  ;;  %6135 = vmatprep.subr.bf16.mxu1 %v6773_v3 }
   0x2   :  { %v6100_v4 = vpack.c.bf16 %v45_v1, %v44_v0  ;;  %v47_v5 = vld [vmem:[%s8240_s3 + $0x18] sm:$0xff]  ;;  %v48_v7 = vld [vmem:[%s8240_s3 + $0x20] sm:$0xff]  ;;  %v49_v8 = vld [vmem:[%s8240_s3 + $0x28] sm:$0xff] }
   0x3   :  { %v6103_v6 = vpack.c.bf16 %v47_v5, %v46_v2  ;;  %v6106_v9 = vpack.c.bf16 %v49_v8, %v48_v7  ;;  %v50_v10 = vld [vmem:[%s8240_s3 + $0x30] sm:$0xff]  ;;  %v51_v11 = vld [vmem:[%s8240_s3 + $0x38] sm:$0xff]  ;;  %v43_v12 = vld [vmem:[%s8238_s1 + $0x8] sm:$0xff] }
   0x4   :  { %6101 = vmatpush1.bf16.msra.mxu0 %v6100_v4  ;;  %v143_v13 = vld [vmem:[%s8237_s0] sm:$0xff]  ;;  %5169 = vmatprep.mubr.msk.f32.mxu0 %vm69_vm0, %v43_v12 }
   0x5   :  { %6102 = vmatprep.subr.bf16.mxu0 %v6773_v3  ;;  %v191_v14 = vsel %vm190_vm1, %v143_v13, 0.0 }
   0x8   :  { %6104 = vmatpush1.bf16.msra.mxu0 %v6103_v6 }
   0x9   :  { %6105 = vmatprep.subr.bf16.mxu0 %v6773_v3 }
   0xa   :  { %17 = vsyncpa [#allocation3], 0  ;;  %192 = vadd.xlane.f32.xlu0 %v191_v14  ;;  %v6109_v15 = vpack.c.bf16 %v51_v11, %v50_v10  ;;  %v52_v16 = vld [vmem:[%s8240_s3 + $0x40] sm:$0xff]  ;;  %v53_v17 = vld [vmem:[%s8240_s3 + $0x48] sm:$0xff]  ;;  %vm148_vm2 = vcmask 1043456   ;;  %vm6774_vm3 = vmmov 0   ;;  %v231_v10 = vlaneseq }
   0xb   :  { %v6112_v18 = vpack.c.bf16 %v53_v17, %v52_v16  ;;  %v54_v19 = vld [vmem:[%s8240_s3 + $0x50] sm:$0xff]  ;;  %v55_v20 = vld [vmem:[%s8240_s3 + $0x58] sm:$0xff]  ;;  %v56_v22 = vld [vmem:[%s8240_s3 + $0x60] sm:$0xff]  ;;  %v6775_v61 = vmov 0.0   ;;  %vm603_vm4 = vcmask 64512   ;;  %s6776_s27 = smov 120  }
   0xc   :  { %6107 = vmatpush1.bf16.msra.mxu0 %v6106_v9  ;;  %v6115_v21 = vpack.c.bf16 %v55_v20, %v54_v19  ;;  %v57_v23 = vld [vmem:[%s8240_s3 + $0x68] sm:$0xff]  ;;  %v58_v25 = vld [vmem:[%s8240_s3 + $0x70] sm:$0xff]  ;;  %v59_v26 = vld [vmem:[%s8240_s3 + $0x78] sm:$0xff]  ;;  %5609 = vmatprep.mubr.msk.f32.mxu1 %vm6774_vm3, %v6775_v61  ;;  %v6981_v14 = vshrl.u32 %v231_v10, 7  ;;  %s6777_s28 = smov 112   ;;  %s6778_s29 = smov 104  }
   0xd   :  { %6108 = vmatprep.subr.bf16.mxu0 %v6773_v3  ;;  %v6118_v24 = vpack.c.bf16 %v57_v23, %v56_v22  ;;  %v6121_v27 = vpack.c.bf16 %v59_v26, %v58_v25  ;;  %v60_v28 = vld [vmem:[%s8240_s3 + $0x80] sm:$0xff]  ;;  %v61_v29 = vld [vmem:[%s8240_s3 + $0x88] sm:$0xff]  ;;  %v62_v31 = vld [vmem:[%s8240_s3 + $0x90] sm:$0xff]  ;;  %vm6779_vm6 = vmmov 1   ;;  %vm1288_vm8 = vcmask 93184   ;;  %s6780_s30 = smov 8  }
   0xe   :  { %v6124_v30 = vpack.c.bf16 %v61_v29, %v60_v28  ;;  %v63_v32 = vld [vmem:[%s8240_s3 + $0x98] sm:$0xff]  ;;  %v64_v34 = vld [vmem:[%s8240_s3 + $0xa0] sm:$0xff]  ;;  %v65_v35 = vld [vmem:[%s8240_s3 + $0xa8] sm:$0xff]  ;;  %v6992_v17 = vsub.s32 1, %v6981_v14  ;;  %vm1284_vm9 = vcmask 97280   ;;  %s6781_s21 = smov 16  }
   0xf   :  { %v6127_v33 = vpack.c.bf16 %v63_v32, %v62_v31  ;;  %v6130_v36 = vpack.c.bf16 %v65_v35, %v64_v34  ;;  %v66_v37 = vld [vmem:[%s8240_s3 + $0xb0] sm:$0xff]  ;;  %v67_v38 = vld [vmem:[%s8240_s3 + $0xb8] sm:$0xff]  ;;  %v42_v40 = vld [vmem:[%s8238_s1] sm:$0xff]  ;;  %s6782_s22 = smov 24   ;;  %vm2152_vm10 = vcmask 130048   ;;  %vm2155_vm11 = vcmask 195584  }
  0x10   :  { %6110 = vmatpush1.bf16.msra.mxu0 %v6109_v15  ;;  %v6133_v39 = vpack.c.bf16 %v67_v38, %v66_v37  ;;  %v144_v43 = vld [vmem:[%s8237_s0 + $0x8] sm:$0xff]  ;;  %v68_v44 = vld [vmem:[%s8239_s2] sm:$0xff]  ;;  %v155_v58 = vld [vmem:[%s8241_s4 + $0x10] sm:$0xff]  ;;  %v6984_v15 = vsub.s32 0, %v6981_v14  ;;  %vm4964_vm12 = vcmask 1040384   ;;  %vm4966_vm13 = vcmask 254976  }
  0x11   :  { %6111 = vmatprep.subr.bf16.mxu0 %v6773_v3  ;;  %v146_v46 = vrot.slane %v144_v43, 4  ;;  %v153_v56 = vld [vmem:[%s8241_s4] sm:$0xff]  ;;  %v154_v57 = vld [vmem:[%s8241_s4 + $0x8] sm:$0xff]  ;;  %v156_v60 = vld [vmem:[%s8241_s4 + $0x18] sm:$0xff]  ;;  %vm5153_vm14 = vcmask 17408  }
  0x12   :  { %v6136_v59 = vpack.c.bf16 %v154_v57, %v153_v56  ;;  %v6139_v62 = vpack.c.bf16 %v156_v60, %v155_v58  ;;  %v6989_v16 = vld [vmem:[%s8244_s7] sm:$0xff]  ;;  %v158_v25 = vld [vmem:[%s8241_s4 + $0x28] sm:$0xff]  ;;  %v160_v28 = vld [vmem:[%s8241_s4 + $0x38] sm:$0xff] }
  0x13   :  { %vm7072_vm5 = vmpackc.low %vm603_vm4, %vm603_vm4 }
  0x14   :  { %6113 = vmatpush1.bf16.msra.mxu0 %v6112_v18  ;;  %6137 = vmatpush3.bf16.msra.mxu1 %v6136_v59  ;;  %v234_v18 = vrot.slane %v6989_v16, %v6984_v15  ;;  %vm7139_vm7 = vmpackc.low %vm148_vm2, %vm6779_vm6 }
  0x15   :  { %6114 = vmatprep.subr.bf16.mxu0 %v6773_v3  ;;  %6138 = vmatprep.subr.bf16.mxu1 %v6773_v3 }
  0x18   :  { %6116 = vmatpush1.bf16.msra.mxu0 %v6115_v21  ;;  %6140 = vmatpush3.bf16.msra.mxu1 %v6139_v62  ;;  %v241_v21 = vrot.slane %v6989_v16, %v6992_v17 }
  0x19   :  { %6117 = vmatprep.subr.bf16.mxu0 %v6773_v3  ;;  %6141 = vmatprep.subr.bf16.mxu1 %v6773_v3 }
  0x1c   :  { %6119 = vmatpush1.bf16.msra.mxu0 %v6118_v24  ;;  %v157_v24 = vld [vmem:[%s8241_s4 + $0x20] sm:$0xff] }
  0x1d   :  { %6120 = vmatprep.subr.bf16.mxu0 %v6773_v3  ;;  %v6142_v26 = vpack.c.bf16 %v158_v25, %v157_v24 }
  0x20   :  { %6122 = vmatpush1.bf16.msra.mxu0 %v6121_v27  ;;  %v159_v27 = vld [vmem:[%s8241_s4 + $0x30] sm:$0xff] }
  0x21   :  { %6123 = vmatprep.subr.bf16.mxu0 %v6773_v3  ;;  %v6145_v29 = vpack.c.bf16 %v160_v28, %v159_v27 }
  0x24   :  { %6125 = vmatpush1.bf16.msra.mxu0 %v6124_v30 }
  0x25   :  { %6126 = vmatprep.subr.bf16.mxu0 %v6773_v3 }
  0x28   :  { %6128 = vmatpush1.bf16.msra.mxu0 %v6127_v33 }
  0x29   :  { %6129 = vmatprep.subr.bf16.mxu0 %v6773_v3 }
  0x2c   :  { %6131 = vmatpush1.bf16.msra.mxu0 %v6130_v36 }
  0x2d   :  { %6132 = vmatprep.subr.bf16.mxu0 %v6773_v3 }
  0x30   :  { %6134 = vmatpush1.bf16.msra.mxu0 %v6133_v39 }
  0x33   :  { %138 = vmatmul.mubr.f32.vlgmr.msra.gmra.mrb[0].mxu0 %v42_v40 }
  0x97   :  { %v193_v41 = vpop.xlane.xlu0 %192 }
  0x98   :  { %v201_v42 = vmul.f32 0.03125, %v193_v41 }
  0x9a   :  { %v204_v45 = vsub.f32 %v143_v13, %v201_v42 }
  0x9c   :  { %v207_v50 = vmul.f32 %v204_v45, %v204_v45 }
  0x9e   :  { %v210_v55 = vsel %vm190_vm1, %v207_v50, 0.0  ;;  %v7051_v50 = vsub.s32 2, %v6981_v14 }
 0x106   :  { %v139_v47 = vpop.f32.mrb[0].mxu0 }
 0x107   :  { %v140_v48 = vadd.f32 %v139_v47, %v68_v44  ;;  %v141_v49 = vpop.f32.mrb[1].mxu0  ;;  %v161_v44 = vld [vmem:[%s8241_s4 + $0x40] sm:$0xff]  ;;  %v163_v47 = vld [vmem:[%s8241_s4 + $0x50] sm:$0xff] }
 0x109   :  { %v6951_v51 = vsel %vm148_vm2, %v146_v46, %v140_v48  ;;  %v6954_v52 = vsel %vm148_vm2, %v140_v48, %v146_v46  ;;  %v164_v48 = vld [vmem:[%s8241_s4 + $0x58] sm:$0xff] }
 0x10a   :  { %v197_v53 = vsel %vm190_vm1, %v6951_v51, 0.0  ;;  %v194_v54 = vsel %vm190_vm1, %v6954_v52, 0.0  ;;  %v6151_v49 = vpack.c.bf16 %v164_v48, %v163_v47 }
 0x10b   :  { %198 = vadd.xlane.f32.xlu1 %v197_v53  ;;  %195 = vadd.xlane.f32.xlu0 %v194_v54  ;;  %v248_v53 = vrot.slane %v6989_v16, %v7051_v50 }
 0x10f   :  { %211 = vadd.xlane.f32.xlu1 %v210_v55 }
 0x198   :  { %v199_v63 = vpop.xlane.xlu1 %198  ;;  %v196_v0 = vpop.xlane.xlu0 %195 }
 0x199   :  { %v203_v1 = vmul.f32 0.03125, %v199_v63  ;;  %v202_v2 = vmul.f32 0.03125, %v196_v0  ;;  %v7060_v0 = vsub.s32 3, %v6981_v14 }
 0x19b   :  { %v206_v4 = vsub.f32 %v6951_v51, %v203_v1  ;;  %v205_v5 = vsub.f32 %v6954_v52, %v202_v2 }
 0x19c   :  { %v212_v6 = vpop.xlane.xlu1 %211 }
 0x19d   :  { %v219_v7 = vmul.f32 0.03125, %v212_v6  ;;  %v209_v8 = vmul.f32 %v206_v4, %v206_v4  ;;  %v208_v9 = vmul.f32 %v205_v5, %v205_v5 }
 0x19f   :  { %v222_v11 = vadd.f32 1e-12, %v219_v7  ;;  %v216_v12 = vsel %vm190_vm1, %v209_v8, 0.0  ;;  %v213_v13 = vsel %vm190_vm1, %v208_v9, 0.0 }
 0x1a0   :  { %217 = vadd.xlane.f32.xlu1 %v216_v12  ;;  %214 = vadd.xlane.f32.xlu0 %v213_v13 }
 0x1a1   :  { %6578 = vrsqrt.f32 %v222_v11 }
 0x1ab   :  { %v6579_v19 = vpop.eup %6578 }
 0x1ac   :  { %v228_v20 = vmul.f32 %v6579_v19, %v204_v45  ;;  %v162_v45 = vld [vmem:[%s8241_s4 + $0x48] sm:$0xff] }
 0x1ad   :  { %v6148_v46 = vpack.c.bf16 %v162_v45, %v161_v44 }
 0x1ae   :  { %v235_v22 = vmul.f32 %v234_v18, %v228_v20 }
 0x1b0   :  { %v242_v23 = vadd.f32 %v241_v21, %v235_v22  ;;  %v424_v22 = vsub.s32 4, %v6981_v14 }
 0x1b2   :  { %5610 = vmatmul.mubr.msk.f32.vlgmr.msra.gmra.mrb[0].mxu1 %vm190_vm1, %v242_v23 }
 0x1b3   :  { %5612 = vmatprep.mubr.msk.f32.mxu1 %vm6774_vm3, %v6775_v61  ;;  %6143 = vmatpush3.bf16.msra.mxu1 %v6142_v26  ;;  %v425_v26 = vrot.slane %v6989_v16, %v424_v22 }
 0x1b4   :  { %6144 = vmatprep.subr.bf16.mxu1 %v6773_v3 }
 0x1b7   :  { %6146 = vmatpush3.bf16.msra.mxu1 %v6145_v29 }
 0x1b8   :  { %6147 = vmatprep.subr.bf16.mxu1 %v6773_v3 }
 0x22d   :  { %v218_v30 = vpop.xlane.xlu1 %217  ;;  %v215_v31 = vpop.xlane.xlu0 %214 }
 0x22e   :  { %v221_v32 = vmul.f32 0.03125, %v218_v30  ;;  %v220_v33 = vmul.f32 0.03125, %v215_v31 }
 0x230   :  { %v224_v34 = vadd.f32 1e-12, %v221_v32  ;;  %v223_v35 = vadd.f32 1e-12, %v220_v33 }
 0x232   :  { %6580 = vrsqrt.f32 %v224_v34 }
 0x233   :  { %6582 = vrsqrt.f32 %v223_v35 }
 0x23c   :  { %v6581_v36 = vpop.eup %6580 }
 0x23d   :  { %v6583_v37 = vpop.eup %6582  ;;  %v230_v39 = vmul.f32 %v6581_v36, %v206_v4 }
 0x23e   :  { %v229_v38 = vmul.f32 %v6583_v37, %v205_v5  ;;  %v341_v5 = vrot.slane %v6989_v16, %v7060_v0 }
 0x23f   :  { %v237_v42 = vmul.f32 %v234_v18, %v230_v39 }
 0x240   :  { %v236_v40 = vmul.f32 %v234_v18, %v229_v38 }
 0x241   :  { %v244_v43 = vadd.f32 %v241_v21, %v237_v42 }
 0x242   :  { %v243_v41 = vadd.f32 %v241_v21, %v236_v40 }
 0x244   :  { %5613 = vmatmul.mubr.msk.f32.gmra.mrb[2].mxu1 %vm190_vm1, %v243_v41 }
 0x245   :  { %5615 = vmatprep.mubr.msk.f32.mxu1 %vm6774_vm3, %v6775_v61 }
 0x248   :  { %5616 = vmatmul.mubr.msk.f32.gmra.mrb[4].mxu1 %vm190_vm1, %v244_v43 }
 0x249   :  { %5626 = vmatprep.mubr.msk.f32.mxu1 %vm6774_vm3, %v6775_v61 }
 0x24c   :  { %5627 = vmatmul.mubr.msk.f32.vlgmr.msra.gmra.mrb[6].mxu1 %vm190_vm1, %v242_v23 }
 0x24d   :  { %5629 = vmatprep.mubr.msk.f32.mxu1 %vm6774_vm3, %v6775_v61  ;;  %6149 = vmatpush3.bf16.msra.mxu1 %v6148_v46 }
 0x24e   :  { %6150 = vmatprep.subr.bf16.mxu1 %v6773_v3 }
 0x250   :  { %5630 = vmatmul.mubr.msk.f32.gmra.mrb[8].mxu1 %vm190_vm1, %v243_v41 }
 0x251   :  { %5632 = vmatprep.mubr.msk.f32.mxu1 %vm6774_vm3, %v6775_v61  ;;  %6152 = vmatpush3.bf16.msra.mxu1 %v6151_v49 }
 0x254   :  { %5633 = vmatmul.mubr.msk.f32.gmra.mrb[10].mxu1 %vm190_vm1, %v244_v43 }
 0x255   :  { %5643 = vmatprep.mubr.msk.f32.mxu1 %vm6774_vm3, %v6775_v61 }
 0x258   :  { %5644 = vmatmul.mubr.msk.f32.vlgmr.msra.gmra.mrb[12].mxu1 %vm190_vm1, %v242_v23 }
 0x259   :  { %5646 = vmatprep.mubr.msk.f32.mxu1 %vm6774_vm3, %v6775_v61 }
 0x25c   :  { %5647 = vmatmul.mubr.msk.f32.gmra.mrb[14].mxu1 %vm190_vm1, %v243_v41 }
 0x25d   :  { %5649 = vmatprep.mubr.msk.f32.mxu1 %vm6774_vm3, %v6775_v61 }
 0x260   :  { %5650 = vmatmul.mubr.msk.f32.gmra.mrb[16].mxu1 %vm190_vm1, %v244_v43 }
 0x285   :  { %v324_v54 = vpop.f32.mrb[0].mxu1 }
 0x286   :  { %v325_v55 = vadd.f32 %v324_v54, %v248_v53  ;;  %v5611_v56 = vpop.f32.mrb[1].mxu1 }
 0x288   :  { %508 = vrot.lane.b32.xlu1 %v325_v55, %s6776_s27  ;;  %5656 = vmatprep.mubr.msk.f32.mxu1 %vm603_vm4, %v325_v55 }
 0x2fa   :  { %v509_v34 = vpop.permute.xlu1 %508 }
 0x317   :  { %v329_v57 = vpop.f32.mrb[2].mxu1 }
 0x318   :  { %v5614_v58 = vpop.f32.mrb[3].mxu1  ;;  %v7057_v59 = vadd.f32 %v329_v57, %v248_v53 }
 0x31a   :  { %v521_v2 = vrot.slane %v7057_v59, 4 }
 0x31b   :  { %v334_v60 = vpop.f32.mrb[4].mxu1 }
 0x31c   :  { %v335_v62 = vadd.f32 %v334_v60, %v248_v53  ;;  %v5617_v63 = vpop.f32.mrb[5].mxu1 }
 0x31e   :  { %v7062_v1 = vrot.slane %v335_v62, 4 }
 0x31f   :  { %v408_v4 = vpop.f32.mrb[6].mxu1 }
 0x320   :  { %v5628_v6 = vpop.f32.mrb[7].mxu1  ;;  %v523_v7 = vsel %vm148_vm2, %v521_v2, %v7062_v1  ;;  %v409_v9 = vadd.f32 %v408_v4, %v341_v5 }
 0x321   :  { %5684 = vmatprep.mubr.msk.f32.mxu0 %vm603_vm4, %v523_v7 }
 0x323   :  { %v413_v8 = vpop.f32.mrb[8].mxu1 }
 0x324   :  { %v414_v10 = vadd.f32 %v413_v8, %v341_v5  ;;  %v5631_v11 = vpop.f32.mrb[9].mxu1 }
 0x326   :  { %v6463_v12 = vpack.i.bf16 %v414_v10, %v409_v9  ;;  %v6153_v13 = vpack.c.bf16 %v414_v10, %v409_v9  ;;  %v551_v23 = vrot.slane %v414_v10, 4 }
 0x327   :  { %v418_v19 = vpop.f32.mrb[10].mxu1 }
 0x328   :  { %v419_v20 = vadd.f32 %v418_v19, %v341_v5  ;;  %6464 = vrot.lane.b32.xlu1 %v6463_v12, %s6777_s28  ;;  %6459 = vrot.lane.b32.xlu0 %v6463_v12, %s6776_s27  ;;  %v5634_v21 = vpop.f32.mrb[11].mxu1 }
 0x329   :  { %6155 = vmatprep.subr.msk.bf16.mxu1 %vm7072_vm5, %v6153_v13 }
 0x32a   :  { %v552_v24 = vrot.slane %v419_v20, 4  ;;  %6158 = vmatpush3.bf16.xpose.msk.msra.mxu1 %vm7072_vm5, %v6153_v13 }
 0x32b   :  { %v492_v25 = vpop.f32.mrb[12].mxu1 }
 0x32c   :  { %510 = vrot.lane.b32.xlu1 %v7057_v59, %s6776_s27  ;;  %6469 = vrot.lane.b32.xlu0 %v6463_v12, %s6778_s29  ;;  %v5645_v27 = vpop.f32.mrb[13].mxu1  ;;  %v553_v28 = vsel %vm148_vm2, %v551_v23, %v552_v24  ;;  %v493_v32 = vadd.f32 %v492_v25, %v425_v26 }
 0x32d   :  { %v6177_v29 = vpack.c.bf16 %v552_v24, %v553_v28  ;;  %v6473_v30 = vpack.i.bf16 %v552_v24, %v553_v28 }
 0x32f   :  { %v497_v31 = vpop.f32.mrb[14].mxu1  ;;  %6179 = vmatprep.subr.msk.bf16.mxu0 %vm7072_vm5, %v6177_v29 }
 0x330   :  { %v498_v33 = vadd.f32 %v497_v31, %v425_v26  ;;  %512 = vrot.lane.b32.xlu1 %v325_v55, %s6777_s28  ;;  %514 = vrot.lane.b32.xlu0 %v7057_v59, %s6777_s28  ;;  %v5648_v16 = vpop.f32.mrb[15].mxu1 }
 0x331   :  { %5657 = vmatmul.mubr.msk.f32.vlgmr.msra.gmra.mrb[18].mxu1 %vm603_vm4, %v7057_v59  ;;  %6182 = vmatpush3.bf16.xpose.msk.msra.mxu0 %vm7072_vm5, %v6177_v29 }
 0x332   :  { %5663 = vmatprep.mubr.msk.f32.mxu1 %vm603_vm4, %v509_v34  ;;  %v7100_v35 = vpack.c.bf16 %v498_v33, %v493_v32  ;;  %v7102_v36 = vpack.i.bf16 %v498_v33, %v493_v32  ;;  %v584_v41 = vrot.slane %v498_v33, 4 }
 0x333   :  { %v502_v37 = vpop.f32.mrb[16].mxu1 }
 0x334   :  { %v503_v38 = vadd.f32 %v502_v37, %v425_v26  ;;  %516 = vrot.lane.b32.xlu0 %v325_v55, %s6778_s29  ;;  %6474 = vrot.lane.b32.xlu1 %v6473_v30, %s6776_s27  ;;  %v5651_v39 = vpop.f32.mrb[17].mxu1 }
 0x336   :  { %v585_v40 = vrot.slane %v503_v38, 4 }
 0x338   :  { %5685 = vmatmul.mubr.msk.f32.vlgmr.msra.gmra.mrb[2].mxu0 %vm603_vm4, %v7062_v1  ;;  %6479 = vrot.lane.b32.xlu0 %v6473_v30, %s6777_s28  ;;  %v586_v42 = vsel %vm148_vm2, %v584_v41, %v585_v40 }
 0x339   :  { %518 = vrot.lane.b32.xlu1 %v7057_v59, %s6778_s29  ;;  %v7112_v43 = vpack.i.bf16 %v585_v40, %v586_v42  ;;  %v7114_v44 = vpack.c.bf16 %v585_v40, %v586_v42 }
 0x33c   :  { %524 = vrot.lane.b32.xlu0 %v523_v7, %s6776_s27 }
 0x33d   :  { %6484 = vrot.lane.b32.xlu1 %v6473_v30, %s6778_s29 }
 0x340   :  { %528 = vrot.lane.b32.xlu0 %v523_v7, %s6777_s28 }
 0x341   :  { %526 = vrot.lane.b32.xlu1 %v7062_v1, %s6776_s27 }
 0x344   :  { %532 = vrot.lane.b32.xlu0 %v523_v7, %s6778_s29 }
 0x345   :  { %530 = vrot.lane.b32.xlu1 %v7062_v1, %s6777_s28 }
 0x349   :  { %534 = vrot.lane.b32.xlu1 %v7062_v1, %s6778_s29 }
 0x39a   :  { %v6465_v45 = vpop.permute.xlu1 %6464  ;;  %v6460_v46 = vpop.permute.xlu0 %6459 }
 0x39b   :  { %v6467_v47 = vunpack.i.h.bf16 %v6465_v45  ;;  %v6466_v48 = vunpack.i.l.bf16 %v6465_v45  ;;  %v6462_v49 = vunpack.i.h.bf16 %v6460_v46  ;;  %v6461_v53 = vunpack.i.l.bf16 %v6460_v46 }
 0x39d   :  { %v6159_v54 = vpack.c.bf16 %v6462_v49, %v6461_v53  ;;  %v6165_v57 = vpack.c.bf16 %v6467_v47, %v6466_v48 }
 0x39e   :  { %v511_v55 = vpop.permute.xlu1 %510  ;;  %v6470_v56 = vpop.permute.xlu0 %6469 }
 0x39f   :  { %6161 = vmatprep.subr.msk.bf16.mxu1 %vm7072_vm5, %v6159_v54  ;;  %v6472_v60 = vunpack.i.h.bf16 %v6470_v56  ;;  %v6471_v62 = vunpack.i.l.bf16 %v6470_v56 }
 0x3a0   :  { %6164 = vmatpush3.bf16.xpose.msk.msra.mxu1 %vm7072_vm5, %v6159_v54 }
 0x3a1   :  { %6167 = vmatprep.subr.msk.bf16.mxu1 %vm7072_vm5, %v6165_v57  ;;  %v6171_v2 = vpack.c.bf16 %v6472_v60, %v6471_v62 }
 0x3a2   :  { %v513_v58 = vpop.permute.xlu1 %512  ;;  %v515_v59 = vpop.permute.xlu0 %514 }
 0x3a6   :  { %v517_v63 = vpop.permute.xlu0 %516  ;;  %v6475_v1 = vpop.permute.xlu1 %6474 }
 0x3a7   :  { %5664 = vmatmul.mubr.msk.f32.vlgmr.msra.gmra.mrb[20].mxu1 %vm603_vm4, %v511_v55  ;;  %v6477_v5 = vunpack.i.h.bf16 %v6475_v1  ;;  %v6476_v6 = vunpack.i.l.bf16 %v6475_v1 }
 0x3a8   :  { %6170 = vmatpush3.bf16.xpose.msk.msra.mxu1 %vm7072_vm5, %v6165_v57  ;;  %5670 = vmatprep.mubr.msk.f32.mxu1 %vm603_vm4, %v513_v58 }
 0x3a9   :  { %6173 = vmatprep.subr.msk.bf16.mxu1 %vm7072_vm5, %v6171_v2  ;;  %v6183_v13 = vpack.c.bf16 %v6477_v5, %v6476_v6 }
 0x3aa   :  { %v6480_v4 = vpop.permute.xlu0 %6479 }
 0x3ab   :  { %v6482_v7 = vunpack.i.h.bf16 %v6480_v4  ;;  %v6481_v8 = vunpack.i.l.bf16 %v6480_v4  ;;  %v519_v9 = vpop.permute.xlu1 %518 }
 0x3ad   :  { %v6189_v10 = vpack.c.bf16 %v6482_v7, %v6481_v8 }
 0x3ae   :  { %v525_v11 = vpop.permute.xlu0 %524 }
 0x3af   :  { %v6485_v19 = vpop.permute.xlu1 %6484  ;;  %5671 = vmatmul.mubr.msk.f32.vlgmr.msra.gmra.mrb[22].mxu1 %vm603_vm4, %v515_v59  ;;  %6191 = vmatprep.subr.msk.bf16.mxu0 %vm7072_vm5, %v6189_v10 }
 0x3b0   :  { %6176 = vmatpush3.bf16.xpose.msk.msra.mxu1 %vm7072_vm5, %v6171_v2  ;;  %5677 = vmatprep.mubr.msk.f32.mxu1 %vm603_vm4, %v517_v63  ;;  %v6487_v23 = vunpack.i.h.bf16 %v6485_v19  ;;  %v6486_v24 = vunpack.i.l.bf16 %v6485_v19 }
 0x3b1   :  { %6194 = vmatpush3.bf16.xpose.msk.msra.mxu0 %vm7072_vm5, %v6189_v10  ;;  %6185 = vmatprep.subr.msk.bf16.mxu1 %vm7072_vm5, %v6183_v13 }
 0x3b2   :  { %6203 = vmatprep.subr.msk.bf16.mxu0 %vm7139_vm7, %v7100_v35  ;;  %v529_v20 = vpop.permute.xlu0 %528  ;;  %v6195_v26 = vpack.c.bf16 %v6487_v23, %v6486_v24 }
 0x3b3   :  { %v527_v21 = vpop.permute.xlu1 %526  ;;  %5698 = vmatprep.mubr.msk.f32.mxu0 %vm603_vm4, %v529_v20 }
 0x3b6   :  { %v533_v27 = vpop.permute.xlu0 %532 }
 0x3b7   :  { %v531_v25 = vpop.permute.xlu1 %530  ;;  %5678 = vmatmul.mubr.msk.f32.vlgmr.msra.gmra.mrb[24].mxu1 %vm603_vm4, %v519_v9 }
 0x3b8   :  { %5699 = vmatmul.mubr.msk.f32.vlgmr.msra.gmra.mrb[4].mxu0 %vm603_vm4, %v531_v25  ;;  %6188 = vmatpush3.bf16.xpose.msk.msra.mxu1 %vm7072_vm5, %v6183_v13 }
 0x3b9   :  { %5691 = vmatprep.mubr.msk.f32.mxu1 %vm603_vm4, %v525_v11  ;;  %6206 = vmatpush3.bf16.msk.msra.mxu0 %vm7139_vm7, %v7100_v35 }
 0x3ba   :  { %6197 = vmatprep.subr.msk.bf16.mxu1 %vm7072_vm5, %v6195_v26 }
 0x3bb   :  { %v535_v28 = vpop.permute.xlu1 %534 }
 0x3bf   :  { %5692 = vmatmul.mubr.msk.f32.vlgmr.msra.gmra.mrb[26].mxu1 %vm603_vm4, %v527_v21 }
 0x3c0   :  { %6200 = vmatpush3.bf16.xpose.msk.msra.mxu1 %vm7072_vm5, %v6195_v26  ;;  %5705 = vmatprep.mubr.msk.f32.mxu1 %vm603_vm4, %v533_v27 }
 0x3c7   :  { %5706 = vmatmul.mubr.msk.f32.vlgmr.msra.gmra.mrb[28].mxu1 %vm603_vm4, %v535_v28 }
 0x404   :  { %v5658_v29 = vpop.f32.mrb[18].mxu1 }
 0x405   :  { %v7172_v30 = vmul.f32 0.35355338, %v5658_v29  ;;  %v678_v31 = vpop.f32.mrb[19].mxu1 }
 0x406   :  { %v7174_v32 = vmul.f32 0.35355338, %v678_v31 }
 0x407   :  { %v1289_v33 = vsel %vm1288_vm8, %v7172_v30, -inf }
 0x408   :  { %1290 = vmax.xlane.f32.xlu1 %v1289_v33  ;;  %v1285_v16 = vsel %vm1284_vm9, %v7174_v32, -inf }
 0x409   :  { %1286 = vmax.xlane.f32.xlu0 %v1285_v16 }
 0x40b   :  { %v5686_v34 = vpop.f32.mrb[2].mxu0 }
 0x40c   :  { %v7180_v35 = vmul.f32 0.35355338, %v5686_v34  ;;  %v1010_v37 = vpop.f32.mrb[3].mxu0 }
 0x40d   :  { %v7182_v38 = vmul.f32 0.35355338, %v1010_v37 }
 0x40e   :  { %v1313_v39 = vsel %vm1288_vm8, %v7180_v35, -inf }
 0x40f   :  { %1314 = vmax.xlane.f32.xlu1 %v1313_v39  ;;  %v1310_v40 = vsel %vm1284_vm9, %v7182_v38, -inf }
 0x410   :  { %1311 = vmax.xlane.f32.xlu0 %v1310_v40 }
 0x47a   :  { %v5665_v41 = vpop.f32.mrb[20].mxu1 }
 0x47b   :  { %v7188_v42 = vmul.f32 0.35355338, %v5665_v41  ;;  %v761_v45 = vpop.f32.mrb[21].mxu1 }
 0x47c   :  { %v7190_v46 = vmul.f32 0.35355338, %v761_v45 }
 0x47d   :  { %v1295_v47 = vsel %vm1288_vm8, %v7188_v42, -inf }
 0x47e   :  { %1296 = vmax.xlane.f32.xlu0 %v1295_v47  ;;  %v1292_v48 = vsel %vm1284_vm9, %v7190_v46, -inf }
 0x482   :  { %1293 = vmax.xlane.f32.xlu0 %v1292_v48  ;;  %v5672_v49 = vpop.f32.mrb[22].mxu1 }
 0x483   :  { %v844_v53 = vpop.f32.mrb[23].mxu1  ;;  %v7200_v60 = vmul.f32 0.35355338, %v5672_v49 }
 0x484   :  { %v7204_v63 = vmul.f32 0.35355338, %v844_v53 }
 0x485   :  { %v1301_v4 = vsel %vm1288_vm8, %v7200_v60, -inf }
 0x486   :  { %v1298_v7 = vsel %vm1284_vm9, %v7204_v63, -inf }
 0x48a   :  { %v5679_v54 = vpop.f32.mrb[24].mxu1 }
 0x48b   :  { %v5700_v55 = vpop.f32.mrb[4].mxu0  ;;  %v927_v56 = vpop.f32.mrb[25].mxu1  ;;  %v7208_v2 = vmul.f32 0.35355338, %v5679_v54 }
 0x48c   :  { %v7196_v57 = vmul.f32 0.35355338, %v5700_v55  ;;  %v1176_v58 = vpop.f32.mrb[5].mxu0  ;;  %v7212_v6 = vmul.f32 0.35355338, %v927_v56 }
 0x48d   :  { %v7198_v59 = vmul.f32 0.35355338, %v1176_v58  ;;  %v1307_v10 = vsel %vm1288_vm8, %v7208_v2, -inf }
 0x48e   :  { %v1325_v62 = vsel %vm1288_vm8, %v7196_v57, -inf  ;;  %v1304_v13 = vsel %vm1284_vm9, %v7212_v6, -inf }
 0x48f   :  { %1326 = vmax.xlane.f32.xlu1 %v1325_v62  ;;  %v1322_v1 = vsel %vm1284_vm9, %v7198_v59, -inf }
 0x490   :  { %1323 = vmax.xlane.f32.xlu0 %v1322_v1 }
 0x492   :  { %v5693_v5 = vpop.f32.mrb[26].mxu1 }
 0x493   :  { %1302 = vmax.xlane.f32.xlu1 %v1301_v4  ;;  %v1093_v8 = vpop.f32.mrb[27].mxu1  ;;  %v7216_v9 = vmul.f32 0.35355338, %v5693_v5 }
 0x494   :  { %1299 = vmax.xlane.f32.xlu0 %v1298_v7  ;;  %v7220_v11 = vmul.f32 0.35355338, %v1093_v8 }
 0x495   :  { %v1319_v19 = vsel %vm1288_vm8, %v7216_v9, -inf  ;;  %v1291_v33 = vpop.xlane.xlu1 %1290 }
 0x496   :  { %v1316_v23 = vsel %vm1284_vm9, %v7220_v11, -inf  ;;  %v1287_v28 = vpop.xlane.xlu0 %1286  ;;  %v1335_v37 = vsub.f32 %v7172_v30, %v1291_v33 }
 0x497   :  { %1308 = vmax.xlane.f32.xlu1 %v1307_v10  ;;  %v1334_v29 = vsub.f32 %v7174_v32, %v1287_v28 }
 0x498   :  { %1305 = vmax.xlane.f32.xlu0 %v1304_v13  ;;  %v1352_v41 = vmul.f32 1.442695, %v1335_v37 }
 0x499   :  { %v1350_v16 = vmul.f32 1.442695, %v1334_v29 }
 0x49a   :  { %v5707_v20 = vpop.f32.mrb[28].mxu1 }
 0x49b   :  { %1320 = vmax.xlane.f32.xlu1 %v1319_v19  ;;  %v7226_v21 = vmul.f32 0.35355338, %v5707_v20  ;;  %v1259_v24 = vpop.f32.mrb[29].mxu1  ;;  %6584 = vpow2.f32 %v1350_v16 }
 0x49c   :  { %1317 = vmax.xlane.f32.xlu0 %v1316_v23  ;;  %v7230_v25 = vmul.f32 0.35355338, %v1259_v24  ;;  %v1315_v39 = vpop.xlane.xlu1 %1314 }
 0x49d   :  { %v1331_v26 = vsel %vm1288_vm8, %v7226_v21, -inf  ;;  %v1312_v31 = vpop.xlane.xlu0 %1311  ;;  %v1343_v45 = vsub.f32 %v7180_v35, %v1315_v39 }
 0x49e   :  { %v1328_v27 = vsel %vm1284_vm9, %v7230_v25, -inf  ;;  %v1342_v34 = vsub.f32 %v7182_v38, %v1312_v31 }
 0x49f   :  { %1332 = vmax.xlane.f32.xlu1 %v1331_v26 }
 0x4a0   :  { %1329 = vmax.xlane.f32.xlu0 %v1328_v27  ;;  %v1366_v40 = vmul.f32 1.442695, %v1342_v34 }
 0x4a2   :  { %6586 = vpow2.f32 %v1366_v40 }
 0x4a3   :  { %6588 = vpow2.f32 %v1352_v41 }
 0x4a5   :  { %v7248_v47 = vpop.eup %6584 }
 0x4a6   :  { %v1382_v32 = vsel %vm1284_vm9, %v7248_v47, 0.0 }
 0x4ac   :  { %v7252_v48 = vpop.eup %6586 }
 0x4ad   :  { %v7254_v38 = vpop.eup %6588  ;;  %v1406_v30 = vsel %vm1284_vm9, %v7252_v48, 0.0 }
 0x4ae   :  { %v1385_v35 = vsel %vm1288_vm8, %v7254_v38, 0.0 }
 0x4b0   :  { %6494 = vrot.lane.b32.xlu1 %v7102_v36, %s6777_s28 }
 0x4b4   :  { %6499 = vrot.lane.b32.xlu1 %v7102_v36, %s6778_s29 }
 0x4b6   :  { %6489 = vrot.lane.b32.xlu0 %v7102_v36, %s6776_s27  ;;  %v1368_v36 = vmul.f32 1.442695, %v1343_v45 }
 0x4b8   :  { %6504 = vrot.lane.b32.xlu1 %v7112_v43, %s6776_s27  ;;  %6590 = vpow2.f32 %v1368_v36 }
 0x4c2   :  { %v7260_v49 = vpop.eup %6590 }
 0x4c3   :  { %v1409_v53 = vsel %vm1288_vm8, %v7260_v49, 0.0 }
 0x4d5   :  { %1383 = vadd.xlane.f32.xlu0 %v1382_v32 }
 0x4d9   :  { %1407 = vadd.xlane.f32.xlu0 %v1406_v30 }
 0x4dc   :  { %1386 = vadd.xlane.f32.xlu1 %v1385_v35 }
 0x4e0   :  { %1410 = vadd.xlane.f32.xlu1 %v1409_v53 }
 0x50b   :  { %v1297_v54 = vpop.xlane.xlu0 %1296 }
 0x50c   :  { %v1337_v55 = vsub.f32 %v7188_v42, %v1297_v54 }
 0x50e   :  { %v1356_v56 = vmul.f32 1.442695, %v1337_v55 }
 0x50f   :  { %v1294_v58 = vpop.xlane.xlu0 %1293 }
 0x510   :  { %6592 = vpow2.f32 %v1356_v56  ;;  %v1336_v62 = vsub.f32 %v7190_v46, %v1294_v58 }
 0x512   :  { %v1354_v1 = vmul.f32 1.442695, %v1336_v62 }
 0x514   :  { %6594 = vpow2.f32 %v1354_v1 }
 0x51a   :  { %v7266_v4 = vpop.eup %6592 }
 0x51b   :  { %v1391_v5 = vsel %vm1288_vm8, %v7266_v4, 0.0 }
 0x51c   :  { %v1327_v7 = vpop.xlane.xlu1 %1326  ;;  %1392 = vadd.xlane.f32.xlu1 %v1391_v5 }
 0x51d   :  { %v1347_v8 = vsub.f32 %v7196_v57, %v1327_v7  ;;  %v1324_v10 = vpop.xlane.xlu0 %1323 }
 0x51e   :  { %v7271_v13 = vpop.eup %6594  ;;  %v1346_v42 = vsub.f32 %v7198_v59, %v1324_v10 }
 0x51f   :  { %v1376_v19 = vmul.f32 1.442695, %v1347_v8  ;;  %v1388_v46 = vsel %vm1284_vm9, %v7271_v13, 0.0 }
 0x520   :  { %v1374_v20 = vmul.f32 1.442695, %v1346_v42  ;;  %v1303_v23 = vpop.xlane.xlu1 %1302  ;;  %1389 = vadd.xlane.f32.xlu0 %v1388_v46 }
 0x521   :  { %6596 = vpow2.f32 %v1376_v19  ;;  %v1339_v24 = vsub.f32 %v7200_v60, %v1303_v23  ;;  %v1300_v26 = vpop.xlane.xlu0 %1299 }
 0x522   :  { %6598 = vpow2.f32 %v1374_v20  ;;  %v1338_v27 = vsub.f32 %v7204_v63, %v1300_v26 }
 0x523   :  { %v1360_v57 = vmul.f32 1.442695, %v1339_v24 }
 0x524   :  { %v1358_v28 = vmul.f32 1.442695, %v1338_v27  ;;  %v1309_v29 = vpop.xlane.xlu1 %1308 }
 0x525   :  { %6600 = vpow2.f32 %v1360_v57  ;;  %v1341_v59 = vsub.f32 %v7208_v2, %v1309_v29  ;;  %v1306_v31 = vpop.xlane.xlu0 %1305 }
 0x526   :  { %6602 = vpow2.f32 %v1358_v28  ;;  %v1340_v33 = vsub.f32 %v7212_v6, %v1306_v31 }
 0x527   :  { %v1364_v16 = vmul.f32 1.442695, %v1341_v59 }
 0x528   :  { %v1362_v34 = vmul.f32 1.442695, %v1340_v33  ;;  %v1321_v37 = vpop.xlane.xlu1 %1320 }
 0x529   :  { %6604 = vpow2.f32 %v1364_v16  ;;  %v1345_v60 = vsub.f32 %v7216_v9, %v1321_v37  ;;  %v1318_v39 = vpop.xlane.xlu0 %1317 }
 0x52a   :  { %6606 = vpow2.f32 %v1362_v34  ;;  %v1344_v63 = vsub.f32 %v7220_v11, %v1318_v39 }
 0x52b   :  { %v7282_v40 = vpop.eup %6596  ;;  %v1372_v41 = vmul.f32 1.442695, %v1345_v60 }
 0x52c   :  { %v7284_v45 = vpop.eup %6598  ;;  %v1370_v2 = vmul.f32 1.442695, %v1344_v63  ;;  %v1333_v36 = vpop.xlane.xlu1 %1332  ;;  %v1421_v6 = vsel %vm1288_vm8, %v7282_v40, 0.0 }
 0x52d   :  { %6608 = vpow2.f32 %v1372_v41  ;;  %v1349_v32 = vsub.f32 %v7226_v21, %v1333_v36  ;;  %1422 = vadd.xlane.f32.xlu1 %v1421_v6  ;;  %v1330_v30 = vpop.xlane.xlu0 %1329  ;;  %v1418_v9 = vsel %vm1284_vm9, %v7284_v45, 0.0 }
 0x52e   :  { %6610 = vpow2.f32 %v1370_v2  ;;  %v1348_v11 = vsub.f32 %v7230_v25, %v1330_v30  ;;  %1419 = vadd.xlane.f32.xlu0 %v1418_v9 }
 0x52f   :  { %v7292_v35 = vpop.eup %6600  ;;  %v1380_v53 = vmul.f32 1.442695, %v1349_v32 }
 0x530   :  { %v7294_v54 = vpop.eup %6602  ;;  %v1378_v55 = vmul.f32 1.442695, %v1348_v11  ;;  %v6495_v56 = vpop.permute.xlu1 %6494  ;;  %v1397_v58 = vsel %vm1288_vm8, %v7292_v35, 0.0 }
 0x531   :  { %6612 = vpow2.f32 %v1380_v53  ;;  %v6497_v21 = vunpack.i.h.bf16 %v6495_v56  ;;  %v6496_v62 = vunpack.i.l.bf16 %v6495_v56  ;;  %1398 = vadd.xlane.f32.xlu1 %v1397_v58  ;;  %v6490_v1 = vpop.permute.xlu0 %6489  ;;  %v1394_v5 = vsel %vm1284_vm9, %v7294_v54, 0.0 }
 0x532   :  { %6614 = vpow2.f32 %v1378_v55  ;;  %v6492_v25 = vunpack.i.h.bf16 %v6490_v1  ;;  %v6491_v7 = vunpack.i.l.bf16 %v6490_v1  ;;  %1395 = vadd.xlane.f32.xlu0 %v1394_v5 }
 0x533   :  { %v7300_v8 = vpop.eup %6604  ;;  %v6213_v10 = vpack.c.bf16 %v6497_v21, %v6496_v62 }
 0x534   :  { %v7302_v42 = vpop.eup %6606  ;;  %v6207_v19 = vpack.c.bf16 %v6492_v25, %v6491_v7  ;;  %v1403_v46 = vsel %vm1288_vm8, %v7300_v8, 0.0  ;;  %v6500_v31 = vpop.permute.xlu1 %6499 }
 0x535   :  { %1404 = vadd.xlane.f32.xlu1 %v1403_v46  ;;  %6215 = vmatprep.subr.msk.bf16.mxu1 %vm7139_vm7, %v6213_v10  ;;  %v1400_v20 = vsel %vm1284_vm9, %v7302_v42, 0.0  ;;  %v6502_v39 = vunpack.i.h.bf16 %v6500_v31  ;;  %v6501_v63 = vunpack.i.l.bf16 %v6500_v31 }
 0x536   :  { %6218 = vmatpush3.bf16.msk.msra.mxu1 %vm7139_vm7, %v6213_v10  ;;  %1401 = vadd.xlane.f32.xlu0 %v1400_v20 }
 0x537   :  { %v7312_v23 = vpop.eup %6608  ;;  %6209 = vmatprep.subr.msk.bf16.mxu0 %vm7139_vm7, %v6207_v19  ;;  %6227 = vmatprep.subr.msk.bf16.mxu1 %vm7139_vm7, %v7114_v44  ;;  %v6219_v36 = vpack.c.bf16 %v6502_v39, %v6501_v63 }
 0x538   :  { %v7319_v24 = vpop.eup %6610  ;;  %v1415_v26 = vsel %vm1288_vm8, %v7312_v23, 0.0  ;;  %v6505_v16 = vpop.permute.xlu1 %6504 }
 0x539   :  { %1416 = vadd.xlane.f32.xlu1 %v1415_v26  ;;  %v1412_v27 = vsel %vm1284_vm9, %v7319_v24, 0.0  ;;  %v6507_v11 = vunpack.i.h.bf16 %v6505_v16  ;;  %v6506_v53 = vunpack.i.l.bf16 %v6505_v16 }
 0x53a   :  { %1413 = vadd.xlane.f32.xlu0 %v1412_v27 }
 0x53b   :  { %v7325_v57 = vpop.eup %6612  ;;  %v6231_v21 = vpack.c.bf16 %v6507_v11, %v6506_v53  ;;  %v166_v11 = vld [vmem:[%s8241_s4 + $0x68] sm:$0xff] }
 0x53c   :  { %v7327_v28 = vpop.eup %6614  ;;  %v1427_v29 = vsel %vm1288_vm8, %v7325_v57, 0.0 }
 0x53d   :  { %1428 = vadd.xlane.f32.xlu1 %v1427_v29  ;;  %v1424_v59 = vsel %vm1284_vm9, %v7327_v28, 0.0 }
 0x53e   :  { %1425 = vadd.xlane.f32.xlu0 %v1424_v59 }
 0x54e   :  { %6514 = vrot.lane.b32.xlu1 %v7112_v43, %s6778_s29 }
 0x554   :  { %6509 = vrot.lane.b32.xlu0 %v7112_v43, %s6777_s28 }
 0x562   :  { %v1384_v33 = vpop.xlane.xlu0 %1383 }
 0x563   :  { %6616 = vrcp.f32 %v1384_v33 }
 0x566   :  { %v1408_v6 = vpop.xlane.xlu0 %1407 }
 0x569   :  { %v1387_v34 = vpop.xlane.xlu1 %1386 }
 0x56a   :  { %6618 = vrcp.f32 %v1387_v34 }
 0x56d   :  { %v6617_v37 = vpop.eup %6616  ;;  %v1411_v43 = vpop.xlane.xlu1 %1410 }
 0x56e   :  { %v1446_v60 = vmul.f32 %v6617_v37, %v7248_v47 }
 0x570   :  { %5712 = vmatprep.mubr.msk.f32.mxu0 %vm1284_vm9, %v1446_v60 }
 0x574   :  { %v6619_v41 = vpop.eup %6618 }
 0x575   :  { %v1447_v2 = vmul.f32 %v6619_v41, %v7254_v38 }
 0x577   :  { %5713 = vmatmul.mubr.msk.f32.vlgmr.msra.gmra.mrb[6].mxu0 %vm1284_vm9, %v1447_v2 }
 0x578   :  { %6212 = vmatpush3.bf16.msk.msra.mxu0 %vm7139_vm7, %v6207_v19 }
 0x579   :  { %6221 = vmatprep.subr.msk.bf16.mxu0 %vm7139_vm7, %v6219_v36 }
 0x5a9   :  { %v1393_v32 = vpop.xlane.xlu1 %1392 }
 0x5aa   :  { %6620 = vrcp.f32 %v1393_v32 }
 0x5ad   :  { %v1390_v47 = vpop.xlane.xlu0 %1389 }
 0x5ae   :  { %6622 = vrcp.f32 %v1390_v47 }
 0x5af   :  { %6624 = vrcp.f32 %v1408_v6 }
 0x5b4   :  { %v6621_v30 = vpop.eup %6620 }
 0x5b5   :  { %v1449_v56 = vmul.f32 %v6621_v30, %v7266_v4 }
 0x5b8   :  { %v6623_v9 = vpop.eup %6622 }
 0x5b9   :  { %v1448_v38 = vmul.f32 %v6623_v9, %v7271_v13  ;;  %v6625_v7 = vpop.eup %6624 }
 0x5ba   :  { %v1423_v55 = vpop.xlane.xlu1 %1422  ;;  %v1454_v33 = vmul.f32 %v6625_v7, %v7252_v48 }
 0x5bb   :  { %v1420_v58 = vpop.xlane.xlu0 %1419  ;;  %5719 = vmatprep.mubr.msk.f32.mxu0 %vm1284_vm9, %v1448_v38  ;;  %v167_v38 = vld [vmem:[%s8241_s4 + $0x70] sm:$0xff] }
 0x5bc   :  { %5720 = vmatmul.mubr.msk.f32.vlgmr.msra.gmra.mrb[8].mxu0 %vm1284_vm9, %v1449_v56 }
 0x5bd   :  { %6224 = vmatpush3.bf16.msk.msra.mxu0 %vm7139_vm7, %v6219_v36 }
 0x5be   :  { %v1399_v62 = vpop.xlane.xlu1 %1398  ;;  %6233 = vmatprep.subr.msk.bf16.mxu0 %vm7139_vm7, %v6231_v21 }
 0x5bf   :  { %6626 = vrcp.f32 %v1399_v62  ;;  %v1396_v1 = vpop.xlane.xlu0 %1395 }
 0x5c0   :  { %6628 = vrcp.f32 %v1396_v1 }
 0x5c1   :  { %6630 = vrcp.f32 %v1411_v43 }
 0x5c2   :  { %6632 = vrcp.f32 %v1420_v58  ;;  %v1405_v4 = vpop.xlane.xlu1 %1404 }
 0x5c3   :  { %6634 = vrcp.f32 %v1405_v4  ;;  %v1402_v13 = vpop.xlane.xlu0 %1401 }
 0x5c4   :  { %6636 = vrcp.f32 %v1402_v13 }
 0x5c6   :  { %v1417_v5 = vpop.xlane.xlu1 %1416 }
 0x5c7   :  { %6638 = vrcp.f32 %v1417_v5  ;;  %v1414_v25 = vpop.xlane.xlu0 %1413 }
 0x5c8   :  { %6640 = vrcp.f32 %v1414_v25 }
 0x5c9   :  { %v6627_v10 = vpop.eup %6626  ;;  %6642 = vrcp.f32 %v1423_v55  ;;  %v168_v55 = vld [vmem:[%s8241_s4 + $0x78] sm:$0xff] }
 0x5ca   :  { %v6629_v19 = vpop.eup %6628  ;;  %v1429_v46 = vpop.xlane.xlu1 %1428  ;;  %v1451_v59 = vmul.f32 %v6627_v10, %v7292_v35  ;;  %v6253_v56 = vpack.c.bf16 %v168_v55, %v167_v38 }
 0x5cb   :  { %v6631_v20 = vpop.eup %6630  ;;  %6644 = vrcp.f32 %v1429_v46  ;;  %v1426_v26 = vpop.xlane.xlu0 %1425  ;;  %v1450_v27 = vmul.f32 %v6629_v19, %v7294_v54 }
 0x5cc   :  { %v6633_v29 = vpop.eup %6632  ;;  %6646 = vrcp.f32 %v1426_v26  ;;  %v1455_v48 = vmul.f32 %v6631_v20, %v7260_v49 }
 0x5cd   :  { %v6635_v31 = vpop.eup %6634  ;;  %5726 = vmatprep.mubr.msk.f32.mxu1 %vm1284_vm9, %v1450_v27  ;;  %v1458_v43 = vmul.f32 %v6633_v29, %v7284_v45 }
 0x5ce   :  { %v6637_v16 = vpop.eup %6636  ;;  %v6515_v34 = vpop.permute.xlu1 %6514  ;;  %5727 = vmatmul.mubr.msk.f32.vlgmr.msra.gmra.mrb[30].mxu1 %vm1284_vm9, %v1451_v59  ;;  %v1453_v41 = vmul.f32 %v6635_v31, %v7300_v8 }
 0x5cf   :  { %v6517_v37 = vunpack.i.h.bf16 %v6515_v34  ;;  %v6516_v60 = vunpack.i.l.bf16 %v6515_v34  ;;  %6230 = vmatpush3.bf16.msk.msra.mxu1 %vm7139_vm7, %v7114_v44  ;;  %5740 = vmatprep.mubr.msk.f32.mxu1 %vm1284_vm9, %v1454_v33  ;;  %v6510_v54 = vpop.permute.xlu0 %6509  ;;  %v1452_v35 = vmul.f32 %v6637_v16, %v7302_v42 }
 0x5d0   :  { %v6512_v39 = vunpack.i.h.bf16 %v6510_v54  ;;  %v6511_v63 = vunpack.i.l.bf16 %v6510_v54 }
 0x5d1   :  { %v6639_v2 = vpop.eup %6638  ;;  %v6243_v36 = vpack.c.bf16 %v6517_v37, %v6516_v60  ;;  %5733 = vmatprep.mubr.msk.f32.mxu0 %vm1284_vm9, %v1452_v35 }
 0x5d2   :  { %v6641_v6 = vpop.eup %6640  ;;  %v6237_v32 = vpack.c.bf16 %v6512_v39, %v6511_v63  ;;  %5734 = vmatmul.mubr.msk.f32.vlgmr.msra.gmra.mrb[10].mxu0 %vm1284_vm9, %v1453_v41  ;;  %5741 = vmatmul.mubr.msk.f32.vlgmr.msra.gmra.mrb[32].mxu1 %vm1284_vm9, %v1455_v48  ;;  %v1457_v45 = vmul.f32 %v6639_v2, %v7312_v23 }
 0x5d3   :  { %v6643_v44 = vpop.eup %6642  ;;  %6236 = vmatpush3.bf16.msk.msra.mxu0 %vm7139_vm7, %v6231_v21  ;;  %5754 = vmatprep.mubr.msk.f32.mxu1 %vm1284_vm9, %v1458_v43  ;;  %v1456_v49 = vmul.f32 %v6641_v6, %v7319_v24 }
 0x5d4   :  { %6245 = vmatprep.subr.msk.bf16.mxu0 %vm7139_vm7, %v6243_v36  ;;  %6239 = vmatprep.subr.msk.bf16.mxu1 %vm7139_vm7, %v6237_v32  ;;  %v1459_v47 = vmul.f32 %v6643_v44, %v7282_v40 }
 0x5d5   :  { %v6645_v8 = vpop.eup %6644  ;;  %5747 = vmatprep.mubr.msk.f32.mxu0 %vm1284_vm9, %v1456_v49  ;;  %6242 = vmatpush3.bf16.msk.msra.mxu1 %vm7139_vm7, %v6237_v32 }
 0x5d6   :  { %v6647_v42 = vpop.eup %6646  ;;  %5748 = vmatmul.mubr.msk.f32.vlgmr.msra.gmra.mrb[12].mxu0 %vm1284_vm9, %v1457_v45  ;;  %6249 = vmatprep.subr.bf16.mxu1 %v6773_v3  ;;  %v1461_v23 = vmul.f32 %v6645_v8, %v7325_v57  ;;  %v165_v57 = vld [vmem:[%s8241_s4 + $0x60] sm:$0xff] }
 0x5d7   :  { %6248 = vmatpush3.bf16.msk.msra.mxu0 %vm7139_vm7, %v6243_v36  ;;  %v1460_v24 = vmul.f32 %v6647_v42, %v7327_v28  ;;  %v6250_v53 = vpack.c.bf16 %v166_v11, %v165_v57 }
 0x5d8   :  { %5755 = vmatmul.mubr.msk.f32.vlgmr.msra.gmra.mrb[34].mxu1 %vm1284_vm9, %v1459_v47  ;;  %6255 = vmatprep.subr.bf16.mxu0 %v6773_v3 }
 0x5d9   :  { %5761 = vmatprep.mubr.msk.f32.mxu0 %vm1284_vm9, %v1460_v24  ;;  %5772 = vmatprep.mubr.msk.f32.mxu1 %vm6774_vm3, %v6775_v61  ;;  %v2288_v24 = vsub.s32 5, %v6981_v14 }
 0x5da   :  { %5762 = vmatmul.mubr.msk.f32.vlgmr.msra.gmra.mrb[14].mxu0 %vm1284_vm9, %v1461_v23  ;;  %6251 = vmatpush3.bf16.msra.mxu1 %v6250_v53  ;;  %v7449_v23 = vld [vmem:[%s8244_s7] sm:$0xff] }
 0x5db   :  { %5789 = vmatprep.mubr.msk.f32.mxu0 %vm6774_vm3, %v6775_v61  ;;  %6252 = vmatprep.subr.bf16.mxu1 %v6773_v3 }
 0x5de   :  { %6254 = vmatpush3.bf16.msra.mxu1 %v6253_v56 }
 0x5df   :  { %6261 = vmatprep.subr.bf16.mxu1 %v6773_v3 }
 0x64a   :  { %v5714_v40 = vpop.f32.mrb[6].mxu0 }
 0x64b   :  { %v1536_v30 = vpop.f32.mrb[7].mxu0 }
 0x68f   :  { %v5721_v9 = vpop.f32.mrb[8].mxu0 }
 0x690   :  { %2130 = vrot.lane.b32.xlu1 %v5721_v9, %s6780_s30  ;;  %v1619_v28 = vpop.f32.mrb[9].mxu0  ;;  %v6747_v9 = vld [vmem:[%s8237_s0] sm:$0xff] }
 0x691   :  { %2128 = vrot.lane.b32.xlu0 %v1619_v28, %s6780_s30 }
 0x6a1   :  { %v5728_v58 = vpop.f32.mrb[30].mxu1 }
 0x6a2   :  { %v1702_v21 = vpop.f32.mrb[31].mxu1  ;;  %2138 = vrot.lane.b32.xlu1 %v5728_v58, %s6781_s21 }
 0x6a5   :  { %v5735_v62 = vpop.f32.mrb[10].mxu0  ;;  %v5742_v1 = vpop.f32.mrb[32].mxu1 }
 0x6a6   :  { %v1868_v4 = vpop.f32.mrb[33].mxu1  ;;  %2136 = vrot.lane.b32.xlu1 %v1702_v21, %s6781_s21  ;;  %2146 = vrot.lane.b32.xlu0 %v5735_v62, %s6782_s22  ;;  %v1785_v13 = vpop.f32.mrb[11].mxu0 }
 0x6a9   :  { %v5749_v5 = vpop.f32.mrb[12].mxu0 }
 0x6aa   :  { %2144 = vrot.lane.b32.xlu1 %v1785_v13, %s6782_s22  ;;  %v1951_v25 = vpop.f32.mrb[13].mxu0 }
 0x6ab   :  { %v5756_v7 = vpop.f32.mrb[34].mxu1 }
 0x6ac   :  { %v2034_v10 = vpop.f32.mrb[35].mxu1 }
 0x6ad   :  { %2168 = vrot.lane.b32.xlu0 %v2034_v10, %s6781_s21  ;;  %v5763_v19 = vpop.f32.mrb[14].mxu0 }
 0x6ae   :  { %2162 = vrot.lane.b32.xlu1 %v5749_v5, %s6780_s30  ;;  %v2117_v46 = vpop.f32.mrb[15].mxu0 }
 0x6b1   :  { %2160 = vrot.lane.b32.xlu0 %v1951_v25, %s6780_s30 }
 0x6b2   :  { %2178 = vrot.lane.b32.xlu1 %v5763_v19, %s6782_s22 }
 0x6b5   :  { %2176 = vrot.lane.b32.xlu0 %v2117_v46, %s6782_s22 }
 0x6b9   :  { %2170 = vrot.lane.b32.xlu0 %v5756_v7, %s6781_s21 }
 0x702   :  { %v2131_v20 = vpop.permute.xlu1 %2130 }
 0x703   :  { %v2129_v27 = vpop.permute.xlu0 %2128  ;;  %v2151_v41 = vsel %vm603_vm4, %v5714_v40, %v2131_v20  ;;  %v2289_v40 = vrot.slane %v7449_v23, %v2288_v24 }
 0x704   :  { %v2150_v59 = vsel %vm603_vm4, %v1536_v30, %v2129_v27 }
 0x714   :  { %v2139_v26 = vpop.permute.xlu1 %2138 }
 0x715   :  { %v2154_v2 = vsel %vm2152_vm10, %v2151_v41, %v2139_v26  ;;  %v175_v41 = vld [vmem:[%s8243_s6 + $0x8] sm:$0xff] }
 0x718   :  { %v2137_v29 = vpop.permute.xlu1 %2136  ;;  %v2147_v31 = vpop.permute.xlu0 %2146 }
 0x719   :  { %v2153_v33 = vsel %vm2152_vm10, %v2150_v59, %v2137_v29  ;;  %v2157_v43 = vsel %vm2155_vm11, %v2154_v2, %v2147_v31 }
 0x71c   :  { %v2145_v16 = vpop.permute.xlu1 %2144 }
 0x71d   :  { %v2156_v34 = vsel %vm2155_vm11, %v2153_v33, %v2145_v16 }
 0x71e   :  { %5773 = vmatmul.mubr.msk.f32.vlgmr.msra.gmra.mrb[36].mxu1 %vm190_vm1, %v2156_v34  ;;  %v169_v34 = vld [vmem:[%s8242_s5] sm:$0xff] }
 0x71f   :  { %v2169_v37 = vpop.permute.xlu0 %2168  ;;  %5775 = vmatprep.mubr.msk.f32.mxu1 %vm6774_vm3, %v6775_v61 }
 0x720   :  { %v2163_v35 = vpop.permute.xlu1 %2162 }
 0x721   :  { %v2183_v6 = vsel %vm603_vm4, %v5742_v1, %v2163_v35  ;;  %v172_v35 = vld [vmem:[%s8242_s5 + $0x18] sm:$0xff] }
 0x723   :  { %v2161_v60 = vpop.permute.xlu0 %2160 }
 0x724   :  { %v2182_v54 = vsel %vm603_vm4, %v1868_v4, %v2161_v60  ;;  %v2179_v49 = vpop.permute.xlu1 %2178 }
 0x725   :  { %v2184_v39 = vsel %vm2152_vm10, %v2182_v54, %v2169_v37  ;;  %v170_v37 = vld [vmem:[%s8242_s5 + $0x8] sm:$0xff]  ;;  %v171_v54 = vld [vmem:[%s8242_s5 + $0x10] sm:$0xff] }
 0x726   :  { %v6256_v60 = vpack.c.bf16 %v170_v37, %v169_v34  ;;  %v187_v34 = vld [vmem:[%s8243_s6 + $0x68] sm:$0xff] }
 0x727   :  { %v2177_v63 = vpop.permute.xlu0 %2176 }
 0x728   :  { %v2186_v48 = vsel %vm2155_vm11, %v2184_v39, %v2177_v63  ;;  %6257 = vmatpush3.bf16.msra.mxu0 %v6256_v60  ;;  %v6259_v39 = vpack.c.bf16 %v172_v35, %v171_v54  ;;  %v174_v63 = vld [vmem:[%s8243_s6] sm:$0xff]  ;;  %v188_v60 = vld [vmem:[%s8243_s6 + $0x70] sm:$0xff]  ;;  %v189_v54 = vld [vmem:[%s8243_s6 + $0x78] sm:$0xff] }
 0x729   :  { %v2190_v36 = vrot.slane %v2186_v48, 4  ;;  %6258 = vmatprep.subr.bf16.mxu0 %v6773_v3  ;;  %v6262_v48 = vpack.c.bf16 %v175_v41, %v174_v63  ;;  %v6283_v35 = vpack.c.bf16 %v189_v54, %v188_v60 }
 0x72b   :  { %v2171_v32 = vpop.permute.xlu0 %2170  ;;  %v2194_v44 = vsel %vm148_vm2, %v2157_v43, %v2190_v36  ;;  %6263 = vmatpush3.bf16.msra.mxu1 %v6262_v48 }
 0x72c   :  { %v2185_v45 = vsel %vm2152_vm10, %v2183_v6, %v2171_v32  ;;  %5776 = vmatmul.mubr.msk.f32.gmra.mrb[38].mxu1 %vm190_vm1, %v2194_v44  ;;  %6260 = vmatpush3.bf16.msra.mxu0 %v6259_v39  ;;  %v2334_v6 = vsub.s32 6, %v6981_v14  ;;  %v2341_v32 = vsub.s32 7, %v6981_v14  ;;  %v5238_v39 = vld [vmem:[%s8245_s8] ss:$0 sm:$0xff] }
 0x72d   :  { %v2187_v8 = vsel %vm2155_vm11, %v2185_v45, %v2179_v49  ;;  %5778 = vmatprep.mubr.msk.f32.mxu1 %vm6774_vm3, %v6775_v61  ;;  %6285 = vmatprep.subr.bf16.mxu0 %v6773_v3 }
 0x72e   :  { %v2191_v42 = vrot.slane %v2187_v8, 4  ;;  %6264 = vmatprep.subr.bf16.mxu1 %v6773_v3  ;;  %v2335_v49 = vrot.slane %v7449_v23, %v2334_v6 }
 0x730   :  { %v2192_v47 = vsel %vm148_vm2, %v2190_v36, %v2191_v42 }
 0x731   :  { %5779 = vmatmul.mubr.msk.f32.gmra.mrb[40].mxu1 %vm190_vm1, %v2192_v47  ;;  %v2342_v47 = vrot.slane %v7449_v23, %v2341_v32 }
 0x732   :  { %5830 = vmatprep.mubr.msk.f32.mxu1 %vm6774_vm3, %v6775_v61 }
 0x7f1   :  { %v2269_v30 = vpop.f32.mrb[36].mxu1 }
 0x7f2   :  { %v2283_v28 = vadd.f32 %v6747_v9, %v2269_v30  ;;  %v5774_v57 = vpop.f32.mrb[37].mxu1 }
 0x7f4   :  { %v7457_v11 = vadd.f32 %v2289_v40, %v2283_v28 }
 0x7f6   :  { %v2293_v53 = vsel %vm190_vm1, %v7457_v11, 0.0 }
 0x7f7   :  { %2294 = vadd.xlane.f32.xlu0 %v2293_v53 }
 0x7ff   :  { %v2274_v38 = vpop.f32.mrb[38].mxu1 }
 0x800   :  { %v2284_v55 = vadd.f32 %v2274_v38, %v6954_v52  ;;  %v5777_v56 = vpop.f32.mrb[39].mxu1 }
 0x802   :  { %v7462_v58 = vadd.f32 %v2289_v40, %v2284_v55 }
 0x804   :  { %v2279_v21 = vpop.f32.mrb[40].mxu1  ;;  %v2296_v62 = vsel %vm190_vm1, %v7462_v58, 0.0 }
 0x805   :  { %v2285_v1 = vadd.f32 %v2279_v21, %v6951_v51  ;;  %2297 = vadd.xlane.f32.xlu1 %v2296_v62  ;;  %v5780_v4 = vpop.f32.mrb[41].mxu1 }
 0x807   :  { %v7467_v13 = vadd.f32 %v2289_v40, %v2285_v1 }
 0x809   :  { %v2299_v5 = vsel %vm190_vm1, %v7467_v13, 0.0 }
 0x80a   :  { %2300 = vadd.xlane.f32.xlu0 %v2299_v5  ;;  %v176_v5 = vld [vmem:[%s8243_s6 + $0x10] sm:$0xff] }
 0x884   :  { %v2295_v25 = vpop.xlane.xlu0 %2294 }
 0x885   :  { %v2302_v7 = vmul.f32 0.03125, %v2295_v25  ;;  %v177_v25 = vld [vmem:[%s8243_s6 + $0x18] sm:$0xff] }
 0x887   :  { %v2305_v52 = vsub.f32 %v7457_v11, %v2302_v7  ;;  %v6265_v7 = vpack.c.bf16 %v177_v25, %v176_v5 }
 0x889   :  { %v2308_v10 = vmul.f32 %v2305_v52, %v2305_v52  ;;  %6266 = vmatpush3.bf16.msra.mxu1 %v6265_v7 }
 0x88a   :  { %6267 = vmatprep.subr.bf16.mxu1 %v6773_v3 }
 0x88b   :  { %v2311_v19 = vsel %vm190_vm1, %v2308_v10, 0.0  ;;  %v179_v10 = vld [vmem:[%s8243_s6 + $0x28] sm:$0xff] }
 0x88c   :  { %2312 = vadd.xlane.f32.xlu0 %v2311_v19 }
 0x892   :  { %v2298_v46 = vpop.xlane.xlu1 %2297 }
 0x893   :  { %v2303_v20 = vmul.f32 0.03125, %v2298_v46  ;;  %v180_v46 = vld [vmem:[%s8243_s6 + $0x30] sm:$0xff] }
 0x895   :  { %v2306_v51 = vsub.f32 %v7462_v58, %v2303_v20  ;;  %v181_v20 = vld [vmem:[%s8243_s6 + $0x38] sm:$0xff] }
 0x897   :  { %v2301_v26 = vpop.xlane.xlu0 %2300  ;;  %v2309_v27 = vmul.f32 %v2306_v51, %v2306_v51 }
 0x898   :  { %v2304_v29 = vmul.f32 0.03125, %v2301_v26  ;;  %v182_v26 = vld [vmem:[%s8243_s6 + $0x40] sm:$0xff] }
 0x899   :  { %v2314_v59 = vsel %vm190_vm1, %v2309_v27, 0.0  ;;  %v183_v27 = vld [vmem:[%s8243_s6 + $0x48] sm:$0xff] }
 0x89a   :  { %v2307_v31 = vsub.f32 %v7467_v13, %v2304_v29  ;;  %2315 = vadd.xlane.f32.xlu0 %v2314_v59  ;;  %v6274_v29 = vpack.c.bf16 %v183_v27, %v182_v26  ;;  %v184_v59 = vld [vmem:[%s8243_s6 + $0x50] sm:$0xff]  ;;  %v152_v27 = vld [vmem:[%s8244_s7 + $0x8] sm:$0xff] }
 0x89c   :  { %v2310_v33 = vmul.f32 %v2307_v31, %v2307_v31 }
 0x89e   :  { %v2317_v16 = vsel %vm190_vm1, %v2310_v33, 0.0 }
 0x89f   :  { %2318 = vadd.xlane.f32.xlu1 %v2317_v16  ;;  %v186_v16 = vld [vmem:[%s8243_s6 + $0x60] sm:$0xff] }
 0x8a0   :  { %v6280_v37 = vpack.c.bf16 %v187_v34, %v186_v16 }
 0x919   :  { %v2313_v2 = vpop.xlane.xlu0 %2312 }
 0x91a   :  { %v2320_v36 = vmul.f32 0.03125, %v2313_v2 }
 0x91c   :  { %v2323_v43 = vadd.f32 1e-12, %v2320_v36 }
 0x91e   :  { %6648 = vrsqrt.f32 %v2323_v43 }
 0x927   :  { %v2316_v44 = vpop.xlane.xlu0 %2315 }
 0x928   :  { %v6649_v45 = vpop.eup %6648  ;;  %v2321_v8 = vmul.f32 0.03125, %v2316_v44 }
 0x929   :  { %v2329_v42 = vmul.f32 %v6649_v45, %v2305_v52  ;;  %v178_v52 = vld [vmem:[%s8243_s6 + $0x20] sm:$0xff] }
 0x92a   :  { %v2324_v40 = vadd.f32 1e-12, %v2321_v8  ;;  %v6268_v19 = vpack.c.bf16 %v179_v10, %v178_v52 }
 0x92b   :  { %v2336_v30 = vmul.f32 %v2335_v49, %v2329_v42 }
 0x92c   :  { %6650 = vrsqrt.f32 %v2324_v40  ;;  %v2319_v9 = vpop.xlane.xlu1 %2318  ;;  %6269 = vmatpush3.bf16.msra.mxu1 %v6268_v19 }
 0x92d   :  { %v2322_v28 = vmul.f32 0.03125, %v2319_v9  ;;  %v2343_v57 = vadd.f32 %v2342_v47, %v2336_v30  ;;  %6270 = vmatprep.subr.bf16.mxu1 %v6773_v3 }
 0x92f   :  { %v2325_v53 = vadd.f32 1e-12, %v2322_v28  ;;  %5790 = vmatmul.mubr.msk.f32.vlgmr.msra.gmra.mrb[16].mxu0 %vm190_vm1, %v2343_v57 }
 0x930   :  { %5792 = vmatprep.mubr.msk.f32.mxu0 %vm6774_vm3, %v6775_v61 }
 0x931   :  { %6652 = vrsqrt.f32 %v2325_v53 }
 0x936   :  { %v6651_v38 = vpop.eup %6650 }
 0x937   :  { %v2330_v55 = vmul.f32 %v6651_v38, %v2306_v51  ;;  %v6271_v51 = vpack.c.bf16 %v181_v20, %v180_v46 }
 0x939   :  { %v2337_v56 = vmul.f32 %v2335_v49, %v2330_v55  ;;  %6272 = vmatpush3.bf16.msra.mxu1 %v6271_v51 }
 0x93a   :  { %6273 = vmatprep.subr.bf16.mxu1 %v6773_v3 }
 0x93b   :  { %v6653_v21 = vpop.eup %6652  ;;  %v2344_v62 = vadd.f32 %v2342_v47, %v2337_v56 }
 0x93c   :  { %v2331_v1 = vmul.f32 %v6653_v21, %v2307_v31  ;;  %v185_v31 = vld [vmem:[%s8243_s6 + $0x58] sm:$0xff] }
 0x93d   :  { %5793 = vmatmul.mubr.msk.f32.gmra.mrb[18].mxu0 %vm190_vm1, %v2344_v62  ;;  %6275 = vmatpush3.bf16.msra.mxu1 %v6274_v29  ;;  %v6277_v33 = vpack.c.bf16 %v185_v31, %v184_v59  ;;  %v2554_v29 = vrot.slane %v152_v27, %v6984_v15 }
 0x93e   :  { %5795 = vmatprep.mubr.msk.f32.mxu0 %vm6774_vm3, %v6775_v61  ;;  %v2338_v23 = vmul.f32 %v2335_v49, %v2331_v1  ;;  %6276 = vmatprep.subr.bf16.mxu1 %v6773_v3 }
 0x940   :  { %v2345_v4 = vadd.f32 %v2342_v47, %v2338_v23 }
 0x941   :  { %6278 = vmatpush3.bf16.msra.mxu1 %v6277_v33 }
 0x942   :  { %5796 = vmatmul.mubr.msk.f32.gmra.mrb[20].mxu0 %vm190_vm1, %v2345_v4  ;;  %6279 = vmatprep.subr.bf16.mxu1 %v6773_v3 }
 0x943   :  { %5847 = vmatprep.mubr.msk.f32.mxu0 %vm6774_vm3, %v6775_v61 }
 0x945   :  { %6281 = vmatpush3.bf16.msra.mxu1 %v6280_v37 }
 0x946   :  { %6282 = vmatprep.subr.bf16.mxu1 %v6773_v3 }
 0x949   :  { %6284 = vmatpush3.bf16.msra.mxu1 %v6283_v35 }
 0xa02   :  { %v2427_v63 = vpop.f32.mrb[16].mxu0 }
 0xa03   :  { %v2428_v41 = vadd.f32 %v5238_v39, %v2427_v63  ;;  %v5791_v48 = vpop.f32.mrb[17].mxu0 }
 0xa05   :  { %v2441_v2 = vmul.f32 %v2428_v41, %v2428_v41 }
 0xa07   :  { %v2444_v36 = vmul.f32 %v2441_v2, %v2428_v41 }
 0xa09   :  { %v2447_v43 = vmul.f32 0.044715, %v2444_v36 }
 0xa0b   :  { %v2450_v44 = vadd.f32 %v2447_v43, %v2428_v41 }
 0xa0d   :  { %v2453_v49 = vmul.f32 0.7978846, %v2450_v44 }
 0xa0f   :  { %6654 = vtanh.f32 %v2453_v49 }
 0xa10   :  { %v2432_v45 = vpop.f32.mrb[18].mxu0 }
 0xa11   :  { %v2433_v8 = vadd.f32 %v5238_v39, %v2432_v45  ;;  %v5794_v42 = vpop.f32.mrb[19].mxu0 }
 0xa13   :  { %v2442_v47 = vmul.f32 %v2433_v8, %v2433_v8 }
 0xa15   :  { %v2445_v40 = vmul.f32 %v2442_v47, %v2433_v8  ;;  %v2437_v30 = vpop.f32.mrb[20].mxu0 }
 0xa16   :  { %v2438_v9 = vadd.f32 %v5238_v39, %v2437_v30  ;;  %v5797_v28 = vpop.f32.mrb[21].mxu0 }
 0xa17   :  { %v2448_v57 = vmul.f32 0.044715, %v2445_v40 }
 0xa18   :  { %v2443_v53 = vmul.f32 %v2438_v9, %v2438_v9 }
 0xa19   :  { %v6655_v38 = vpop.eup %6654  ;;  %v2451_v55 = vadd.f32 %v2448_v57, %v2433_v8 }
 0xa1a   :  { %v2459_v56 = vadd.f32 1.0, %v6655_v38  ;;  %v2446_v21 = vmul.f32 %v2443_v53, %v2438_v9  ;;  %v5244_v53 = vld [vmem:[%s8241_s4 + $0x80] sm:$0xff]  ;;  %v5245_v38 = vld [vmem:[%s8241_s4 + $0x88] sm:$0xff] }
 0xa1b   :  { %v2454_v62 = vmul.f32 0.7978846, %v2451_v55  ;;  %v6286_v55 = vpack.c.bf16 %v5245_v38, %v5244_v53 }
 0xa1c   :  { %v2462_v1 = vmul.f32 0.5, %v2459_v56  ;;  %v2449_v23 = vmul.f32 0.044715, %v2446_v21  ;;  %v5246_v56 = vld [vmem:[%s8241_s4 + $0x90] sm:$0xff]  ;;  %v5247_v21 = vld [vmem:[%s8241_s4 + $0x98] sm:$0xff] }
 0xa1d   :  { %6656 = vtanh.f32 %v2454_v62  ;;  %6287 = vmatpush3.bf16.msra.mxu0 %v6286_v55  ;;  %v6289_v62 = vpack.c.bf16 %v5247_v21, %v5246_v56 }
 0xa1e   :  { %v2465_v4 = vmul.f32 %v2462_v1, %v2428_v41  ;;  %v2452_v5 = vadd.f32 %v2449_v23, %v2438_v9  ;;  %6288 = vmatprep.subr.bf16.mxu0 %v6773_v3 }
 0xa20   :  { %v2455_v25 = vmul.f32 0.7978846, %v2452_v5  ;;  %5831 = vmatmul.mubr.f32.vlgmr.msra.gmra.mrb[42].mxu1 %v2465_v4  ;;  %v7612_v5 = vld [vmem:[%s8244_s7 + $0x10] sm:$0xff] }
 0xa21   :  { %5833 = vmatprep.mubr.msk.f32.mxu1 %vm6774_vm3, %v6775_v61  ;;  %6290 = vmatpush3.bf16.msra.mxu0 %v6289_v62  ;;  %v2751_v56 = vrot.slane %v7612_v5, %v7060_v0 }
 0xa22   :  { %6658 = vtanh.f32 %v2455_v25  ;;  %6291 = vmatprep.subr.bf16.mxu0 %v6773_v3  ;;  %v2644_v25 = vrot.slane %v7612_v5, %v6984_v15 }
 0xa27   :  { %v6657_v7 = vpop.eup %6656 }
 0xa28   :  { %v2460_v52 = vadd.f32 1.0, %v6657_v7 }
 0xa2a   :  { %v2463_v10 = vmul.f32 0.5, %v2460_v52 }
 0xa2c   :  { %v6659_v19 = vpop.eup %6658  ;;  %v2466_v46 = vmul.f32 %v2463_v10, %v2433_v8 }
 0xa2d   :  { %v2461_v20 = vadd.f32 1.0, %v6659_v19  ;;  %v2651_v19 = vrot.slane %v7612_v5, %v6992_v17 }
 0xa2e   :  { %5834 = vmatmul.mubr.f32.gmra.mrb[44].mxu1 %v2466_v46 }
 0xa2f   :  { %5836 = vmatprep.mubr.msk.f32.mxu1 %vm6774_vm3, %v6775_v61  ;;  %v2464_v51 = vmul.f32 0.5, %v2461_v20  ;;  %v5248_v20 = vld [vmem:[%s8241_s4 + $0xa0] sm:$0xff] }
 0xa31   :  { %v2467_v26 = vmul.f32 %v2464_v51, %v2438_v9  ;;  %v5249_v51 = vld [vmem:[%s8241_s4 + $0xa8] sm:$0xff] }
 0xa33   :  { %5837 = vmatmul.mubr.f32.gmra.mrb[46].mxu1 %v2467_v26 }
 0xaf3   :  { %v2534_v59 = vpop.f32.mrb[42].mxu1 }
 0xaf4   :  { %v2548_v31 = vadd.f32 %v2534_v59, %v7457_v11  ;;  %v5832_v33 = vpop.f32.mrb[43].mxu1  ;;  %v6292_v59 = vpack.c.bf16 %v5249_v51, %v5248_v20 }
 0xaf6   :  { %v7575_v16 = vadd.f32 %v2554_v29, %v2548_v31 }
 0xaf8   :  { %v2602_v34 = vsel %vm190_vm1, %v7575_v16, 0.0 }
 0xaf9   :  { %2603 = vadd.xlane.f32.xlu0 %v2602_v34  ;;  %v5250_v34 = vld [vmem:[%s8241_s4 + $0xb0] sm:$0xff] }
 0xb01   :  { %v2539_v37 = vpop.f32.mrb[44].mxu1 }
 0xb02   :  { %v2549_v60 = vadd.f32 %v2539_v37, %v7462_v58  ;;  %v5835_v54 = vpop.f32.mrb[45].mxu1  ;;  %v5251_v37 = vld [vmem:[%s8241_s4 + $0xb8] sm:$0xff] }
 0xb03   :  { %v6295_v54 = vpack.c.bf16 %v5251_v37, %v5250_v34 }
 0xb04   :  { %v7580_v35 = vadd.f32 %v2554_v29, %v2549_v60 }
 0xb06   :  { %v2544_v39 = vpop.f32.mrb[46].mxu1  ;;  %v2605_v63 = vsel %vm190_vm1, %v7580_v35, 0.0 }
 0xb07   :  { %v2550_v41 = vadd.f32 %v2544_v39, %v7467_v13  ;;  %2606 = vadd.xlane.f32.xlu1 %v2605_v63  ;;  %v5838_v11 = vpop.f32.mrb[47].mxu1 }
 0xb09   :  { %v7585_v48 = vadd.f32 %v2554_v29, %v2550_v41 }
 0xb0b   :  { %v2608_v2 = vsel %vm190_vm1, %v7585_v48, 0.0 }
 0xb0c   :  { %2609 = vadd.xlane.f32.xlu0 %v2608_v2 }
 0xb86   :  { %v2604_v36 = vpop.xlane.xlu0 %2603 }
 0xb87   :  { %v2611_v43 = vmul.f32 0.03125, %v2604_v36 }
 0xb89   :  { %v2614_v58 = vsub.f32 %v7575_v16, %v2611_v43 }
 0xb8b   :  { %v2617_v44 = vmul.f32 %v2614_v58, %v2614_v58 }
 0xb8d   :  { %v2620_v49 = vsel %vm190_vm1, %v2617_v44, 0.0  ;;  %v5252_v44 = vld [vmem:[%s8241_s4 + $0xc0] sm:$0xff] }
 0xb8e   :  { %2621 = vadd.xlane.f32.xlu1 %v2620_v49  ;;  %v5253_v49 = vld [vmem:[%s8241_s4 + $0xc8] sm:$0xff] }
 0xb94   :  { %v2607_v45 = vpop.xlane.xlu1 %2606 }
 0xb95   :  { %v2612_v8 = vmul.f32 0.03125, %v2607_v45  ;;  %v6298_v45 = vpack.c.bf16 %v5253_v49, %v5252_v44 }
 0xb97   :  { %v2615_v13 = vsub.f32 %v7580_v35, %v2612_v8  ;;  %v5254_v8 = vld [vmem:[%s8241_s4 + $0xd0] sm:$0xff] }
 0xb99   :  { %v2610_v42 = vpop.xlane.xlu0 %2609  ;;  %v2618_v47 = vmul.f32 %v2615_v13, %v2615_v13 }
 0xb9a   :  { %v2613_v40 = vmul.f32 0.03125, %v2610_v42 }
 0xb9b   :  { %v2623_v30 = vsel %vm190_vm1, %v2618_v47, 0.0  ;;  %v2658_v47 = vrot.slane %v7612_v5, %v7051_v50 }
 0xb9c   :  { %v2616_v9 = vsub.f32 %v7585_v48, %v2613_v40  ;;  %2624 = vadd.xlane.f32.xlu0 %v2623_v30 }
 0xb9e   :  { %v2619_v28 = vmul.f32 %v2616_v9, %v2616_v9 }
 0xba0   :  { %v2626_v57 = vsel %vm190_vm1, %v2619_v28, 0.0 }
 0xba1   :  { %2627 = vadd.xlane.f32.xlu1 %v2626_v57 }
 0xc1b   :  { %v2622_v1 = vpop.xlane.xlu1 %2621 }
 0xc1c   :  { %v2629_v23 = vmul.f32 0.03125, %v2622_v1 }
 0xc1e   :  { %v2632_v4 = vadd.f32 1e-12, %v2629_v23 }
 0xc20   :  { %6660 = vrsqrt.f32 %v2632_v4 }
 0xc29   :  { %v2625_v7 = vpop.xlane.xlu0 %2624 }
 0xc2a   :  { %v6661_v52 = vpop.eup %6660  ;;  %v2630_v10 = vmul.f32 0.03125, %v2625_v7 }
 0xc2b   :  { %v2638_v46 = vmul.f32 %v6661_v52, %v2614_v58 }
 0xc2c   :  { %v2633_v26 = vadd.f32 1e-12, %v2630_v10 }
 0xc2d   :  { %v2645_v27 = vmul.f32 %v2644_v25, %v2638_v46 }
 0xc2e   :  { %6662 = vrsqrt.f32 %v2633_v26  ;;  %v2628_v29 = vpop.xlane.xlu1 %2627 }
 0xc2f   :  { %v2652_v31 = vadd.f32 %v2651_v19, %v2645_v27  ;;  %v2631_v33 = vmul.f32 0.03125, %v2628_v29  ;;  %v2835_v27 = vrot.slane %v7612_v5, %v424_v22 }
 0xc31   :  { %v2634_v60 = vadd.f32 1e-12, %v2631_v33  ;;  %5848 = vmatmul.mubr.msk.f32.vlgmr.msra.gmra.mrb[22].mxu0 %vm190_vm1, %v2652_v31 }
 0xc32   :  { %5850 = vmatprep.mubr.msk.f32.mxu0 %vm6774_vm3, %v6775_v61  ;;  %6293 = vmatpush3.bf16.msra.mxu0 %v6292_v59 }
 0xc33   :  { %6664 = vrsqrt.f32 %v2634_v60  ;;  %6294 = vmatprep.subr.bf16.mxu0 %v6773_v3 }
 0xc36   :  { %6296 = vmatpush3.bf16.msra.mxu0 %v6295_v54 }
 0xc37   :  { %6297 = vmatprep.subr.bf16.mxu0 %v6773_v3 }
 0xc38   :  { %v6663_v39 = vpop.eup %6662 }
 0xc39   :  { %v2639_v63 = vmul.f32 %v6663_v39, %v2615_v13  ;;  %v5255_v13 = vld [vmem:[%s8241_s4 + $0xd8] sm:$0xff] }
 0xc3a   :  { %v6301_v42 = vpack.c.bf16 %v5255_v13, %v5254_v8 }
 0xc3b   :  { %v2646_v41 = vmul.f32 %v2644_v25, %v2639_v63 }
 0xc3d   :  { %v6665_v11 = vpop.eup %6664  ;;  %v2653_v2 = vadd.f32 %v2651_v19, %v2646_v41 }
 0xc3e   :  { %v2640_v36 = vmul.f32 %v6665_v11, %v2616_v9 }
 0xc3f   :  { %5851 = vmatmul.mubr.msk.f32.gmra.mrb[24].mxu0 %vm190_vm1, %v2653_v2 }
 0xc40   :  { %5853 = vmatprep.mubr.msk.f32.mxu0 %vm6774_vm3, %v6775_v61  ;;  %v2647_v43 = vmul.f32 %v2644_v25, %v2640_v36 }
 0xc42   :  { %v2654_v58 = vadd.f32 %v2651_v19, %v2647_v43 }
 0xc44   :  { %5854 = vmatmul.mubr.msk.f32.gmra.mrb[26].mxu0 %vm190_vm1, %v2654_v58 }
 0xc45   :  { %5864 = vmatprep.mubr.msk.f32.mxu0 %vm6774_vm3, %v6775_v61 }
 0xc48   :  { %5865 = vmatmul.mubr.msk.f32.vlgmr.msra.gmra.mrb[28].mxu0 %vm190_vm1, %v2652_v31 }
 0xc49   :  { %5867 = vmatprep.mubr.msk.f32.mxu0 %vm6774_vm3, %v6775_v61  ;;  %6299 = vmatpush3.bf16.msra.mxu0 %v6298_v45 }
 0xc4a   :  { %6300 = vmatprep.subr.bf16.mxu0 %v6773_v3 }
 0xc4c   :  { %5868 = vmatmul.mubr.msk.f32.gmra.mrb[30].mxu0 %vm190_vm1, %v2653_v2 }
 0xc4d   :  { %5870 = vmatprep.mubr.msk.f32.mxu0 %vm6774_vm3, %v6775_v61  ;;  %6302 = vmatpush3.bf16.msra.mxu0 %v6301_v42 }
 0xc50   :  { %5871 = vmatmul.mubr.msk.f32.gmra.mrb[32].mxu0 %vm190_vm1, %v2654_v58 }
 0xc51   :  { %5881 = vmatprep.mubr.msk.f32.mxu0 %vm6774_vm3, %v6775_v61 }
 0xc54   :  { %5882 = vmatmul.mubr.msk.f32.vlgmr.msra.gmra.mrb[34].mxu0 %vm190_vm1, %v2652_v31 }
 0xc55   :  { %5884 = vmatprep.mubr.msk.f32.mxu0 %vm6774_vm3, %v6775_v61 }
 0xc58   :  { %5885 = vmatmul.mubr.msk.f32.gmra.mrb[36].mxu0 %vm190_vm1, %v2653_v2 }
 0xc59   :  { %5887 = vmatprep.mubr.msk.f32.mxu0 %vm6774_vm3, %v6775_v61 }
 0xc5c   :  { %5888 = vmatmul.mubr.msk.f32.gmra.mrb[38].mxu0 %vm190_vm1, %v2654_v58 }
 0xd04   :  { %v2734_v40 = vpop.f32.mrb[22].mxu0 }
 0xd05   :  { %v2735_v30 = vadd.f32 %v2734_v40, %v2658_v47  ;;  %v5849_v9 = vpop.f32.mrb[23].mxu0 }
 0xd07   :  { %5894 = vmatprep.mubr.msk.f32.mxu1 %vm603_vm4, %v2735_v30  ;;  %2918 = vrot.lane.b32.xlu1 %v2735_v30, %s6776_s27 }
 0xd12   :  { %v2739_v28 = vpop.f32.mrb[24].mxu0 }
 0xd13   :  { %v5852_v57 = vpop.f32.mrb[25].mxu0  ;;  %v2740_v46 = vadd.f32 %v2739_v28, %v2658_v47 }
 0xd15   :  { %v2931_v58 = vrot.slane %v2740_v46, 4 }
 0xd17   :  { %v2744_v53 = vpop.f32.mrb[26].mxu0 }
 0xd18   :  { %v5855_v38 = vpop.f32.mrb[27].mxu0  ;;  %v2745_v39 = vadd.f32 %v2744_v53, %v2658_v47 }
 0xd1a   :  { %v2932_v43 = vrot.slane %v2745_v39, 4 }
 0xd1b   :  { %v2818_v55 = vpop.f32.mrb[28].mxu0 }
 0xd1c   :  { %v5866_v21 = vpop.f32.mrb[29].mxu0  ;;  %v2819_v1 = vadd.f32 %v2818_v55, %v2751_v56  ;;  %v2933_v8 = vsel %vm148_vm2, %v2931_v58, %v2932_v43 }
 0xd1f   :  { %v2823_v62 = vpop.f32.mrb[30].mxu0 }
 0xd20   :  { %v2824_v23 = vadd.f32 %v2823_v62, %v2751_v56  ;;  %v5869_v4 = vpop.f32.mrb[31].mxu0 }
 0xd22   :  { %v6523_v25 = vpack.i.bf16 %v2824_v23, %v2819_v1  ;;  %v6303_v7 = vpack.c.bf16 %v2824_v23, %v2819_v1  ;;  %v2961_v51 = vrot.slane %v2824_v23, 4 }
 0xd23   :  { %v2828_v52 = vpop.f32.mrb[32].mxu0 }
 0xd24   :  { %v2829_v10 = vadd.f32 %v2828_v52, %v2751_v56  ;;  %6524 = vrot.lane.b32.xlu1 %v6523_v25, %s6777_s28  ;;  %6519 = vrot.lane.b32.xlu0 %v6523_v25, %s6776_s27  ;;  %v5872_v19 = vpop.f32.mrb[33].mxu0 }
 0xd25   :  { %6305 = vmatprep.subr.msk.bf16.mxu1 %vm7072_vm5, %v6303_v7 }
 0xd26   :  { %v2962_v20 = vrot.slane %v2829_v10, 4  ;;  %6308 = vmatpush3.bf16.xpose.msk.msra.mxu1 %vm7072_vm5, %v6303_v7 }
 0xd27   :  { %v2902_v26 = vpop.f32.mrb[34].mxu0 }
 0xd28   :  { %6529 = vrot.lane.b32.xlu1 %v6523_v25, %s6778_s29  ;;  %2920 = vrot.lane.b32.xlu0 %v2740_v46, %s6776_s27  ;;  %v5883_v29 = vpop.f32.mrb[35].mxu0  ;;  %v2963_v59 = vsel %vm148_vm2, %v2961_v51, %v2962_v20  ;;  %v2903_v37 = vadd.f32 %v2902_v26, %v2835_v27 }
 0xd29   :  { %v6533_v31 = vpack.i.bf16 %v2962_v20, %v2963_v59  ;;  %v7688_v33 = vpack.c.bf16 %v2962_v20, %v2963_v59 }
 0xd2b   :  { %v2907_v34 = vpop.f32.mrb[36].mxu0 }
 0xd2c   :  { %v2908_v60 = vadd.f32 %v2907_v34, %v2835_v27  ;;  %2924 = vrot.lane.b32.xlu1 %v2740_v46, %s6777_s28  ;;  %2922 = vrot.lane.b32.xlu0 %v2735_v30, %s6777_s28  ;;  %v5886_v54 = vpop.f32.mrb[37].mxu0 }
 0xd2d   :  { %5895 = vmatmul.mubr.msk.f32.vlgmr.msra.gmra.mrb[48].mxu1 %vm603_vm4, %v2740_v46 }
 0xd2e   :  { %v7693_v22 = vpack.c.bf16 %v2908_v60, %v2903_v37  ;;  %v7695_v5 = vpack.i.bf16 %v2908_v60, %v2903_v37  ;;  %v2994_v2 = vrot.slane %v2908_v60, 4 }
 0xd2f   :  { %v2912_v63 = vpop.f32.mrb[38].mxu0 }
 0xd30   :  { %v2913_v41 = vadd.f32 %v2912_v63, %v2835_v27  ;;  %2926 = vrot.lane.b32.xlu0 %v2735_v30, %s6778_s29  ;;  %6534 = vrot.lane.b32.xlu1 %v6533_v31, %s6776_s27  ;;  %v5889_v11 = vpop.f32.mrb[39].mxu0 }
 0xd32   :  { %v2995_v36 = vrot.slane %v2913_v41, 4 }
 0xd34   :  { %6539 = vrot.lane.b32.xlu0 %v6533_v31, %s6777_s28  ;;  %2928 = vrot.lane.b32.xlu1 %v2740_v46, %s6778_s29  ;;  %v2996_v44 = vsel %vm148_vm2, %v2994_v2, %v2995_v36 }
 0xd35   :  { %v7702_v49 = vpack.i.bf16 %v2995_v36, %v2996_v44  ;;  %v7704_v45 = vpack.c.bf16 %v2995_v36, %v2996_v44 }
 0xd38   :  { %2934 = vrot.lane.b32.xlu0 %v2933_v8, %s6776_s27  ;;  %6544 = vrot.lane.b32.xlu1 %v6533_v31, %s6778_s29 }
 0xd3c   :  { %2938 = vrot.lane.b32.xlu0 %v2933_v8, %s6777_s28  ;;  %2936 = vrot.lane.b32.xlu1 %v2932_v43, %s6776_s27 }
 0xd40   :  { %2942 = vrot.lane.b32.xlu0 %v2933_v8, %s6778_s29  ;;  %2940 = vrot.lane.b32.xlu1 %v2932_v43, %s6777_s28 }
 0xd44   :  { %2944 = vrot.lane.b32.xlu1 %v2932_v43, %s6778_s29 }
 0xd79   :  { %v2919_v13 = vpop.permute.xlu1 %2918 }
 0xd7a   :  { %5901 = vmatprep.mubr.msk.f32.mxu0 %vm603_vm4, %v2919_v13 }
 0xd96   :  { %v6525_v42 = vpop.permute.xlu1 %6524  ;;  %v6520_v47 = vpop.permute.xlu0 %6519 }
 0xd97   :  { %v6527_v40 = vunpack.i.h.bf16 %v6525_v42  ;;  %v6526_v30 = vunpack.i.l.bf16 %v6525_v42  ;;  %v6522_v9 = vunpack.i.h.bf16 %v6520_v47  ;;  %v6521_v28 = vunpack.i.l.bf16 %v6520_v47 }
 0xd99   :  { %v6315_v57 = vpack.c.bf16 %v6527_v40, %v6526_v30  ;;  %v6309_v53 = vpack.c.bf16 %v6522_v9, %v6521_v28 }
 0xd9a   :  { %v6530_v38 = vpop.permute.xlu1 %6529  ;;  %v2921_v55 = vpop.permute.xlu0 %2920 }
 0xd9b   :  { %v6532_v56 = vunpack.i.h.bf16 %v6530_v38  ;;  %v6531_v21 = vunpack.i.l.bf16 %v6530_v38  ;;  %6311 = vmatprep.subr.msk.bf16.mxu0 %vm7072_vm5, %v6309_v53  ;;  %6317 = vmatprep.subr.msk.bf16.mxu1 %vm7072_vm5, %v6315_v57 }
 0xd9c   :  { %6314 = vmatpush3.bf16.xpose.msk.msra.mxu0 %vm7072_vm5, %v6309_v53  ;;  %6320 = vmatpush3.bf16.xpose.msk.msra.mxu1 %vm7072_vm5, %v6315_v57 }
 0xd9d   :  { %v6321_v62 = vpack.c.bf16 %v6532_v56, %v6531_v21  ;;  %6329 = vmatprep.subr.msk.bf16.mxu1 %vm7072_vm5, %v7688_v33 }
 0xd9e   :  { %v2925_v1 = vpop.permute.xlu1 %2924  ;;  %v2923_v23 = vpop.permute.xlu0 %2922 }
 0xd9f   :  { %5908 = vmatprep.mubr.msk.f32.mxu1 %vm603_vm4, %v2923_v23  ;;  %6323 = vmatprep.subr.msk.bf16.mxu0 %vm7072_vm5, %v6321_v62 }
 0xda2   :  { %v2927_v4 = vpop.permute.xlu0 %2926  ;;  %v6535_v25 = vpop.permute.xlu1 %6534 }
 0xda3   :  { %v6537_v7 = vunpack.i.h.bf16 %v6535_v25  ;;  %v6536_v52 = vunpack.i.l.bf16 %v6535_v25  ;;  %5902 = vmatmul.mubr.msk.f32.vlgmr.msra.gmra.mrb[40].mxu0 %vm603_vm4, %v2921_v55  ;;  %5909 = vmatmul.mubr.msk.f32.vlgmr.msra.gmra.mrb[50].mxu1 %vm603_vm4, %v2925_v1 }
 0xda4   :  { %6326 = vmatpush3.bf16.xpose.msk.msra.mxu0 %vm7072_vm5, %v6321_v62  ;;  %5915 = vmatprep.mubr.msk.f32.mxu0 %vm603_vm4, %v2927_v4 }
 0xda5   :  { %v6333_v10 = vpack.c.bf16 %v6537_v7, %v6536_v52  ;;  %6332 = vmatpush3.bf16.xpose.msk.msra.mxu1 %vm7072_vm5, %v7688_v33  ;;  %5922 = vmatprep.mubr.msk.f32.mxu1 %vm603_vm4, %v2933_v8 }
 0xda6   :  { %v6540_v19 = vpop.permute.xlu0 %6539  ;;  %v2929_v46 = vpop.permute.xlu1 %2928 }
 0xda7   :  { %v6542_v20 = vunpack.i.h.bf16 %v6540_v19  ;;  %v6541_v51 = vunpack.i.l.bf16 %v6540_v19  ;;  %6335 = vmatprep.subr.msk.bf16.mxu0 %vm7072_vm5, %v6333_v10 }
 0xda9   :  { %v6339_v26 = vpack.c.bf16 %v6542_v20, %v6541_v51 }
 0xdaa   :  { %v2935_v27 = vpop.permute.xlu0 %2934  ;;  %v6545_v29 = vpop.permute.xlu1 %6544 }
 0xdab   :  { %v6547_v59 = vunpack.i.h.bf16 %v6545_v29  ;;  %v6546_v31 = vunpack.i.l.bf16 %v6545_v29  ;;  %5916 = vmatmul.mubr.msk.f32.vlgmr.msra.gmra.mrb[42].mxu0 %vm603_vm4, %v2929_v46  ;;  %6341 = vmatprep.subr.msk.bf16.mxu1 %vm7072_vm5, %v6339_v26 }
 0xdac   :  { %5923 = vmatmul.mubr.msk.f32.vlgmr.msra.gmra.mrb[52].mxu1 %vm603_vm4, %v2932_v43  ;;  %6338 = vmatpush3.bf16.xpose.msk.msra.mxu0 %vm7072_vm5, %v6333_v10 }
 0xdad   :  { %v6345_v33 = vpack.c.bf16 %v6547_v59, %v6546_v31  ;;  %5929 = vmatprep.mubr.msk.f32.mxu0 %vm603_vm4, %v2935_v27  ;;  %6344 = vmatpush3.bf16.xpose.msk.msra.mxu1 %vm7072_vm5, %v6339_v26 }
 0xdae   :  { %6353 = vmatprep.subr.msk.bf16.mxu1 %vm7139_vm7, %v7693_v22  ;;  %v2939_v34 = vpop.permute.xlu0 %2938  ;;  %v2937_v37 = vpop.permute.xlu1 %2936 }
 0xdaf   :  { %5936 = vmatprep.mubr.msk.f32.mxu1 %vm603_vm4, %v2939_v34  ;;  %6347 = vmatprep.subr.msk.bf16.mxu0 %vm7072_vm5, %v6345_v33 }
 0xdb2   :  { %v2943_v60 = vpop.permute.xlu0 %2942  ;;  %v2941_v54 = vpop.permute.xlu1 %2940 }
 0xdb3   :  { %5930 = vmatmul.mubr.msk.f32.vlgmr.msra.gmra.mrb[44].mxu0 %vm603_vm4, %v2937_v37 }
 0xdb4   :  { %5937 = vmatmul.mubr.msk.f32.vlgmr.msra.gmra.mrb[54].mxu1 %vm603_vm4, %v2941_v54  ;;  %6350 = vmatpush3.bf16.xpose.msk.msra.mxu0 %vm7072_vm5, %v6345_v33 }
 0xdb5   :  { %5943 = vmatprep.mubr.msk.f32.mxu0 %vm603_vm4, %v2943_v60  ;;  %6356 = vmatpush3.bf16.msk.msra.mxu1 %vm7139_vm7, %v7693_v22 }
 0xdb6   :  { %v2945_v39 = vpop.permute.xlu1 %2944 }
 0xdbb   :  { %5944 = vmatmul.mubr.msk.f32.vlgmr.msra.gmra.mrb[46].mxu0 %vm603_vm4, %v2945_v39 }
 0xe00   :  { %v5896_v63 = vpop.f32.mrb[48].mxu1 }
 0xe01   :  { %v7764_v41 = vmul.f32 0.35355338, %v5896_v63  ;;  %v3087_v11 = vpop.f32.mrb[49].mxu1 }
 0xe02   :  { %v7766_v2 = vmul.f32 0.35355338, %v3087_v11 }
 0xe03   :  { %v3696_v36 = vsel %vm1288_vm8, %v7764_v41, -inf }
 0xe04   :  { %3697 = vmax.xlane.f32.xlu1 %v3696_v36  ;;  %v3693_v18 = vsel %vm1284_vm9, %v7766_v2, -inf }
 0xe05   :  { %3694 = vmax.xlane.f32.xlu0 %v3693_v18 }
 0xe76   :  { %v5903_v43 = vpop.f32.mrb[40].mxu0  ;;  %v5910_v58 = vpop.f32.mrb[50].mxu1 }
 0xe77   :  { %v7772_v22 = vmul.f32 0.35355338, %v5903_v43  ;;  %v7774_v44 = vmul.f32 0.35355338, %v5910_v58  ;;  %v3170_v8 = vpop.f32.mrb[41].mxu0  ;;  %v3253_v13 = vpop.f32.mrb[51].mxu1 }
 0xe78   :  { %v7776_v42 = vmul.f32 0.35355338, %v3170_v8  ;;  %v7782_v30 = vmul.f32 0.35355338, %v3253_v13 }
 0xe79   :  { %v3708_v47 = vsel %vm1288_vm8, %v7774_v44, -inf  ;;  %v3702_v40 = vsel %vm1288_vm8, %v7772_v22, -inf }
 0xe7a   :  { %3709 = vmax.xlane.f32.xlu1 %v3708_v47  ;;  %3703 = vmax.xlane.f32.xlu0 %v3702_v40  ;;  %v3699_v9 = vsel %vm1284_vm9, %v7776_v42, -inf  ;;  %v3705_v62 = vsel %vm1284_vm9, %v7782_v30, -inf }
 0xe7e   :  { %3700 = vmax.xlane.f32.xlu0 %v3699_v9  ;;  %v5917_v28 = vpop.f32.mrb[42].mxu0 }
 0xe7f   :  { %v5924_v57 = vpop.f32.mrb[52].mxu1  ;;  %v7786_v53 = vmul.f32 0.35355338, %v5917_v28  ;;  %v3336_v38 = vpop.f32.mrb[43].mxu0 }
 0xe80   :  { %v3419_v55 = vpop.f32.mrb[53].mxu1  ;;  %v7788_v56 = vmul.f32 0.35355338, %v5924_v57  ;;  %v7790_v21 = vmul.f32 0.35355338, %v3336_v38 }
 0xe81   :  { %v3714_v1 = vsel %vm1288_vm8, %v7786_v53, -inf  ;;  %v7796_v23 = vmul.f32 0.35355338, %v3419_v55 }
 0xe82   :  { %3706 = vmax.xlane.f32.xlu0 %v3705_v62  ;;  %3715 = vmax.xlane.f32.xlu1 %v3714_v1  ;;  %v3720_v4 = vsel %vm1288_vm8, %v7788_v56, -inf  ;;  %v3711_v25 = vsel %vm1284_vm9, %v7790_v21, -inf }
 0xe83   :  { %v3717_v26 = vsel %vm1284_vm9, %v7796_v23, -inf }
 0xe86   :  { %3721 = vmax.xlane.f32.xlu1 %v3720_v4  ;;  %3712 = vmax.xlane.f32.xlu0 %v3711_v25  ;;  %v5931_v7 = vpop.f32.mrb[44].mxu0 }
 0xe87   :  { %v5938_v52 = vpop.f32.mrb[54].mxu1  ;;  %v7802_v10 = vmul.f32 0.35355338, %v5931_v7  ;;  %v3502_v19 = vpop.f32.mrb[45].mxu0 }
 0xe88   :  { %v3585_v46 = vpop.f32.mrb[55].mxu1  ;;  %v7804_v20 = vmul.f32 0.35355338, %v5938_v52  ;;  %v7806_v51 = vmul.f32 0.35355338, %v3502_v19 }
 0xe89   :  { %v3726_v27 = vsel %vm1288_vm8, %v7802_v10, -inf  ;;  %v7812_v29 = vmul.f32 0.35355338, %v3585_v46 }
 0xe8a   :  { %3718 = vmax.xlane.f32.xlu0 %v3717_v26  ;;  %3727 = vmax.xlane.f32.xlu1 %v3726_v27  ;;  %v3732_v59 = vsel %vm1288_vm8, %v7804_v20, -inf  ;;  %v3723_v31 = vsel %vm1284_vm9, %v7806_v51, -inf }
 0xe8b   :  { %v3729_v54 = vsel %vm1284_vm9, %v7812_v29, -inf }
 0xe8e   :  { %3733 = vmax.xlane.f32.xlu1 %v3732_v59  ;;  %3724 = vmax.xlane.f32.xlu0 %v3723_v31  ;;  %v5945_v33 = vpop.f32.mrb[46].mxu0 }
 0xe8f   :  { %v7818_v34 = vmul.f32 0.35355338, %v5945_v33  ;;  %v3668_v37 = vpop.f32.mrb[47].mxu0 }
 0xe90   :  { %v7820_v60 = vmul.f32 0.35355338, %v3668_v37 }
 0xe91   :  { %v3738_v39 = vsel %vm1288_vm8, %v7818_v34, -inf  ;;  %v3698_v18 = vpop.xlane.xlu1 %3697 }
 0xe92   :  { %3730 = vmax.xlane.f32.xlu0 %v3729_v54  ;;  %3739 = vmax.xlane.f32.xlu1 %v3738_v39  ;;  %v3735_v63 = vsel %vm1284_vm9, %v7820_v60, -inf  ;;  %v3695_v11 = vpop.xlane.xlu0 %3694  ;;  %v3742_v43 = vsub.f32 %v7764_v41, %v3698_v18 }
 0xe93   :  { %v3741_v36 = vsub.f32 %v7766_v2, %v3695_v11 }
 0xe94   :  { %v3759_v8 = vmul.f32 1.442695, %v3742_v43 }
 0xe95   :  { %v3757_v58 = vmul.f32 1.442695, %v3741_v36 }
 0xe96   :  { %3736 = vmax.xlane.f32.xlu0 %v3735_v63 }
 0xe97   :  { %6666 = vpow2.f32 %v3757_v58 }
 0xe98   :  { %6668 = vpow2.f32 %v3759_v8 }
 0xea1   :  { %v7838_v13 = vpop.eup %6666 }
 0xea2   :  { %v3789_v47 = vsel %vm1284_vm9, %v7838_v13, 0.0  ;;  %v7842_v40 = vpop.eup %6668 }
 0xea3   :  { %6554 = vrot.lane.b32.xlu1 %v7695_v5, %s6777_s28 }
 0xea7   :  { %6559 = vrot.lane.b32.xlu1 %v7695_v5, %s6778_s29 }
 0xeab   :  { %6564 = vrot.lane.b32.xlu1 %v7702_v49, %s6776_s27 }
 0xeac   :  { %6549 = vrot.lane.b32.xlu0 %v7695_v5, %s6776_s27  ;;  %v3792_v5 = vsel %vm1288_vm8, %v7842_v40, 0.0 }
 0xecb   :  { %3790 = vadd.xlane.f32.xlu0 %v3789_v47 }
 0xecf   :  { %3793 = vadd.xlane.f32.xlu1 %v3792_v5 }
 0xf07   :  { %v3710_v2 = vpop.xlane.xlu1 %3709  ;;  %v3704_v9 = vpop.xlane.xlu0 %3703 }
 0xf08   :  { %v3746_v41 = vsub.f32 %v7774_v44, %v3710_v2  ;;  %v3744_v28 = vsub.f32 %v7772_v22, %v3704_v9 }
 0xf0a   :  { %v3763_v57 = vmul.f32 1.442695, %v3744_v28  ;;  %v3767_v38 = vmul.f32 1.442695, %v3746_v41 }
 0xf0b   :  { %v3701_v55 = vpop.xlane.xlu0 %3700 }
 0xf0c   :  { %v3743_v62 = vsub.f32 %v7776_v42, %v3701_v55  ;;  %6670 = vpow2.f32 %v3763_v57 }
 0xf0d   :  { %6672 = vpow2.f32 %v3767_v38 }
 0xf0e   :  { %v3761_v1 = vmul.f32 1.442695, %v3743_v62 }
 0xf0f   :  { %v3707_v4 = vpop.xlane.xlu0 %3706  ;;  %v3716_v25 = vpop.xlane.xlu1 %3715 }
 0xf10   :  { %6674 = vpow2.f32 %v3761_v1  ;;  %v3745_v7 = vsub.f32 %v7782_v30, %v3707_v4  ;;  %v3748_v52 = vsub.f32 %v7786_v53, %v3716_v25 }
 0xf12   :  { %v3765_v19 = vmul.f32 1.442695, %v3745_v7  ;;  %v3771_v46 = vmul.f32 1.442695, %v3748_v52 }
 0xf13   :  { %v3722_v44 = vpop.xlane.xlu1 %3721  ;;  %v3713_v26 = vpop.xlane.xlu0 %3712 }
 0xf14   :  { %6676 = vpow2.f32 %v3765_v19  ;;  %v3750_v22 = vsub.f32 %v7788_v56, %v3722_v44  ;;  %v3747_v27 = vsub.f32 %v7790_v21, %v3713_v26 }
 0xf15   :  { %6678 = vpow2.f32 %v3771_v46 }
 0xf16   :  { %v3775_v42 = vmul.f32 1.442695, %v3750_v22  ;;  %v3769_v59 = vmul.f32 1.442695, %v3747_v27  ;;  %v7853_v31 = vpop.eup %6670 }
 0xf17   :  { %v3719_v33 = vpop.xlane.xlu0 %3718  ;;  %v3728_v37 = vpop.xlane.xlu1 %3727  ;;  %v3798_v54 = vsel %vm1288_vm8, %v7853_v31, 0.0 }
 0xf18   :  { %6680 = vpow2.f32 %v3775_v42  ;;  %v3749_v30 = vsub.f32 %v7796_v23, %v3719_v33  ;;  %v3752_v53 = vsub.f32 %v7802_v10, %v3728_v37  ;;  %v7859_v39 = vpop.eup %6672  ;;  %3799 = vadd.xlane.f32.xlu1 %v3798_v54 }
 0xf19   :  { %6682 = vpow2.f32 %v3769_v59  ;;  %v3804_v43 = vsel %vm1288_vm8, %v7859_v39, 0.0 }
 0xf1a   :  { %v7861_v56 = vpop.eup %6674  ;;  %v3773_v21 = vmul.f32 1.442695, %v3749_v30  ;;  %v3779_v63 = vmul.f32 1.442695, %v3752_v53 }
 0xf1b   :  { %v3734_v11 = vpop.xlane.xlu1 %3733  ;;  %v3725_v36 = vpop.xlane.xlu0 %3724  ;;  %v3795_v18 = vsel %vm1284_vm9, %v7861_v56, 0.0 }
 0xf1c   :  { %6684 = vpow2.f32 %v3773_v21  ;;  %v3754_v23 = vsub.f32 %v7804_v20, %v3734_v11  ;;  %v3751_v10 = vsub.f32 %v7806_v51, %v3725_v36  ;;  %3796 = vadd.xlane.f32.xlu0 %v3795_v18  ;;  %3805 = vadd.xlane.f32.xlu1 %v3804_v43 }
 0xf1d   :  { %6686 = vpow2.f32 %v3779_v63 }
 0xf1e   :  { %v7869_v58 = vpop.eup %6676  ;;  %v3783_v8 = vmul.f32 1.442695, %v3754_v23  ;;  %v3777_v47 = vmul.f32 1.442695, %v3751_v10 }
 0xf1f   :  { %v7871_v5 = vpop.eup %6678  ;;  %v3731_v2 = vpop.xlane.xlu0 %3730  ;;  %v3801_v41 = vsel %vm1284_vm9, %v7869_v58, 0.0 }
 0xf20   :  { %v3740_v9 = vpop.xlane.xlu1 %3739  ;;  %6688 = vpow2.f32 %v3783_v8  ;;  %v3753_v20 = vsub.f32 %v7812_v29, %v3731_v2  ;;  %v3810_v28 = vsel %vm1288_vm8, %v7871_v5, 0.0  ;;  %3802 = vadd.xlane.f32.xlu0 %v3801_v41 }
 0xf21   :  { %v3756_v51 = vsub.f32 %v7818_v34, %v3740_v9  ;;  %6690 = vpow2.f32 %v3777_v47  ;;  %3811 = vadd.xlane.f32.xlu1 %v3810_v28 }
 0xf22   :  { %v7879_v57 = vpop.eup %6680  ;;  %v3781_v38 = vmul.f32 1.442695, %v3753_v20 }
 0xf23   :  { %v3787_v55 = vmul.f32 1.442695, %v3756_v51  ;;  %v7881_v62 = vpop.eup %6682  ;;  %v3737_v4 = vpop.xlane.xlu0 %3736  ;;  %v3816_v25 = vsel %vm1288_vm8, %v7879_v57, 0.0 }
 0xf24   :  { %v6555_v1 = vpop.permute.xlu1 %6554  ;;  %6692 = vpow2.f32 %v3781_v38  ;;  %v3755_v7 = vsub.f32 %v7820_v60, %v3737_v4  ;;  %v3807_v52 = vsel %vm1284_vm9, %v7881_v62, 0.0 }
 0xf25   :  { %v6557_v29 = vunpack.i.h.bf16 %v6555_v1  ;;  %v6556_v34 = vunpack.i.l.bf16 %v6555_v1  ;;  %6694 = vpow2.f32 %v3787_v55  ;;  %3817 = vadd.xlane.f32.xlu1 %v3816_v25  ;;  %3808 = vadd.xlane.f32.xlu0 %v3807_v52 }
 0xf26   :  { %v7888_v19 = vpop.eup %6684  ;;  %v3785_v44 = vmul.f32 1.442695, %v3755_v7 }
 0xf27   :  { %v6363_v46 = vpack.c.bf16 %v6557_v29, %v6556_v34  ;;  %v7890_v26 = vpop.eup %6686  ;;  %v6550_v22 = vpop.permute.xlu0 %6549  ;;  %v3813_v27 = vsel %vm1284_vm9, %v7888_v19, 0.0 }
 0xf28   :  { %6696 = vpow2.f32 %v3785_v44  ;;  %v6552_v42 = vunpack.i.h.bf16 %v6550_v22  ;;  %v6551_v60 = vunpack.i.l.bf16 %v6550_v22  ;;  %v3822_v59 = vsel %vm1288_vm8, %v7890_v26, 0.0  ;;  %v6560_v10 = vpop.permute.xlu1 %6559 }
 0xf29   :  { %6365 = vmatprep.subr.msk.bf16.mxu0 %vm7139_vm7, %v6363_v46  ;;  %3823 = vadd.xlane.f32.xlu1 %v3822_v59  ;;  %v6562_v41 = vunpack.i.h.bf16 %v6560_v10  ;;  %v6561_v20 = vunpack.i.l.bf16 %v6560_v10 }
 0xf2a   :  { %6368 = vmatpush3.bf16.msk.msra.mxu0 %vm7139_vm7, %v6363_v46  ;;  %v7900_v33 = vpop.eup %6688  ;;  %3814 = vadd.xlane.f32.xlu0 %v3813_v27  ;;  %v6357_v30 = vpack.c.bf16 %v6552_v42, %v6551_v60 }
 0xf2b   :  { %v7902_v37 = vpop.eup %6690  ;;  %6377 = vmatprep.subr.msk.bf16.mxu0 %vm7139_vm7, %v7704_v45  ;;  %v3828_v53 = vsel %vm1288_vm8, %v7900_v33, 0.0  ;;  %v6369_v38 = vpack.c.bf16 %v6562_v41, %v6561_v20 }
 0xf2c   :  { %v3819_v54 = vsel %vm1284_vm9, %v7902_v37, 0.0  ;;  %6359 = vmatprep.subr.msk.bf16.mxu1 %vm7139_vm7, %v6357_v30  ;;  %v6565_v43 = vpop.permute.xlu1 %6564 }
 0xf2d   :  { %3829 = vadd.xlane.f32.xlu1 %v3828_v53  ;;  %v6567_v7 = vunpack.i.h.bf16 %v6565_v43  ;;  %v6566_v52 = vunpack.i.l.bf16 %v6565_v43 }
 0xf2e   :  { %v7913_v21 = vpop.eup %6692  ;;  %3820 = vadd.xlane.f32.xlu0 %v3819_v54 }
 0xf2f   :  { %v7915_v63 = vpop.eup %6694  ;;  %v3825_v11 = vsel %vm1284_vm9, %v7913_v21, 0.0  ;;  %v6381_v59 = vpack.c.bf16 %v6567_v7, %v6566_v52 }
 0xf30   :  { %v3834_v36 = vsel %vm1288_vm8, %v7915_v63, 0.0 }
 0xf31   :  { %3835 = vadd.xlane.f32.xlu1 %v3834_v36 }
 0xf32   :  { %v7921_v18 = vpop.eup %6696  ;;  %3826 = vadd.xlane.f32.xlu0 %v3825_v11 }
 0xf33   :  { %v3831_v23 = vsel %vm1284_vm9, %v7921_v18, 0.0 }
 0xf36   :  { %3832 = vadd.xlane.f32.xlu0 %v3831_v23 }
 0xf42   :  { %6574 = vrot.lane.b32.xlu1 %v7702_v49, %s6778_s29 }
 0xf4c   :  { %6569 = vrot.lane.b32.xlu0 %v7702_v49, %s6777_s28 }
 0xf58   :  { %v3791_v8 = vpop.xlane.xlu0 %3790 }
 0xf59   :  { %6698 = vrcp.f32 %v3791_v8 }
 0xf5c   :  { %v3794_v47 = vpop.xlane.xlu1 %3793 }
 0xf5d   :  { %6700 = vrcp.f32 %v3794_v47 }
 0xf63   :  { %v6699_v2 = vpop.eup %6698 }
 0xf64   :  { %v3853_v9 = vmul.f32 %v6699_v2, %v7838_v13 }
 0xf66   :  { %5950 = vmatprep.mubr.msk.f32.mxu1 %vm1284_vm9, %v3853_v9 }
 0xf67   :  { %v6701_v51 = vpop.eup %6700 }
 0xf68   :  { %v3854_v28 = vmul.f32 %v6701_v51, %v7842_v40 }
 0xf6a   :  { %5951 = vmatmul.mubr.msk.f32.vlgmr.msra.gmra.mrb[56].mxu1 %vm1284_vm9, %v3854_v28 }
 0xf6b   :  { %6362 = vmatpush3.bf16.msk.msra.mxu1 %vm7139_vm7, %v6357_v30 }
 0xf6c   :  { %6371 = vmatprep.subr.msk.bf16.mxu1 %vm7139_vm7, %v6369_v38 }
 0xfa5   :  { %v3800_v49 = vpop.xlane.xlu1 %3799 }
 0xfa6   :  { %6702 = vrcp.f32 %v3800_v49 }
 0xfa9   :  { %v3797_v55 = vpop.xlane.xlu0 %3796  ;;  %v3806_v13 = vpop.xlane.xlu1 %3805 }
 0xfaa   :  { %6704 = vrcp.f32 %v3797_v55 }
 0xfab   :  { %6706 = vrcp.f32 %v3806_v13 }
 0xfad   :  { %v3803_v1 = vpop.xlane.xlu0 %3802 }
 0xfae   :  { %v3812_v4 = vpop.xlane.xlu1 %3811  ;;  %6708 = vrcp.f32 %v3803_v1 }
 0xfaf   :  { %6710 = vrcp.f32 %v3812_v4 }
 0xfb0   :  { %v6703_v40 = vpop.eup %6702 }
 0xfb1   :  { %v3856_v44 = vmul.f32 %v6703_v40, %v7853_v31 }
 0xfb2   :  { %v3818_v25 = vpop.xlane.xlu1 %3817  ;;  %v3809_v29 = vpop.xlane.xlu0 %3808 }
 0xfb3   :  { %6712 = vrcp.f32 %v3809_v29  ;;  %v5258_v29 = vld [vmem:[%s8241_s4 + $0xf0] sm:$0xff] }
 0xfb4   :  { %v6705_v34 = vpop.eup %6704  ;;  %6714 = vrcp.f32 %v3818_v25 }
 0xfb5   :  { %v3855_v46 = vmul.f32 %v6705_v34, %v7861_v56  ;;  %v6707_v22 = vpop.eup %6706  ;;  %v5259_v34 = vld [vmem:[%s8241_s4 + $0xf8] sm:$0xff] }
 0xfb6   :  { %v3824_v27 = vpop.xlane.xlu1 %3823  ;;  %v3858_v56 = vmul.f32 %v6707_v22, %v7859_v39  ;;  %v6403_v7 = vpack.c.bf16 %v5259_v34, %v5258_v29 }
 0xfb7   :  { %v3815_v42 = vpop.xlane.xlu0 %3814  ;;  %5957 = vmatprep.mubr.msk.f32.mxu1 %vm1284_vm9, %v3855_v46 }
 0xfb8   :  { %v6709_v60 = vpop.eup %6708  ;;  %5958 = vmatmul.mubr.msk.f32.vlgmr.msra.gmra.mrb[58].mxu1 %vm1284_vm9, %v3856_v44  ;;  %6716 = vrcp.f32 %v3815_v42 }
 0xfb9   :  { %6374 = vmatpush3.bf16.msk.msra.mxu1 %vm7139_vm7, %v6369_v38  ;;  %v3857_v30 = vmul.f32 %v6709_v60, %v7869_v58  ;;  %6718 = vrcp.f32 %v3824_v27  ;;  %v6711_v54 = vpop.eup %6710 }
 0xfba   :  { %6383 = vmatprep.subr.msk.bf16.mxu1 %vm7139_vm7, %v6381_v59  ;;  %v3830_v31 = vpop.xlane.xlu1 %3829  ;;  %v3860_v23 = vmul.f32 %v6711_v54, %v7871_v5 }
 0xfbb   :  { %v3821_v53 = vpop.xlane.xlu0 %3820  ;;  %5964 = vmatprep.mubr.msk.f32.mxu0 %vm1284_vm9, %v3857_v30 }
 0xfbc   :  { %5965 = vmatmul.mubr.msk.f32.vlgmr.msra.gmra.mrb[48].mxu0 %vm1284_vm9, %v3858_v56  ;;  %6720 = vrcp.f32 %v3821_v53 }
 0xfbd   :  { %6380 = vmatpush3.bf16.msk.msra.mxu0 %vm7139_vm7, %v7704_v45  ;;  %v6713_v11 = vpop.eup %6712  ;;  %6722 = vrcp.f32 %v3830_v31 }
 0xfbe   :  { %v3836_v58 = vpop.xlane.xlu1 %3835  ;;  %v3859_v39 = vmul.f32 %v6713_v11, %v7881_v62  ;;  %v6715_v10 = vpop.eup %6714 }
 0xfbf   :  { %v3827_v36 = vpop.xlane.xlu0 %3826  ;;  %v3862_v5 = vmul.f32 %v6715_v10, %v7879_v57 }
 0xfc0   :  { %6724 = vrcp.f32 %v3827_v36  ;;  %5971 = vmatprep.mubr.msk.f32.mxu1 %vm1284_vm9, %v3859_v39 }
 0xfc1   :  { %5972 = vmatmul.mubr.msk.f32.vlgmr.msra.gmra.mrb[60].mxu1 %vm1284_vm9, %v3860_v23  ;;  %6726 = vrcp.f32 %v3836_v58 }
 0xfc2   :  { %v6717_v43 = vpop.eup %6716  ;;  %6386 = vmatpush3.bf16.msk.msra.mxu1 %vm7139_vm7, %v6381_v59  ;;  %v6575_v45 = vpop.permute.xlu1 %6574 }
 0xfc3   :  { %v3833_v8 = vpop.xlane.xlu0 %3832  ;;  %v6577_v47 = vunpack.i.h.bf16 %v6575_v45  ;;  %v6576_v2 = vunpack.i.l.bf16 %v6575_v45  ;;  %v3861_v62 = vmul.f32 %v6717_v43, %v7888_v19  ;;  %v6719_v9 = vpop.eup %6718 }
 0xfc4   :  { %6728 = vrcp.f32 %v3833_v8  ;;  %v3864_v55 = vmul.f32 %v6719_v9, %v7890_v26 }
 0xfc5   :  { %v6393_v41 = vpack.c.bf16 %v6577_v47, %v6576_v2  ;;  %5978 = vmatprep.mubr.msk.f32.mxu0 %vm1284_vm9, %v3861_v62 }
 0xfc6   :  { %v6721_v20 = vpop.eup %6720  ;;  %5979 = vmatmul.mubr.msk.f32.vlgmr.msra.gmra.mrb[50].mxu0 %vm1284_vm9, %v3862_v5 }
 0xfc7   :  { %v6570_v51 = vpop.permute.xlu0 %6569  ;;  %6395 = vmatprep.subr.msk.bf16.mxu1 %vm7139_vm7, %v6393_v41  ;;  %v3863_v49 = vmul.f32 %v6721_v20, %v7902_v37  ;;  %v6723_v19 = vpop.eup %6722 }
 0xfc8   :  { %v6572_v28 = vunpack.i.h.bf16 %v6570_v51  ;;  %v6571_v38 = vunpack.i.l.bf16 %v6570_v51  ;;  %v3866_v37 = vmul.f32 %v6723_v19, %v7900_v33  ;;  %v6748_v19 = vld [vmem:[%s8244_s7 + $0x10] sm:$0xff] }
 0xfc9   :  { %5985 = vmatprep.mubr.msk.f32.mxu1 %vm1284_vm9, %v3863_v49 }
 0xfca   :  { %v6387_v13 = vpack.c.bf16 %v6572_v28, %v6571_v38  ;;  %v6725_v57 = vpop.eup %6724  ;;  %5986 = vmatmul.mubr.msk.f32.vlgmr.msra.gmra.mrb[62].mxu1 %vm1284_vm9, %v3864_v55 }
 0xfcb   :  { %6398 = vmatpush3.bf16.msk.msra.mxu1 %vm7139_vm7, %v6393_v41  ;;  %v3865_v1 = vmul.f32 %v6725_v57, %v7913_v21  ;;  %v6727_v4 = vpop.eup %6726  ;;  %v5256_v21 = vld [vmem:[%s8241_s4 + $0xe0] sm:$0xff] }
 0xfcc   :  { %6389 = vmatprep.subr.msk.bf16.mxu0 %vm7139_vm7, %v6387_v13  ;;  %6405 = vmatprep.subr.bf16.mxu1 %v6773_v3  ;;  %v3868_v40 = vmul.f32 %v6727_v4, %v7915_v63  ;;  %v5257_v63 = vld [vmem:[%s8241_s4 + $0xe8] sm:$0xff] }
 0xfcd   :  { %6392 = vmatpush3.bf16.msk.msra.mxu0 %vm7139_vm7, %v6387_v13  ;;  %5992 = vmatprep.mubr.msk.f32.mxu0 %vm1284_vm9, %v3865_v1  ;;  %v8041_v13 = vrot.slane %v6748_v19, %v2288_v24 }
 0xfce   :  { %v6729_v26 = vpop.eup %6728  ;;  %6399 = vmatprep.subr.bf16.mxu0 %v6773_v3 }
 0xfcf   :  { %v3867_v25 = vmul.f32 %v6729_v26, %v7921_v18  ;;  %v6400_v18 = vpack.c.bf16 %v5257_v63, %v5256_v21 }
 0xfd0   :  { %5993 = vmatmul.mubr.msk.f32.vlgmr.msra.gmra.mrb[52].mxu0 %vm1284_vm9, %v3866_v37 }
 0xfd1   :  { %5999 = vmatprep.mubr.msk.f32.mxu1 %vm1284_vm9, %v3867_v25  ;;  %6010 = vmatprep.mubr.msk.f32.mxu0 %vm6774_vm3, %v6775_v61 }
 0xfd2   :  { %6000 = vmatmul.mubr.msk.f32.vlgmr.msra.gmra.mrb[64].mxu1 %vm1284_vm9, %v3868_v40  ;;  %6401 = vmatpush3.bf16.msra.mxu0 %v6400_v18 }
 0xfd3   :  { %6027 = vmatprep.mubr.msk.f32.mxu1 %vm6774_vm3, %v6775_v61  ;;  %6402 = vmatprep.subr.bf16.mxu0 %v6773_v3 }
 0xfd6   :  { %6404 = vmatpush3.bf16.msra.mxu0 %v6403_v7 }
 0xfd7   :  { %6411 = vmatprep.subr.bf16.mxu0 %v6773_v3 }
0x103d   :  { %v5952_v12 = vpop.f32.mrb[56].mxu1 }
0x103e   :  { %v3943_v33 = vpop.f32.mrb[57].mxu1 }
0x108b   :  { %v5959_v52 = vpop.f32.mrb[58].mxu1 }
0x108c   :  { %4537 = vrot.lane.b32.xlu1 %v5959_v52, %s6780_s30  ;;  %v4026_v46 = vpop.f32.mrb[59].mxu1 }
0x108d   :  { %4535 = vrot.lane.b32.xlu0 %v4026_v46, %s6780_s30 }
0x108f   :  { %v5966_v44 = vpop.f32.mrb[48].mxu0 }
0x1090   :  { %v4109_v22 = vpop.f32.mrb[49].mxu0 }
0x1091   :  { %4543 = vrot.lane.b32.xlu1 %v4109_v22, %s6781_s21  ;;  %v5261_v22 = vld [vmem:[%s8242_s5 + $0x28] sm:$0xff] }
0x1094   :  { %v5973_v27 = vpop.f32.mrb[60].mxu1 }
0x1095   :  { %v4192_v42 = vpop.f32.mrb[61].mxu1 }
0x1096   :  { %4551 = vrot.lane.b32.xlu1 %v4192_v42, %s6782_s22  ;;  %v5262_v42 = vld [vmem:[%s8242_s5 + $0x30] sm:$0xff] }
0x1099   :  { %v8006_v60 = vpop.f32.mrb[50].mxu0 }
0x109a   :  { %v4275_v59 = vpop.f32.mrb[51].mxu0  ;;  %4545 = vrot.lane.b32.xlu1 %v5966_v44, %s6781_s21  ;;  %v5260_v44 = vld [vmem:[%s8242_s5 + $0x20] sm:$0xff] }
0x109d   :  { %v5987_v30 = vpop.f32.mrb[62].mxu1 }
0x109e   :  { %v4358_v56 = vpop.f32.mrb[63].mxu1 }
0x109f   :  { %4565 = vrot.lane.b32.xlu0 %v4358_v56, %s6780_s30  ;;  %v5265_v56 = vld [vmem:[%s8243_s6 + $0x80] sm:$0xff] }
0x10a3   :  { %v8010_v31 = vpop.f32.mrb[52].mxu0 }
0x10a4   :  { %v4441_v53 = vpop.f32.mrb[53].mxu0 }
0x10a5   :  { %4573 = vrot.lane.b32.xlu0 %v4441_v53, %s6781_s21  ;;  %v6001_v54 = vpop.f32.mrb[64].mxu1  ;;  %v5266_v53 = vld [vmem:[%s8243_s6 + $0x88] sm:$0xff] }
0x10a6   :  { %v4524_v11 = vpop.f32.mrb[65].mxu1 }
0x10a9   :  { %4581 = vrot.lane.b32.xlu0 %v4524_v11, %s6782_s22 }
0x10ad   :  { %4553 = vrot.lane.b32.xlu0 %v5973_v27, %s6782_s22  ;;  %v6406_v27 = vpack.c.bf16 %v5261_v22, %v5260_v44  ;;  %v8163_v44 = vld [vmem:[%s8245_s8 + $0x1] ss:$0 sm:$0xff] }
0x10af   :  { %6407 = vmatpush3.bf16.msra.mxu1 %v6406_v27 }
0x10b0   :  { %6408 = vmatprep.subr.bf16.mxu1 %v6773_v3 }
0x10fe   :  { %v4538_v58 = vpop.permute.xlu1 %4537 }
0x10ff   :  { %v4536_v39 = vpop.permute.xlu0 %4535  ;;  %v4558_v20 = vsel %vm603_vm4, %v5952_v12, %v4538_v58 }
0x1100   :  { %v4557_v23 = vsel %vm603_vm4, %v3943_v33, %v4536_v39  ;;  %v8086_v39 = vrot.slane %v6748_v19, %v2334_v6 }
0x1103   :  { %v4544_v36 = vpop.permute.xlu1 %4543 }
0x1104   :  { %v4559_v10 = vsel %vm2152_vm10, %v4557_v23, %v4544_v36 }
0x1108   :  { %v4552_v43 = vpop.permute.xlu1 %4551 }
0x1109   :  { %v4561_v45 = vsel %vm2155_vm11, %v4559_v10, %v4552_v43  ;;  %v8090_v10 = vrot.slane %v6748_v19, %v2341_v32 }
0x110a   :  { %6011 = vmatmul.mubr.msk.f32.vlgmr.msra.gmra.mrb[54].mxu0 %vm190_vm1, %v4561_v45 }
0x110b   :  { %6013 = vmatprep.mubr.msk.f32.mxu0 %vm6774_vm3, %v6775_v61 }
0x110c   :  { %v4546_v9 = vpop.permute.xlu1 %4545 }
0x110d   :  { %v4560_v51 = vsel %vm2152_vm10, %v4558_v20, %v4546_v9 }
0x1111   :  { %v4566_v8 = vpop.permute.xlu0 %4565 }
0x1112   :  { %v4587_v2 = vsel %vm603_vm4, %v4275_v59, %v4566_v8  ;;  %v5263_v59 = vld [vmem:[%s8242_s5 + $0x38] sm:$0xff] }
0x1117   :  { %v4574_v47 = vpop.permute.xlu0 %4573 }
0x1118   :  { %v4589_v62 = vsel %vm2152_vm10, %v4587_v2, %v4574_v47 }
0x111b   :  { %v4582_v5 = vpop.permute.xlu0 %4581 }
0x111c   :  { %v8024_v41 = vsel %vm2155_vm11, %v4589_v62, %v4582_v5 }
0x111d   :  { %v4595_v28 = vrot.slane %v8024_v41, 4  ;;  %v5267_v41 = vld [vmem:[%s8243_s6 + $0x90] sm:$0xff] }
0x111f   :  { %v4554_v38 = vpop.permute.xlu0 %4553 }
0x1120   :  { %v4562_v49 = vsel %vm2155_vm11, %v4560_v51, %v4554_v38 }
0x1121   :  { %v4599_v55 = vsel %vm148_vm2, %v4562_v49, %v4595_v28 }
0x1122   :  { %6014 = vmatmul.mubr.msk.f32.gmra.mrb[56].mxu0 %vm190_vm1, %v4599_v55 }
0x1123   :  { %6016 = vmatprep.mubr.msk.f32.mxu0 %vm6774_vm3, %v6775_v61 }
0x11dd   :  { %v4674_v57 = vpop.f32.mrb[54].mxu0 }
0x11de   :  { %v4688_v1 = vadd.f32 %v4674_v57, %v7575_v16  ;;  %v6012_v4 = vpop.f32.mrb[55].mxu0  ;;  %v5269_v57 = vld [vmem:[%s8243_s6 + $0xa0] sm:$0xff] }
0x11e0   :  { %v8045_v26 = vadd.f32 %v8041_v13, %v4688_v1  ;;  %v5270_v1 = vld [vmem:[%s8243_s6 + $0xa8] sm:$0xff] }
0x11e1   :  { %v6418_v4 = vpack.c.bf16 %v5270_v1, %v5269_v57 }
0x11e2   :  { %v4698_v37 = vsel %vm190_vm1, %v8045_v26, 0.0 }
0x11e3   :  { %4699 = vadd.xlane.f32.xlu1 %v4698_v37  ;;  %v5271_v37 = vld [vmem:[%s8243_s6 + $0xb0] sm:$0xff] }
0x11f4   :  { %4567 = vrot.lane.b32.xlu1 %v5987_v30, %s6780_s30  ;;  %v6409_v30 = vpack.c.bf16 %v5263_v59, %v5262_v42 }
0x11f5   :  { %v4679_v25 = vpop.f32.mrb[56].mxu0 }
0x11f6   :  { %v4689_v40 = vadd.f32 %v4679_v25, %v7580_v35  ;;  %v6015_v12 = vpop.f32.mrb[57].mxu0  ;;  %6410 = vmatpush3.bf16.msra.mxu1 %v6409_v30  ;;  %v5272_v25 = vld [vmem:[%s8243_s6 + $0xb8] sm:$0xff] }
0x11f7   :  { %6435 = vmatprep.subr.bf16.mxu1 %v6773_v3  ;;  %v5273_v12 = vld [vmem:[%s8243_s6 + $0xc0] sm:$0xff] }
0x11f8   :  { %v8052_v24 = vadd.f32 %v8041_v13, %v4689_v40  ;;  %4583 = vrot.lane.b32.xlu1 %v6001_v54, %s6782_s22  ;;  %v6412_v54 = vpack.c.bf16 %v5266_v53, %v5265_v56  ;;  %v6421_v40 = vpack.c.bf16 %v5272_v25, %v5271_v37 }
0x11fa   :  { %v4701_v16 = vsel %vm190_vm1, %v8052_v24, 0.0  ;;  %6413 = vmatpush3.bf16.msra.mxu0 %v6412_v54 }
0x11fb   :  { %4702 = vadd.xlane.f32.xlu0 %v4701_v16  ;;  %6414 = vmatprep.subr.bf16.mxu0 %v6773_v3  ;;  %v5274_v16 = vld [vmem:[%s8243_s6 + $0xc8] sm:$0xff] }
0x1270   :  { %v4700_v33 = vpop.xlane.xlu1 %4699 }
0x1271   :  { %v4707_v21 = vmul.f32 0.03125, %v4700_v33  ;;  %v6424_v33 = vpack.c.bf16 %v5274_v16, %v5273_v12 }
0x1273   :  { %v4710_v63 = vsub.f32 %v8045_v26, %v4707_v21  ;;  %v5275_v21 = vld [vmem:[%s8243_s6 + $0xd0] sm:$0xff] }
0x1274   :  { %v4568_v8 = vpop.permute.xlu1 %4567 }
0x1275   :  { %v4713_v18 = vmul.f32 %v4710_v63, %v4710_v63  ;;  %v4588_v62 = vsel %vm603_vm4, %v8006_v60, %v4568_v8 }
0x1277   :  { %v4716_v29 = vsel %vm190_vm1, %v4713_v18, 0.0 }
0x1278   :  { %4717 = vadd.xlane.f32.xlu0 %v4716_v29  ;;  %v4584_v14 = vpop.permute.xlu1 %4583  ;;  %v5277_v29 = vld [vmem:[%s8243_s6 + $0xe0] sm:$0xff] }
0x1288   :  { %v4703_v34 = vpop.xlane.xlu0 %4702 }
0x1289   :  { %v4708_v35 = vmul.f32 0.03125, %v4703_v34  ;;  %v5278_v34 = vld [vmem:[%s8243_s6 + $0xe8] sm:$0xff] }
0x128b   :  { %v4711_v7 = vsub.f32 %v8052_v24, %v4708_v35  ;;  %v6430_v35 = vpack.c.bf16 %v5278_v34, %v5277_v29 }
0x128d   :  { %v4714_v52 = vmul.f32 %v4711_v7, %v4711_v7 }
0x128f   :  { %v4719_v46 = vsel %vm190_vm1, %v4714_v52, 0.0  ;;  %v5280_v52 = vld [vmem:[%s8243_s6 + $0xf8] sm:$0xff] }
0x1290   :  { %4720 = vadd.xlane.f32.xlu0 %v4719_v46 }
0x12a6   :  { %4575 = vrot.lane.b32.xlu0 %v8010_v31, %s6781_s21 }
0x1305   :  { %v4718_v11 = vpop.xlane.xlu0 %4717 }
0x1306   :  { %v4725_v58 = vmul.f32 0.03125, %v4718_v11 }
0x1308   :  { %v4728_v36 = vadd.f32 1e-12, %v4725_v58 }
0x130a   :  { %6730 = vrsqrt.f32 %v4728_v36 }
0x1314   :  { %v6731_v31 = vpop.eup %6730 }
0x1315   :  { %v4734_v23 = vmul.f32 %v6731_v31, %v4710_v63  ;;  %v5276_v63 = vld [vmem:[%s8243_s6 + $0xd8] sm:$0xff] }
0x1316   :  { %v6427_v18 = vpack.c.bf16 %v5276_v63, %v5275_v21 }
0x1317   :  { %v4741_v43 = vmul.f32 %v8086_v39, %v4734_v23 }
0x1319   :  { %v4748_v45 = vadd.f32 %v8090_v10, %v4741_v43 }
0x131b   :  { %6028 = vmatmul.mubr.msk.f32.vlgmr.msra.gmra.mrb[66].mxu1 %vm190_vm1, %v4748_v45 }
0x131c   :  { %6030 = vmatprep.mubr.msk.f32.mxu1 %vm6774_vm3, %v6775_v61 }
0x131d   :  { %v4721_v47 = vpop.xlane.xlu0 %4720 }
0x131e   :  { %v4726_v2 = vmul.f32 0.03125, %v4721_v47 }
0x1320   :  { %v4729_v6 = vadd.f32 1e-12, %v4726_v2 }
0x1321   :  { %v4576_v5 = vpop.permute.xlu0 %4575 }
0x1322   :  { %6732 = vrsqrt.f32 %v4729_v6  ;;  %v4590_v32 = vsel %vm2152_vm10, %v4588_v62, %v4576_v5 }
0x1323   :  { %v4592_v9 = vsel %vm2155_vm11, %v4590_v32, %v4584_v14 }
0x1324   :  { %v4596_v20 = vrot.slane %v4592_v9, 4 }
0x1326   :  { %v4597_v51 = vsel %vm148_vm2, %v4595_v28, %v4596_v20  ;;  %v5268_v28 = vld [vmem:[%s8243_s6 + $0x98] sm:$0xff] }
0x1327   :  { %6017 = vmatmul.mubr.msk.f32.gmra.mrb[58].mxu0 %vm190_vm1, %v4597_v51  ;;  %v6415_v19 = vpack.c.bf16 %v5268_v28, %v5267_v41  ;;  %v5243_v41 = vld [vmem:[%s8244_s7 + $0x18] sm:$0xff] }
0x1328   :  { %6068 = vmatprep.mubr.msk.f32.mxu0 %vm6774_vm3, %v6775_v61  ;;  %v4957_v1 = vrot.slane %v5243_v41, %v6984_v15 }
0x1329   :  { %6416 = vmatpush3.bf16.msra.mxu0 %v6415_v19 }
0x132a   :  { %6417 = vmatprep.subr.bf16.mxu0 %v6773_v3 }
0x132c   :  { %v6733_v38 = vpop.eup %6732 }
0x132d   :  { %v4735_v49 = vmul.f32 %v6733_v38, %v4711_v7  ;;  %6419 = vmatpush3.bf16.msra.mxu0 %v6418_v4  ;;  %v5279_v7 = vld [vmem:[%s8243_s6 + $0xf0] sm:$0xff] }
0x132e   :  { %6420 = vmatprep.subr.bf16.mxu0 %v6773_v3  ;;  %v6433_v46 = vpack.c.bf16 %v5280_v52, %v5279_v7 }
0x132f   :  { %v4742_v60 = vmul.f32 %v8086_v39, %v4735_v49 }
0x1331   :  { %v4749_v55 = vadd.f32 %v8090_v10, %v4742_v60  ;;  %6422 = vmatpush3.bf16.msra.mxu0 %v6421_v40 }
0x1332   :  { %6423 = vmatprep.subr.bf16.mxu0 %v6773_v3 }
0x1333   :  { %6031 = vmatmul.mubr.msk.f32.gmra.mrb[68].mxu1 %vm190_vm1, %v4749_v55 }
0x1334   :  { %6033 = vmatprep.mubr.msk.f32.mxu1 %vm6774_vm3, %v6775_v61 }
0x1335   :  { %6425 = vmatpush3.bf16.msra.mxu0 %v6424_v33 }
0x1336   :  { %6426 = vmatprep.subr.bf16.mxu0 %v6773_v3 }
0x1339   :  { %6428 = vmatpush3.bf16.msra.mxu0 %v6427_v18 }
0x133a   :  { %6429 = vmatprep.subr.bf16.mxu0 %v6773_v3 }
0x133d   :  { %6431 = vmatpush3.bf16.msra.mxu0 %v6430_v35 }
0x133e   :  { %6432 = vmatprep.subr.bf16.mxu0 %v6773_v3 }
0x1341   :  { %6434 = vmatpush3.bf16.msra.mxu0 %v6433_v46 }
0x13ee   :  { %v4832_v22 = vpop.f32.mrb[66].mxu1 }
0x13ef   :  { %v4833_v27 = vadd.f32 %v8163_v44, %v4832_v22  ;;  %v6029_v42 = vpop.f32.mrb[67].mxu1 }
0x13f1   :  { %v4846_v59 = vmul.f32 %v4833_v27, %v4833_v27 }
0x13f3   :  { %v4849_v30 = vmul.f32 %v4846_v59, %v4833_v27 }
0x13f5   :  { %v4852_v56 = vmul.f32 0.044715, %v4849_v30  ;;  %v4990_v30 = vld [vmem:[%s8246_s9] sm:$0xff] }
0x13f7   :  { %v4855_v53 = vadd.f32 %v4852_v56, %v4833_v27  ;;  %v4991_v56 = vld [vmem:[%s8246_s9 + $0x8] sm:$0xff] }
0x13f9   :  { %v4858_v54 = vmul.f32 0.7978846, %v4855_v53  ;;  %v6436_v53 = vpack.c.bf16 %v4991_v56, %v4990_v30 }
0x13fa   :  { %v4684_v11 = vpop.f32.mrb[58].mxu0 }
0x13fb   :  { %v4690_v58 = vadd.f32 %v4684_v11, %v7585_v48  ;;  %v6018_v36 = vpop.f32.mrb[59].mxu0  ;;  %6734 = vtanh.f32 %v4858_v54  ;;  %6437 = vmatpush3.bf16.msra.mxu1 %v6436_v53 }
0x13fc   :  { %6438 = vmatprep.subr.bf16.mxu1 %v6773_v3 }
0x13fd   :  { %v4697_v31 = vadd.f32 %v8041_v13, %v4690_v58 }
0x13ff   :  { %v4704_v23 = vsel %vm190_vm1, %v4697_v31, 0.0 }
0x1400   :  { %4705 = vadd.xlane.f32.xlu1 %v4704_v23 }
0x1405   :  { %v6735_v43 = vpop.eup %6734 }
0x1406   :  { %v4837_v45 = vpop.f32.mrb[68].mxu1  ;;  %v4864_v8 = vadd.f32 1.0, %v6735_v43 }
0x1407   :  { %v4838_v47 = vadd.f32 %v8163_v44, %v4837_v45  ;;  %v6032_v2 = vpop.f32.mrb[69].mxu1 }
0x1408   :  { %v4867_v6 = vmul.f32 0.5, %v4864_v8 }
0x1409   :  { %v4847_v62 = vmul.f32 %v4838_v47, %v4838_v47 }
0x140a   :  { %v4870_v5 = vmul.f32 %v4867_v6, %v4833_v27 }
0x140b   :  { %v4850_v14 = vmul.f32 %v4847_v62, %v4838_v47 }
0x140c   :  { %6069 = vmatmul.mubr.f32.vlgmr.msra.gmra.mrb[60].mxu0 %v4870_v5 }
0x140d   :  { %v4853_v32 = vmul.f32 0.044715, %v4850_v14  ;;  %6071 = vmatprep.mubr.msk.f32.mxu0 %vm6774_vm3, %v6775_v61 }
0x140f   :  { %v4856_v48 = vadd.f32 %v4853_v32, %v4838_v47 }
0x1411   :  { %v4859_v13 = vmul.f32 0.7978846, %v4856_v48 }
0x1413   :  { %6736 = vtanh.f32 %v4859_v13 }
0x141d   :  { %v6737_v9 = vpop.eup %6736 }
0x141e   :  { %v4865_v20 = vadd.f32 1.0, %v6737_v9  ;;  %v5073_v9 = vld [vmem:[%s8247_s10 + $0x8] sm:$0xff] }
0x1420   :  { %v4868_v51 = vmul.f32 0.5, %v4865_v20  ;;  %v5075_v20 = vld [vmem:[%s8247_s10 + $0x18] sm:$0xff] }
0x1422   :  { %v4871_v38 = vmul.f32 %v4868_v51, %v4838_v47 }
0x1424   :  { %6072 = vmatmul.mubr.f32.gmra.mrb[62].mxu0 %v4871_v38 }
0x1425   :  { %6074 = vmatprep.mubr.msk.f32.mxu0 %vm6774_vm3, %v6775_v61 }
0x148d   :  { %v4706_v55 = vpop.xlane.xlu1 %4705 }
0x148e   :  { %v4709_v28 = vmul.f32 0.03125, %v4706_v55 }
0x1490   :  { %v4712_v40 = vsub.f32 %v4697_v31, %v4709_v28  ;;  %v4960_v31 = vld [vmem:[%s8248_s11] sm:$0xff] }
0x1491   :  { %v4983_v23 = vrot.slane %v4960_v31, %v6984_v15  ;;  %v4988_v45 = vrot.slane %v4960_v31, %v6992_v17  ;;  %v5072_v17 = vld [vmem:[%s8247_s10] sm:$0xff]  ;;  %v4997_v41 = vrot.slane %v4960_v31, %v7051_v50 }
0x1492   :  { %v4715_v63 = vmul.f32 %v4712_v40, %v4712_v40 }
0x1494   :  { %v4722_v18 = vsel %vm190_vm1, %v4715_v63, 0.0 }
0x14df   :  { %v4939_v49 = vpop.f32.mrb[60].mxu0 }
0x14e0   :  { %v6070_v60 = vpop.f32.mrb[61].mxu0  ;;  %v4952_v57 = vadd.f32 %v4939_v49, %v8045_v26 }
0x14e2   :  { %v4958_v12 = vadd.f32 %v4957_v1, %v4952_v57 }
0x14f7   :  { %v4944_v19 = vpop.f32.mrb[62].mxu0 }
0x14f8   :  { %v4953_v4 = vadd.f32 %v4944_v19, %v8052_v24  ;;  %v6073_v37 = vpop.f32.mrb[63].mxu0 }
0x14fa   :  { %v4959_v25 = vadd.f32 %v4957_v1, %v4953_v4 }
0x14fc   :  { %v4962_v16 = vrot.slane %v4959_v25, 3  ;;  %v5079_v25 = vrot.slane %v4960_v31, %v7060_v0 }
0x14fe   :  { %v4965_v33 = vsel %vm4964_vm12, %v4958_v12, %v4962_v16 }
0x14ff   :  { %v4967_v21 = vsel %vm4966_vm13, %v4965_v33, 0.0 }
0x1500   :  { %4968 = vadd.xlane.f32.xlu0 %v4967_v21 }
0x1504   :  { %4723 = vadd.xlane.f32.xlu0 %v4722_v18 }
0x158d   :  { %v4969_v29 = vpop.xlane.xlu0 %4968 }
0x158e   :  { %v4970_v26 = vmul.f32 0.03125, %v4969_v29 }
0x1590   :  { %v4971_v34 = vsub.f32 %v4965_v33, %v4970_v26 }
0x1591   :  { %v4724_v35 = vpop.xlane.xlu0 %4723 }
0x1592   :  { %v4727_v7 = vmul.f32 0.03125, %v4724_v35  ;;  %v4972_v24 = vmul.f32 %v4971_v34, %v4971_v34 }
0x1594   :  { %v4730_v52 = vadd.f32 1e-12, %v4727_v7  ;;  %v4973_v46 = vsel %vm4966_vm13, %v4972_v24, 0.0 }
0x1595   :  { %4974 = vadd.xlane.f32.xlu1 %v4973_v46 }
0x1596   :  { %6738 = vrsqrt.f32 %v4730_v52 }
0x15a0   :  { %v6739_v22 = vpop.eup %6738 }
0x15a1   :  { %v4736_v27 = vmul.f32 %v6739_v22, %v4712_v40 }
0x15a3   :  { %v4743_v42 = vmul.f32 %v8086_v39, %v4736_v27  ;;  %v4992_v39 = vld [vmem:[%s8246_s9 + $0x10] sm:$0xff] }
0x15a5   :  { %v4750_v59 = vadd.f32 %v8090_v10, %v4743_v42  ;;  %v4993_v10 = vld [vmem:[%s8246_s9 + $0x18] sm:$0xff] }
0x15a6   :  { %v6439_v54 = vpack.c.bf16 %v4993_v10, %v4992_v39 }
0x15a7   :  { %6034 = vmatmul.mubr.msk.f32.gmra.mrb[70].mxu1 %vm190_vm1, %v4750_v59 }
0x15a8   :  { %6085 = vmatprep.mubr.msk.f32.mxu1 %vm6774_vm3, %v6775_v61  ;;  %6440 = vmatpush3.bf16.msra.mxu1 %v6439_v54 }
0x15a9   :  { %6441 = vmatprep.subr.bf16.mxu1 %v6773_v3 }
0x1622   :  { %v4975_v11 = vpop.xlane.xlu1 %4974 }
0x1623   :  { %v4976_v58 = vmul.f32 0.03125, %v4975_v11 }
0x1625   :  { %v4977_v36 = vadd.f32 1e-12, %v4976_v58 }
0x1627   :  { %6740 = vrsqrt.f32 %v4977_v36 }
0x1631   :  { %v6741_v43 = vpop.eup %6740 }
0x1632   :  { %v4979_v8 = vmul.f32 %v6741_v43, %v4971_v34 }
0x1634   :  { %v4984_v47 = vmul.f32 %v4983_v23, %v4979_v8 }
0x1636   :  { %v4989_v2 = vadd.f32 %v4988_v45, %v4984_v47 }
0x1638   :  { %6086 = vmatmul.mubr.msk.f32.vlgmr.msra.gmra.mrb[72].mxu1 %vm190_vm1, %v4989_v2 }
0x1639   :  { %6096 = vmatprep.mubr.msk.f32.mxu1 %vm6774_vm3, %v6775_v61  ;;  %v5074_v61 = vld [vmem:[%s8247_s10 + $0x10] sm:$0xff]  ;;  %s6783_s10 = smov [#allocation2]  }
0x163a   :  { %v6445_v38 = vpack.c.bf16 %v5075_v20, %v5074_v61  ;;  %s5161_s26 = sshll.u32 %s6783_s10, 4  ;;  %s5162_s26 = int_to_ptr.vmem [resolvable:$true] %s5161_s26 }
0x163b   :  { %s6749_s13 = scalar_lea.vmem %s5162_s26, 32  ;;  %p6754_p1 = scmp.lt.s32.totalorder %s5162_s26, %s5162_s26 }
0x163c   :  { %p6750_p0 = scmp.ne.s32.totalorder %s5162_s26, %s6749_s13  ;;  %p6755_p2 = scmp.lt.s32.totalorder %s6749_s13, %s6749_s13 }
0x163e   :  { %p6756_p3 = por %p6755_p2, %p6754_p1 }
0x1640   :  { %p6757_p4 = pnand %p6756_p3, %p6750_p0 }
0x167a   :  { %v4842_v6 = vpop.f32.mrb[70].mxu1 }
0x167b   :  { %v4843_v62 = vadd.f32 %v8163_v44, %v4842_v6  ;;  %v6035_v5 = vpop.f32.mrb[71].mxu1  ;;  %v6442_v44 = vpack.c.bf16 %v5073_v9, %v5072_v17 }
0x167d   :  { %v4848_v14 = vmul.f32 %v4843_v62, %v4843_v62  ;;  %6443 = vmatpush3.bf16.msra.mxu1 %v6442_v44 }
0x167e   :  { %6444 = vmatprep.subr.bf16.mxu1 %v6773_v3 }
0x167f   :  { %v4851_v32 = vmul.f32 %v4848_v14, %v4843_v62 }
0x1681   :  { %v4854_v48 = vmul.f32 0.044715, %v4851_v32  ;;  %6446 = vmatpush3.bf16.msra.mxu1 %v6445_v38 }
0x1683   :  { %v4857_v13 = vadd.f32 %v4854_v48, %v4843_v62 }
0x1685   :  { %v4860_v15 = vmul.f32 0.7978846, %v4857_v13 }
0x1687   :  { %6742 = vtanh.f32 %v4860_v15 }
0x1691   :  { %v6743_v51 = vpop.eup %6742 }
0x1692   :  { %v4866_v49 = vadd.f32 1.0, %v6743_v51 }
0x1694   :  { %v4869_v60 = vmul.f32 0.5, %v4866_v49 }
0x1696   :  { %v4872_v55 = vmul.f32 %v4869_v60, %v4843_v62 }
0x1698   :  { %6075 = vmatmul.mubr.f32.gmra.mrb[64].mxu0 %v4872_v55 }
0x170b   :  { %v5067_v28 = vpop.f32.mrb[72].mxu1 }
0x170c   :  { %v5068_v19 = vadd.f32 %v5067_v28, %v4997_v41  ;;  %v6087_v57 = vpop.f32.mrb[73].mxu1 }
0x170e   :  { %6744 = vtanh.f32 %v5068_v19 }
0x1718   :  { %v6745_v1 = vpop.eup %6744 }
0x1719   :  { %6097 = vmatmul.mubr.msk.f32.vlgmr.msra.gmra.mrb[74].mxu1 %vm190_vm1, %v6745_v1 }
0x176b   :  { %v4949_v4 = vpop.f32.mrb[64].mxu0 }
0x176c   :  { %v6076_v37 = vpop.f32.mrb[65].mxu0 }
0x17ec   :  { %v5149_v3 = vpop.f32.mrb[74].mxu1 }
0x17ed   :  { %v5150_v40 = vadd.f32 %v5149_v3, %v5079_v25  ;;  %v6098_v12 = vpop.f32.mrb[75].mxu1 }
0x17ef   :  { %5154 = vst.msk [vmem:[#allocation2] sm:$0x3] %vm5153_vm14, %v5150_v40 }
0x17f0   :  { %6760 = shalt.err (!%p6757_p4)
}
0x17f1   :  { %s6761_s21 = scalar_lea.hbm %s8249_s12, 32 }
0x17f2   :  { %p6762_p5 = scmp.ne.s32.totalorder %s8249_s12, %s6761_s21  ;;  %p6765_p6 = scmp.lt.u32.totalorder %s6761_s21, %s8249_s12 }
0x17f4   :  { %p6767_p7 = pnand %p6765_p6, %p6762_p5 }
0x17f6   :  { %6770 = shalt.err (!%p6767_p7)
}
0x17f7   :  { %5164 = dma.vmem_to_hbm [thread:$0]  %s5162_s26, 32, %s8249_s12, [#allocation3]  }
0x17f8   :  { %6771 = dma.done.wait [#allocation3], 32  }
0x17f9   :  { %6772 = vsyncadd [#allocation3], 4294967264 }
0x17fa   :  { %5168 = vsyncpa [#allocation3], 1 }

</bundles_post_ra>
